<compile_context>
chip_gen: v7x
topology: tpu7x:2x2x1
jax: 0.10.0
libtpu: 0.0.40
codegen_flags: <defaults>
</compile_context>

<pallas_src>
import functools

import jax
import jax.numpy as jnp
from jax import lax
from jax.experimental import pallas as pl
from jax.experimental.pallas import tpu as pltpu

PAD = 128          # lane padding for all feature dims
GW = 128           # graph_w
NUM_LAYERS = 7
CONCAT_LAYERS = (3, 5, 7)     # 1-based, as in the PyTorch module
NEG = -1e30        # "minus infinity" for masked max / log-softmax masking


# ---------------------------------------------------------------------------
# Kernel: the whole forward pass, fused.  Everything fits in VMEM at these
# sizes, so we run a single grid step with full-array blocks.
# ---------------------------------------------------------------------------
def net_kernel(x_ref, adj_ref, valid_ref,
               pre_w, pre_b, pre_s, pre_t,
               c_wcat, c_brel, c_bns, c_bnt,
               l0_w, l0_b, l1_w, l1_b, lf_w, lf_b,
               out_ref):
    bf16 = jnp.bfloat16

    def elu(v):
        # ELU in f32.  Clamp before exp so the unselected branch stays finite
        # for large positive v; exp(vn) - 1 == expm1(vn) up to f32 rounding
        # at the magnitudes seen here.
        vn = jnp.minimum(v, 0.0)
        return jnp.where(v > 0.0, v, jnp.exp(vn) - 1.0)

    def mm(a, b):
        return jnp.dot(a, b, preferred_element_type=jnp.float32)

    num_graphs = out_ref.shape[0]
    num_nodes = x_ref.shape[0]
    nodes_per_graph = num_nodes // num_graphs

    x = x_ref[...]               # [N, 128] bf16 (38 real features)
    adj = adj_ref[...]           # [N, N]   bf16, A[i, j] = #edges j->i
    # Additive -inf mask for padded/invalid nodes (all nodes valid here).
    neg_fill = jnp.where(valid_ref[...] > 0.0, 0.0, NEG)      # [N, 1] f32

    # pre_lin -> ELU -> pre_bn (eval-mode affine); elementwise in f32.
    h32 = elu(mm(x, pre_w[...]) + pre_b[...])
    h32 = h32 * pre_s[...] + pre_t[...]
    h = h32.astype(bf16)

    pooled = []
    for layer in range(NUM_LAYERS):
        w_cat = c_wcat[layer]    # [256, 128] bf16  ([w_rel; w_root] fused)
        b_rel = c_brel[layer]    # [1, 128] f32
        bn_s = c_bns[layer]      # [1, 128] f32
        bn_t = c_bnt[layer]      # [1, 128] f32

        # GraphConv: out = [A@h, h] @ [w_rel; w_root] + b_rel   (one K=256 mm)
        agg = mm(adj, h)                                       # f32 [N, 128]
        hc = jnp.concatenate([agg.astype(bf16), h], axis=1)    # bf16 [N, 256]
        h32 = elu(mm(hc, w_cat) + b_rel)
        h32 = h32 * bn_s + bn_t          # BatchNorm1d (eval) scale/shift
        h = h32.astype(bf16)

        if (layer + 1) in CONCAT_LAYERS:
            # global_max_pool: graphs are contiguous, uniform-size node blocks
            # (pad ragged graphs to nodes_per_graph and mark pads via `valid`).
            masked = (h32 + neg_fill).reshape(
                num_graphs, nodes_per_graph, PAD)
            pooled.append(jnp.max(masked, axis=1))             # f32 [B, 128]

    z32 = jnp.concatenate(pooled, axis=1)                      # [B, 384] f32
    z32 = elu(mm(z32.astype(bf16), l0_w[...]) + l0_b[...])     # [B, 128] (32)
    z32 = elu(mm(z32.astype(bf16), l1_w[...]) + l1_b[...])     # [B, 128] (8)
    # F.dropout(p=0.5) is identity in eval mode.
    logits = mm(z32.astype(bf16), lf_w[...]) + lf_b[...]       # [B, 128] (3)

    # log_softmax over the 3 real classes (mask the padded lanes first).
    col = lax.broadcasted_iota(jnp.int32, logits.shape, 1)
    logits = jnp.where(col < 3, logits, NEG)
    mx = jnp.max(logits, axis=1, keepdims=True)
    lse = mx + jnp.log(jnp.sum(jnp.exp(logits - mx), axis=1, keepdims=True))
    out_ref[...] = logits - lse


# ---------------------------------------------------------------------------
# Wrapper
# ---------------------------------------------------------------------------
def _spec(shape):
    nd = len(shape)
    return pl.BlockSpec(shape, lambda *_, nd=nd: (0,) * nd)


@functools.partial(jax.jit, static_argnames=("num_graphs",))
def net_forward(x_pad, adj, valid, params, *, num_graphs):
    args = (x_pad, adj, valid) + tuple(params)
    out = pl.pallas_call(
        net_kernel,
        grid=(1,),
        in_specs=[_spec(a.shape) for a in args],
        out_specs=_spec((num_graphs, PAD)),
        out_shape=jax.ShapeDtypeStruct((num_graphs, PAD), jnp.float32),
        compiler_params=pltpu.CompilerParams(
            dimension_semantics=("arbitrary",)),
    )(*args)
    return out[:, :3]


# ---------------------------------------------------------------------------
# Deterministic synthetic parameters (shapes from the module __init__)
# ---------------------------------------------------------------------------
def _dense_pad(key, in_dim, out_dim, pad_in, pad_out, scale=0.1):
    w = jax.random.normal(key, (in_dim, out_dim), jnp.float32) * scale
    return jnp.zeros((pad_in, pad_out), jnp.float32).at[:in_dim, :out_dim].set(w)


def _bias_pad(key, dim, pad, scale=0.1):
    b = jax.random.normal(key, (dim,), jnp.float32) * scale
    return jnp.zeros((1, pad), jnp.float32).at[0, :dim].set(b)


def _bn_eval(key, dim, pad):
    kg, kb, km, kv = jax.random.split(key, 4)
    gamma = 1.0 + 0.1 * jax.random.normal(kg, (dim,), jnp.float32)
    beta = 0.1 * jax.random.normal(kb, (dim,), jnp.float32)
    mean = 0.1 * jax.random.normal(km, (dim,), jnp.float32)
    var = 1.0 + 0.1 * jax.random.uniform(kv, (dim,), jnp.float32)
    scale = gamma / jnp.sqrt(var + 1e-5)
    shift = beta - mean * scale
    s = jnp.zeros((1, pad), jnp.float32).at[0, :dim].set(scale)
    t = jnp.zeros((1, pad), jnp.float32).at[0, :dim].set(shift)
    return s, t


def init_params(key):
    keys = iter(jax.random.split(key, 64))
    nk = lambda: next(keys)
    bf16 = jnp.bfloat16

    # pre_lin: Linear(38, 3); pre_bn: BatchNorm1d(3)
    pre_w = _dense_pad(nk(), 38, 3, PAD, PAD).astype(bf16)
    pre_b = _bias_pad(nk(), 3, PAD)
    pre_s, pre_t = _bn_eval(nk(), 3, PAD)

    # conv0..conv6: GraphConv(prev, 128) = lin_rel (bias) + lin_root (no bias),
    # fused host-side into w_cat = [w_rel; w_root] -> [256, 128]; bn0..bn6.
    wcat, brel, bns, bnt = [], [], [], []
    prev = 3
    for _ in range(NUM_LAYERS):
        w_rel = _dense_pad(nk(), prev, GW, PAD, PAD)
        b_rel = _bias_pad(nk(), GW, PAD)
        w_root = _dense_pad(nk(), prev, GW, PAD, PAD)
        s, t = _bn_eval(nk(), GW, PAD)
        wcat.append(jnp.concatenate([w_rel, w_root], axis=0))   # [256, 128]
        brel.append(b_rel)
        bns.append(s)
        bnt.append(t)
        prev = GW
    c_wcat = jnp.stack(wcat).astype(bf16)     # [7, 256, 128] bf16
    c_brel = jnp.stack(brel)                  # [7, 1, 128]   f32
    c_bns = jnp.stack(bns)                    # [7, 1, 128]   f32
    c_bnt = jnp.stack(bnt)                    # [7, 1, 128]   f32

    l0_w = _dense_pad(nk(), 3 * GW, 32, 3 * GW, PAD).astype(bf16)  # Linear(384, 32)
    l0_b = _bias_pad(nk(), 32, PAD)
    l1_w = _dense_pad(nk(), 32, 8, PAD, PAD).astype(bf16)          # Linear(32, 8)
    l1_b = _bias_pad(nk(), 8, PAD)
    lf_w = _dense_pad(nk(), 8, 3, PAD, PAD).astype(bf16)           # Linear(8, 3)
    lf_b = _bias_pad(nk(), 3, PAD)

    return (pre_w, pre_b, pre_s, pre_t,
            c_wcat, c_brel, c_bns, c_bnt,
            l0_w, l0_b, l1_w, l1_b, lf_w, lf_b)


# ---------------------------------------------------------------------------
# Main
# ---------------------------------------------------------------------------
if __name__ == "__main__":
    num_graphs = 8
    nodes_per_graph = 8
    num_nodes = num_graphs * nodes_per_graph      # 64
    f_in = 38

    key = jax.random.PRNGKey(0)
    kx, kp = jax.random.split(key)

    # Node features [N, 38], zero-padded to [N, 128], stored bf16.
    x = jax.random.normal(kx, (num_nodes, f_in), jnp.float32)
    x_pad = jnp.zeros((num_nodes, PAD), jnp.float32).at[:, :f_in].set(x)
    x_pad = x_pad.astype(jnp.bfloat16)

    # Deterministic bidirectional ring edges within each graph
    # (nodes_per_graph consecutive nodes per graph).
    src, dst = [], []
    for g in range(num_graphs):
        base = g * nodes_per_graph
        for n in range(nodes_per_graph):
            a = base + n
            b = base + (n + 1) % nodes_per_graph
            src += [a, b]
            dst += [b, a]
    edge_index = jnp.array([src, dst], dtype=jnp.int32)   # [2, E]

    # Dense adjacency for message passing: A[i, j] = #edges j -> i.
    # NOTE: at N=64 a dense [N, N] matmul is negligible; for much larger N
    # switch to per-graph blocked aggregation / gather instead (block-diagonal
    # adjacency, ~98% zeros).
    adj = jnp.zeros((num_nodes, num_nodes), jnp.float32).at[
        edge_index[1], edge_index[0]].add(1.0)
    adj = adj.astype(jnp.bfloat16)      # small integer counts: exact in bf16

    # Valid-node mask (all nodes real here; pad ragged graphs and zero these).
    valid = jnp.ones((num_nodes, 1), jnp.float32)

    params = init_params(kp)

    out = net_forward(x_pad, adj, valid, params, num_graphs=num_graphs)
    out = jax.block_until_ready(out)

    # sanity: rows of exp(log_softmax) must sum to 1
    row_sums = jnp.sum(jnp.exp(out), axis=1)
    assert out.shape == (num_graphs, 3)
    assert bool(jnp.all(jnp.isfinite(out)))
    assert bool(jnp.all(jnp.abs(row_sums - 1.0) < 1e-3))

    print("KERNEL_OK")
</pallas_src>

<mosaic_0001>
module attributes {stable_mosaic.version = 11 : i64} {
  func.func @net_kernel(%arg0: i32, %arg1: memref<64x128xbf16, #tpu.memory_space<vmem>>, %arg2: memref<64x64xbf16, #tpu.memory_space<vmem>>, %arg3: memref<64x1xf32, #tpu.memory_space<vmem>>, %arg4: memref<128x128xbf16, #tpu.memory_space<vmem>>, %arg5: memref<1x128xf32, #tpu.memory_space<vmem>>, %arg6: memref<1x128xf32, #tpu.memory_space<vmem>>, %arg7: memref<1x128xf32, #tpu.memory_space<vmem>>, %arg8: memref<7x256x128xbf16, #tpu.memory_space<vmem>>, %arg9: memref<7x1x128xf32, #tpu.memory_space<vmem>>, %arg10: memref<7x1x128xf32, #tpu.memory_space<vmem>>, %arg11: memref<7x1x128xf32, #tpu.memory_space<vmem>>, %arg12: memref<384x128xbf16, #tpu.memory_space<vmem>>, %arg13: memref<1x128xf32, #tpu.memory_space<vmem>>, %arg14: memref<128x128xbf16, #tpu.memory_space<vmem>>, %arg15: memref<1x128xf32, #tpu.memory_space<vmem>>, %arg16: memref<128x128xbf16, #tpu.memory_space<vmem>>, %arg17: memref<1x128xf32, #tpu.memory_space<vmem>>, %arg18: memref<8x128xf32, #tpu.memory_space<vmem>>) attributes {dimension_semantics = [#tpu.dimension_semantics<arbitrary>], iteration_bounds = array<i64: 1>, scalar_prefetch = 0 : i64, scratch_operands = 0 : i64, tpu.core_type = #tpu.core_type<tc>, window_params = [{pipeline_mode = #tpu.pipeline_mode<synchronous>, transform_indices = @transform_0, window_bounds = array<i64: 64, 128>}, {pipeline_mode = #tpu.pipeline_mode<synchronous>, transform_indices = @transform_1, window_bounds = array<i64: 64, 64>}, {pipeline_mode = #tpu.pipeline_mode<synchronous>, transform_indices = @transform_2, window_bounds = array<i64: 64, 1>}, {pipeline_mode = #tpu.pipeline_mode<synchronous>, transform_indices = @transform_3, window_bounds = array<i64: 128, 128>}, {pipeline_mode = #tpu.pipeline_mode<synchronous>, transform_indices = @transform_4, window_bounds = array<i64: 1, 128>}, {pipeline_mode = #tpu.pipeline_mode<synchronous>, transform_indices = @transform_5, window_bounds = array<i64: 1, 128>}, {pipeline_mode = #tpu.pipeline_mode<synchronous>, transform_indices = @transform_6, window_bounds = array<i64: 1, 128>}, {pipeline_mode = #tpu.pipeline_mode<synchronous>, transform_indices = @transform_7, window_bounds = array<i64: 7, 256, 128>}, {pipeline_mode = #tpu.pipeline_mode<synchronous>, transform_indices = @transform_8, window_bounds = array<i64: 7, 1, 128>}, {pipeline_mode = #tpu.pipeline_mode<synchronous>, transform_indices = @transform_9, window_bounds = array<i64: 7, 1, 128>}, {pipeline_mode = #tpu.pipeline_mode<synchronous>, transform_indices = @transform_10, window_bounds = array<i64: 7, 1, 128>}, {pipeline_mode = #tpu.pipeline_mode<synchronous>, transform_indices = @transform_11, window_bounds = array<i64: 384, 128>}, {pipeline_mode = #tpu.pipeline_mode<synchronous>, transform_indices = @transform_12, window_bounds = array<i64: 1, 128>}, {pipeline_mode = #tpu.pipeline_mode<synchronous>, transform_indices = @transform_13, window_bounds = array<i64: 128, 128>}, {pipeline_mode = #tpu.pipeline_mode<synchronous>, transform_indices = @transform_14, window_bounds = array<i64: 1, 128>}, {pipeline_mode = #tpu.pipeline_mode<synchronous>, transform_indices = @transform_15, window_bounds = array<i64: 128, 128>}, {pipeline_mode = #tpu.pipeline_mode<synchronous>, transform_indices = @transform_16, window_bounds = array<i64: 1, 128>}, {pipeline_mode = #tpu.pipeline_mode<synchronous>, transform_indices = @transform_17, window_bounds = array<i64: 8, 128>}]} {
    %c0 = arith.constant 0 : index
    %c0_0 = arith.constant 0 : index
    %0 = vector.load %arg1[%c0, %c0_0] : memref<64x128xbf16, #tpu.memory_space<vmem>>, vector<64x128xbf16>
    %c0_1 = arith.constant 0 : index
    %c0_2 = arith.constant 0 : index
    %1 = vector.load %arg2[%c0_1, %c0_2] : memref<64x64xbf16, #tpu.memory_space<vmem>>, vector<64x64xbf16>
    %c0_3 = arith.constant 0 : index
    %c0_4 = arith.constant 0 : index
    %2 = vector.load %arg3[%c0_3, %c0_4] : memref<64x1xf32, #tpu.memory_space<vmem>>, vector<64x1xf32>
    %cst = arith.constant 0.000000e+00 : f32
    %3 = vector.broadcast %cst : f32 to vector<64x1xf32>
    %4 = arith.cmpf ogt, %2, %3 : vector<64x1xf32>
    %cst_5 = arith.constant 0.000000e+00 : f32
    %cst_6 = arith.constant -1.000000e+30 : f32
    %5 = vector.broadcast %cst_5 : f32 to vector<64x1xf32>
    %6 = vector.broadcast %cst_6 : f32 to vector<64x1xf32>
    %7 = arith.select %4, %5, %6 : vector<64x1xi1>, vector<64x1xf32>
    %c0_7 = arith.constant 0 : index
    %c0_8 = arith.constant 0 : index
    %8 = vector.load %arg4[%c0_7, %c0_8] : memref<128x128xbf16, #tpu.memory_space<vmem>>, vector<128x128xbf16>
    %cst_9 = arith.constant dense<0.000000e+00> : vector<64x128xf32>
    %9 = tpu.matmul %0, %8, %cst_9 {dimension_numbers = #tpu.dot_dimension_numbers<[1], [0], [0], [1], [0, 0, 1, 1], [], []>} : vector<64x128xbf16>, vector<128x128xbf16>, vector<64x128xf32> -> vector<64x128xf32>
    %c0_10 = arith.constant 0 : index
    %c0_11 = arith.constant 0 : index
    %10 = vector.load %arg5[%c0_10, %c0_11] : memref<1x128xf32, #tpu.memory_space<vmem>>, vector<1x128xf32>
    %11 = vector.broadcast %10 : vector<1x128xf32> to vector<64x128xf32>
    %12 = arith.addf %9, %11 : vector<64x128xf32>
    %cst_12 = arith.constant 0.000000e+00 : f32
    %13 = vector.broadcast %cst_12 : f32 to vector<64x128xf32>
    %14 = arith.minimumf %12, %13 : vector<64x128xf32>
    %cst_13 = arith.constant 0.000000e+00 : f32
    %15 = vector.broadcast %cst_13 : f32 to vector<64x128xf32>
    %16 = arith.cmpf ogt, %12, %15 : vector<64x128xf32>
    %17 = math.exp %14 : vector<64x128xf32>
    %cst_14 = arith.constant 1.000000e+00 : f32
    %18 = vector.broadcast %cst_14 : f32 to vector<64x128xf32>
    %19 = arith.subf %17, %18 : vector<64x128xf32>
    %20 = arith.select %16, %12, %19 : vector<64x128xi1>, vector<64x128xf32>
    %c0_15 = arith.constant 0 : index
    %c0_16 = arith.constant 0 : index
    %21 = vector.load %arg6[%c0_15, %c0_16] : memref<1x128xf32, #tpu.memory_space<vmem>>, vector<1x128xf32>
    %22 = vector.broadcast %21 : vector<1x128xf32> to vector<64x128xf32>
    %23 = arith.mulf %20, %22 : vector<64x128xf32>
    %c0_17 = arith.constant 0 : index
    %c0_18 = arith.constant 0 : index
    %24 = vector.load %arg7[%c0_17, %c0_18] : memref<1x128xf32, #tpu.memory_space<vmem>>, vector<1x128xf32>
    %25 = vector.broadcast %24 : vector<1x128xf32> to vector<64x128xf32>
    %26 = arith.addf %23, %25 : vector<64x128xf32>
    %27 = arith.truncf %26 : vector<64x128xf32> to vector<64x128xbf16>
    %c0_19 = arith.constant 0 : index
    %c0_20 = arith.constant 0 : index
    %c0_21 = arith.constant 0 : index
    %28 = vector.load %arg8[%c0_19, %c0_20, %c0_21] : memref<7x256x128xbf16, #tpu.memory_space<vmem>>, vector<1x256x128xbf16>
    %29 = vector.shape_cast %28 : vector<1x256x128xbf16> to vector<256x128xbf16>
    %c0_22 = arith.constant 0 : index
    %c0_23 = arith.constant 0 : index
    %c0_24 = arith.constant 0 : index
    %30 = vector.load %arg9[%c0_22, %c0_23, %c0_24] : memref<7x1x128xf32, #tpu.memory_space<vmem>>, vector<1x1x128xf32>
    %31 = vector.shape_cast %30 : vector<1x1x128xf32> to vector<1x128xf32>
    %c0_25 = arith.constant 0 : index
    %c0_26 = arith.constant 0 : index
    %c0_27 = arith.constant 0 : index
    %32 = vector.load %arg10[%c0_25, %c0_26, %c0_27] : memref<7x1x128xf32, #tpu.memory_space<vmem>>, vector<1x1x128xf32>
    %33 = vector.shape_cast %32 : vector<1x1x128xf32> to vector<1x128xf32>
    %c0_28 = arith.constant 0 : index
    %c0_29 = arith.constant 0 : index
    %c0_30 = arith.constant 0 : index
    %34 = vector.load %arg11[%c0_28, %c0_29, %c0_30] : memref<7x1x128xf32, #tpu.memory_space<vmem>>, vector<1x1x128xf32>
    %35 = vector.shape_cast %34 : vector<1x1x128xf32> to vector<1x128xf32>
    %cst_31 = arith.constant dense<0.000000e+00> : vector<64x128xf32>
    %36 = tpu.matmul %1, %27, %cst_31 {dimension_numbers = #tpu.dot_dimension_numbers<[1], [0], [0], [1], [0, 0, 1, 1], [], []>} : vector<64x64xbf16>, vector<64x128xbf16>, vector<64x128xf32> -> vector<64x128xf32>
    %37 = arith.truncf %36 : vector<64x128xf32> to vector<64x128xbf16>
    %38 = tpu.concatenate %37, %27 in 1 : vector<64x128xbf16>, vector<64x128xbf16> -> vector<64x256xbf16>
    %cst_32 = arith.constant dense<0.000000e+00> : vector<64x128xf32>
    %39 = tpu.matmul %38, %29, %cst_32 {dimension_numbers = #tpu.dot_dimension_numbers<[1], [0], [0], [1], [0, 0, 1, 1], [], []>} : vector<64x256xbf16>, vector<256x128xbf16>, vector<64x128xf32> -> vector<64x128xf32>
    %40 = vector.broadcast %31 : vector<1x128xf32> to vector<64x128xf32>
    %41 = arith.addf %39, %40 : vector<64x128xf32>
    %cst_33 = arith.constant 0.000000e+00 : f32
    %42 = vector.broadcast %cst_33 : f32 to vector<64x128xf32>
    %43 = arith.minimumf %41, %42 : vector<64x128xf32>
    %cst_34 = arith.constant 0.000000e+00 : f32
    %44 = vector.broadcast %cst_34 : f32 to vector<64x128xf32>
    %45 = arith.cmpf ogt, %41, %44 : vector<64x128xf32>
    %46 = math.exp %43 : vector<64x128xf32>
    %cst_35 = arith.constant 1.000000e+00 : f32
    %47 = vector.broadcast %cst_35 : f32 to vector<64x128xf32>
    %48 = arith.subf %46, %47 : vector<64x128xf32>
    %49 = arith.select %45, %41, %48 : vector<64x128xi1>, vector<64x128xf32>
    %50 = vector.broadcast %33 : vector<1x128xf32> to vector<64x128xf32>
    %51 = arith.mulf %49, %50 : vector<64x128xf32>
    %52 = vector.broadcast %35 : vector<1x128xf32> to vector<64x128xf32>
    %53 = arith.addf %51, %52 : vector<64x128xf32>
    %54 = arith.truncf %53 : vector<64x128xf32> to vector<64x128xbf16>
    %c1 = arith.constant 1 : index
    %c0_36 = arith.constant 0 : index
    %c0_37 = arith.constant 0 : index
    %55 = vector.load %arg8[%c1, %c0_36, %c0_37] : memref<7x256x128xbf16, #tpu.memory_space<vmem>>, vector<1x256x128xbf16>
    %56 = vector.shape_cast %55 : vector<1x256x128xbf16> to vector<256x128xbf16>
    %c1_38 = arith.constant 1 : index
    %c0_39 = arith.constant 0 : index
    %c0_40 = arith.constant 0 : index
    %57 = vector.load %arg9[%c1_38, %c0_39, %c0_40] : memref<7x1x128xf32, #tpu.memory_space<vmem>>, vector<1x1x128xf32>
    %58 = vector.shape_cast %57 : vector<1x1x128xf32> to vector<1x128xf32>
    %c1_41 = arith.constant 1 : index
    %c0_42 = arith.constant 0 : index
    %c0_43 = arith.constant 0 : index
    %59 = vector.load %arg10[%c1_41, %c0_42, %c0_43] : memref<7x1x128xf32, #tpu.memory_space<vmem>>, vector<1x1x128xf32>
    %60 = vector.shape_cast %59 : vector<1x1x128xf32> to vector<1x128xf32>
    %c1_44 = arith.constant 1 : index
    %c0_45 = arith.constant 0 : index
    %c0_46 = arith.constant 0 : index
    %61 = vector.load %arg11[%c1_44, %c0_45, %c0_46] : memref<7x1x128xf32, #tpu.memory_space<vmem>>, vector<1x1x128xf32>
    %62 = vector.shape_cast %61 : vector<1x1x128xf32> to vector<1x128xf32>
    %cst_47 = arith.constant dense<0.000000e+00> : vector<64x128xf32>
    %63 = tpu.matmul %1, %54, %cst_47 {dimension_numbers = #tpu.dot_dimension_numbers<[1], [0], [0], [1], [0, 0, 1, 1], [], []>} : vector<64x64xbf16>, vector<64x128xbf16>, vector<64x128xf32> -> vector<64x128xf32>
    %64 = arith.truncf %63 : vector<64x128xf32> to vector<64x128xbf16>
    %65 = tpu.concatenate %64, %54 in 1 : vector<64x128xbf16>, vector<64x128xbf16> -> vector<64x256xbf16>
    %cst_48 = arith.constant dense<0.000000e+00> : vector<64x128xf32>
    %66 = tpu.matmul %65, %56, %cst_48 {dimension_numbers = #tpu.dot_dimension_numbers<[1], [0], [0], [1], [0, 0, 1, 1], [], []>} : vector<64x256xbf16>, vector<256x128xbf16>, vector<64x128xf32> -> vector<64x128xf32>
    %67 = vector.broadcast %58 : vector<1x128xf32> to vector<64x128xf32>
    %68 = arith.addf %66, %67 : vector<64x128xf32>
    %cst_49 = arith.constant 0.000000e+00 : f32
    %69 = vector.broadcast %cst_49 : f32 to vector<64x128xf32>
    %70 = arith.minimumf %68, %69 : vector<64x128xf32>
    %cst_50 = arith.constant 0.000000e+00 : f32
    %71 = vector.broadcast %cst_50 : f32 to vector<64x128xf32>
    %72 = arith.cmpf ogt, %68, %71 : vector<64x128xf32>
    %73 = math.exp %70 : vector<64x128xf32>
    %cst_51 = arith.constant 1.000000e+00 : f32
    %74 = vector.broadcast %cst_51 : f32 to vector<64x128xf32>
    %75 = arith.subf %73, %74 : vector<64x128xf32>
    %76 = arith.select %72, %68, %75 : vector<64x128xi1>, vector<64x128xf32>
    %77 = vector.broadcast %60 : vector<1x128xf32> to vector<64x128xf32>
    %78 = arith.mulf %76, %77 : vector<64x128xf32>
    %79 = vector.broadcast %62 : vector<1x128xf32> to vector<64x128xf32>
    %80 = arith.addf %78, %79 : vector<64x128xf32>
    %81 = arith.truncf %80 : vector<64x128xf32> to vector<64x128xbf16>
    %c2 = arith.constant 2 : index
    %c0_52 = arith.constant 0 : index
    %c0_53 = arith.constant 0 : index
    %82 = vector.load %arg8[%c2, %c0_52, %c0_53] : memref<7x256x128xbf16, #tpu.memory_space<vmem>>, vector<1x256x128xbf16>
    %83 = vector.shape_cast %82 : vector<1x256x128xbf16> to vector<256x128xbf16>
    %c2_54 = arith.constant 2 : index
    %c0_55 = arith.constant 0 : index
    %c0_56 = arith.constant 0 : index
    %84 = vector.load %arg9[%c2_54, %c0_55, %c0_56] : memref<7x1x128xf32, #tpu.memory_space<vmem>>, vector<1x1x128xf32>
    %85 = vector.shape_cast %84 : vector<1x1x128xf32> to vector<1x128xf32>
    %c2_57 = arith.constant 2 : index
    %c0_58 = arith.constant 0 : index
    %c0_59 = arith.constant 0 : index
    %86 = vector.load %arg10[%c2_57, %c0_58, %c0_59] : memref<7x1x128xf32, #tpu.memory_space<vmem>>, vector<1x1x128xf32>
    %87 = vector.shape_cast %86 : vector<1x1x128xf32> to vector<1x128xf32>
    %c2_60 = arith.constant 2 : index
    %c0_61 = arith.constant 0 : index
    %c0_62 = arith.constant 0 : index
    %88 = vector.load %arg11[%c2_60, %c0_61, %c0_62] : memref<7x1x128xf32, #tpu.memory_space<vmem>>, vector<1x1x128xf32>
    %89 = vector.shape_cast %88 : vector<1x1x128xf32> to vector<1x128xf32>
    %cst_63 = arith.constant dense<0.000000e+00> : vector<64x128xf32>
    %90 = tpu.matmul %1, %81, %cst_63 {dimension_numbers = #tpu.dot_dimension_numbers<[1], [0], [0], [1], [0, 0, 1, 1], [], []>} : vector<64x64xbf16>, vector<64x128xbf16>, vector<64x128xf32> -> vector<64x128xf32>
    %91 = arith.truncf %90 : vector<64x128xf32> to vector<64x128xbf16>
    %92 = tpu.concatenate %91, %81 in 1 : vector<64x128xbf16>, vector<64x128xbf16> -> vector<64x256xbf16>
    %cst_64 = arith.constant dense<0.000000e+00> : vector<64x128xf32>
    %93 = tpu.matmul %92, %83, %cst_64 {dimension_numbers = #tpu.dot_dimension_numbers<[1], [0], [0], [1], [0, 0, 1, 1], [], []>} : vector<64x256xbf16>, vector<256x128xbf16>, vector<64x128xf32> -> vector<64x128xf32>
    %94 = vector.broadcast %85 : vector<1x128xf32> to vector<64x128xf32>
    %95 = arith.addf %93, %94 : vector<64x128xf32>
    %cst_65 = arith.constant 0.000000e+00 : f32
    %96 = vector.broadcast %cst_65 : f32 to vector<64x128xf32>
    %97 = arith.minimumf %95, %96 : vector<64x128xf32>
    %cst_66 = arith.constant 0.000000e+00 : f32
    %98 = vector.broadcast %cst_66 : f32 to vector<64x128xf32>
    %99 = arith.cmpf ogt, %95, %98 : vector<64x128xf32>
    %100 = math.exp %97 : vector<64x128xf32>
    %cst_67 = arith.constant 1.000000e+00 : f32
    %101 = vector.broadcast %cst_67 : f32 to vector<64x128xf32>
    %102 = arith.subf %100, %101 : vector<64x128xf32>
    %103 = arith.select %99, %95, %102 : vector<64x128xi1>, vector<64x128xf32>
    %104 = vector.broadcast %87 : vector<1x128xf32> to vector<64x128xf32>
    %105 = arith.mulf %103, %104 : vector<64x128xf32>
    %106 = vector.broadcast %89 : vector<1x128xf32> to vector<64x128xf32>
    %107 = arith.addf %105, %106 : vector<64x128xf32>
    %108 = arith.truncf %107 : vector<64x128xf32> to vector<64x128xbf16>
    %109 = vector.broadcast %7 : vector<64x1xf32> to vector<64x128xf32>
    %110 = arith.addf %107, %109 : vector<64x128xf32>
    %111 = vector.shape_cast %110 : vector<64x128xf32> to vector<8x8x128xf32>
    %cst_68 = arith.constant dense<0xFF800000> : vector<8x128xf32>
    %112 = vector.multi_reduction <maximumf>, %111, %cst_68 [1] : vector<8x8x128xf32> to vector<8x128xf32>
    %c3 = arith.constant 3 : index
    %c0_69 = arith.constant 0 : index
    %c0_70 = arith.constant 0 : index
    %113 = vector.load %arg8[%c3, %c0_69, %c0_70] : memref<7x256x128xbf16, #tpu.memory_space<vmem>>, vector<1x256x128xbf16>
    %114 = vector.shape_cast %113 : vector<1x256x128xbf16> to vector<256x128xbf16>
    %c3_71 = arith.constant 3 : index
    %c0_72 = arith.constant 0 : index
    %c0_73 = arith.constant 0 : index
    %115 = vector.load %arg9[%c3_71, %c0_72, %c0_73] : memref<7x1x128xf32, #tpu.memory_space<vmem>>, vector<1x1x128xf32>
    %116 = vector.shape_cast %115 : vector<1x1x128xf32> to vector<1x128xf32>
    %c3_74 = arith.constant 3 : index
    %c0_75 = arith.constant 0 : index
    %c0_76 = arith.constant 0 : index
    %117 = vector.load %arg10[%c3_74, %c0_75, %c0_76] : memref<7x1x128xf32, #tpu.memory_space<vmem>>, vector<1x1x128xf32>
    %118 = vector.shape_cast %117 : vector<1x1x128xf32> to vector<1x128xf32>
    %c3_77 = arith.constant 3 : index
    %c0_78 = arith.constant 0 : index
    %c0_79 = arith.constant 0 : index
    %119 = vector.load %arg11[%c3_77, %c0_78, %c0_79] : memref<7x1x128xf32, #tpu.memory_space<vmem>>, vector<1x1x128xf32>
    %120 = vector.shape_cast %119 : vector<1x1x128xf32> to vector<1x128xf32>
    %cst_80 = arith.constant dense<0.000000e+00> : vector<64x128xf32>
    %121 = tpu.matmul %1, %108, %cst_80 {dimension_numbers = #tpu.dot_dimension_numbers<[1], [0], [0], [1], [0, 0, 1, 1], [], []>} : vector<64x64xbf16>, vector<64x128xbf16>, vector<64x128xf32> -> vector<64x128xf32>
    %122 = arith.truncf %121 : vector<64x128xf32> to vector<64x128xbf16>
    %123 = tpu.concatenate %122, %108 in 1 : vector<64x128xbf16>, vector<64x128xbf16> -> vector<64x256xbf16>
    %cst_81 = arith.constant dense<0.000000e+00> : vector<64x128xf32>
    %124 = tpu.matmul %123, %114, %cst_81 {dimension_numbers = #tpu.dot_dimension_numbers<[1], [0], [0], [1], [0, 0, 1, 1], [], []>} : vector<64x256xbf16>, vector<256x128xbf16>, vector<64x128xf32> -> vector<64x128xf32>
    %125 = vector.broadcast %116 : vector<1x128xf32> to vector<64x128xf32>
    %126 = arith.addf %124, %125 : vector<64x128xf32>
    %cst_82 = arith.constant 0.000000e+00 : f32
    %127 = vector.broadcast %cst_82 : f32 to vector<64x128xf32>
    %128 = arith.minimumf %126, %127 : vector<64x128xf32>
    %cst_83 = arith.constant 0.000000e+00 : f32
    %129 = vector.broadcast %cst_83 : f32 to vector<64x128xf32>
    %130 = arith.cmpf ogt, %126, %129 : vector<64x128xf32>
    %131 = math.exp %128 : vector<64x128xf32>
    %cst_84 = arith.constant 1.000000e+00 : f32
    %132 = vector.broadcast %cst_84 : f32 to vector<64x128xf32>
    %133 = arith.subf %131, %132 : vector<64x128xf32>
    %134 = arith.select %130, %126, %133 : vector<64x128xi1>, vector<64x128xf32>
    %135 = vector.broadcast %118 : vector<1x128xf32> to vector<64x128xf32>
    %136 = arith.mulf %134, %135 : vector<64x128xf32>
    %137 = vector.broadcast %120 : vector<1x128xf32> to vector<64x128xf32>
    %138 = arith.addf %136, %137 : vector<64x128xf32>
    %139 = arith.truncf %138 : vector<64x128xf32> to vector<64x128xbf16>
    %c4 = arith.constant 4 : index
    %c0_85 = arith.constant 0 : index
    %c0_86 = arith.constant 0 : index
    %140 = vector.load %arg8[%c4, %c0_85, %c0_86] : memref<7x256x128xbf16, #tpu.memory_space<vmem>>, vector<1x256x128xbf16>
    %141 = vector.shape_cast %140 : vector<1x256x128xbf16> to vector<256x128xbf16>
    %c4_87 = arith.constant 4 : index
    %c0_88 = arith.constant 0 : index
    %c0_89 = arith.constant 0 : index
    %142 = vector.load %arg9[%c4_87, %c0_88, %c0_89] : memref<7x1x128xf32, #tpu.memory_space<vmem>>, vector<1x1x128xf32>
    %143 = vector.shape_cast %142 : vector<1x1x128xf32> to vector<1x128xf32>
    %c4_90 = arith.constant 4 : index
    %c0_91 = arith.constant 0 : index
    %c0_92 = arith.constant 0 : index
    %144 = vector.load %arg10[%c4_90, %c0_91, %c0_92] : memref<7x1x128xf32, #tpu.memory_space<vmem>>, vector<1x1x128xf32>
    %145 = vector.shape_cast %144 : vector<1x1x128xf32> to vector<1x128xf32>
    %c4_93 = arith.constant 4 : index
    %c0_94 = arith.constant 0 : index
    %c0_95 = arith.constant 0 : index
    %146 = vector.load %arg11[%c4_93, %c0_94, %c0_95] : memref<7x1x128xf32, #tpu.memory_space<vmem>>, vector<1x1x128xf32>
    %147 = vector.shape_cast %146 : vector<1x1x128xf32> to vector<1x128xf32>
    %cst_96 = arith.constant dense<0.000000e+00> : vector<64x128xf32>
    %148 = tpu.matmul %1, %139, %cst_96 {dimension_numbers = #tpu.dot_dimension_numbers<[1], [0], [0], [1], [0, 0, 1, 1], [], []>} : vector<64x64xbf16>, vector<64x128xbf16>, vector<64x128xf32> -> vector<64x128xf32>
    %149 = arith.truncf %148 : vector<64x128xf32> to vector<64x128xbf16>
    %150 = tpu.concatenate %149, %139 in 1 : vector<64x128xbf16>, vector<64x128xbf16> -> vector<64x256xbf16>
    %cst_97 = arith.constant dense<0.000000e+00> : vector<64x128xf32>
    %151 = tpu.matmul %150, %141, %cst_97 {dimension_numbers = #tpu.dot_dimension_numbers<[1], [0], [0], [1], [0, 0, 1, 1], [], []>} : vector<64x256xbf16>, vector<256x128xbf16>, vector<64x128xf32> -> vector<64x128xf32>
    %152 = vector.broadcast %143 : vector<1x128xf32> to vector<64x128xf32>
    %153 = arith.addf %151, %152 : vector<64x128xf32>
    %cst_98 = arith.constant 0.000000e+00 : f32
    %154 = vector.broadcast %cst_98 : f32 to vector<64x128xf32>
    %155 = arith.minimumf %153, %154 : vector<64x128xf32>
    %cst_99 = arith.constant 0.000000e+00 : f32
    %156 = vector.broadcast %cst_99 : f32 to vector<64x128xf32>
    %157 = arith.cmpf ogt, %153, %156 : vector<64x128xf32>
    %158 = math.exp %155 : vector<64x128xf32>
    %cst_100 = arith.constant 1.000000e+00 : f32
    %159 = vector.broadcast %cst_100 : f32 to vector<64x128xf32>
    %160 = arith.subf %158, %159 : vector<64x128xf32>
    %161 = arith.select %157, %153, %160 : vector<64x128xi1>, vector<64x128xf32>
    %162 = vector.broadcast %145 : vector<1x128xf32> to vector<64x128xf32>
    %163 = arith.mulf %161, %162 : vector<64x128xf32>
    %164 = vector.broadcast %147 : vector<1x128xf32> to vector<64x128xf32>
    %165 = arith.addf %163, %164 : vector<64x128xf32>
    %166 = arith.truncf %165 : vector<64x128xf32> to vector<64x128xbf16>
    %167 = vector.broadcast %7 : vector<64x1xf32> to vector<64x128xf32>
    %168 = arith.addf %165, %167 : vector<64x128xf32>
    %169 = vector.shape_cast %168 : vector<64x128xf32> to vector<8x8x128xf32>
    %cst_101 = arith.constant dense<0xFF800000> : vector<8x128xf32>
    %170 = vector.multi_reduction <maximumf>, %169, %cst_101 [1] : vector<8x8x128xf32> to vector<8x128xf32>
    %c5 = arith.constant 5 : index
    %c0_102 = arith.constant 0 : index
    %c0_103 = arith.constant 0 : index
    %171 = vector.load %arg8[%c5, %c0_102, %c0_103] : memref<7x256x128xbf16, #tpu.memory_space<vmem>>, vector<1x256x128xbf16>
    %172 = vector.shape_cast %171 : vector<1x256x128xbf16> to vector<256x128xbf16>
    %c5_104 = arith.constant 5 : index
    %c0_105 = arith.constant 0 : index
    %c0_106 = arith.constant 0 : index
    %173 = vector.load %arg9[%c5_104, %c0_105, %c0_106] : memref<7x1x128xf32, #tpu.memory_space<vmem>>, vector<1x1x128xf32>
    %174 = vector.shape_cast %173 : vector<1x1x128xf32> to vector<1x128xf32>
    %c5_107 = arith.constant 5 : index
    %c0_108 = arith.constant 0 : index
    %c0_109 = arith.constant 0 : index
    %175 = vector.load %arg10[%c5_107, %c0_108, %c0_109] : memref<7x1x128xf32, #tpu.memory_space<vmem>>, vector<1x1x128xf32>
    %176 = vector.shape_cast %175 : vector<1x1x128xf32> to vector<1x128xf32>
    %c5_110 = arith.constant 5 : index
    %c0_111 = arith.constant 0 : index
    %c0_112 = arith.constant 0 : index
    %177 = vector.load %arg11[%c5_110, %c0_111, %c0_112] : memref<7x1x128xf32, #tpu.memory_space<vmem>>, vector<1x1x128xf32>
    %178 = vector.shape_cast %177 : vector<1x1x128xf32> to vector<1x128xf32>
    %cst_113 = arith.constant dense<0.000000e+00> : vector<64x128xf32>
    %179 = tpu.matmul %1, %166, %cst_113 {dimension_numbers = #tpu.dot_dimension_numbers<[1], [0], [0], [1], [0, 0, 1, 1], [], []>} : vector<64x64xbf16>, vector<64x128xbf16>, vector<64x128xf32> -> vector<64x128xf32>
    %180 = arith.truncf %179 : vector<64x128xf32> to vector<64x128xbf16>
    %181 = tpu.concatenate %180, %166 in 1 : vector<64x128xbf16>, vector<64x128xbf16> -> vector<64x256xbf16>
    %cst_114 = arith.constant dense<0.000000e+00> : vector<64x128xf32>
    %182 = tpu.matmul %181, %172, %cst_114 {dimension_numbers = #tpu.dot_dimension_numbers<[1], [0], [0], [1], [0, 0, 1, 1], [], []>} : vector<64x256xbf16>, vector<256x128xbf16>, vector<64x128xf32> -> vector<64x128xf32>
    %183 = vector.broadcast %174 : vector<1x128xf32> to vector<64x128xf32>
    %184 = arith.addf %182, %183 : vector<64x128xf32>
    %cst_115 = arith.constant 0.000000e+00 : f32
    %185 = vector.broadcast %cst_115 : f32 to vector<64x128xf32>
    %186 = arith.minimumf %184, %185 : vector<64x128xf32>
    %cst_116 = arith.constant 0.000000e+00 : f32
    %187 = vector.broadcast %cst_116 : f32 to vector<64x128xf32>
    %188 = arith.cmpf ogt, %184, %187 : vector<64x128xf32>
    %189 = math.exp %186 : vector<64x128xf32>
    %cst_117 = arith.constant 1.000000e+00 : f32
    %190 = vector.broadcast %cst_117 : f32 to vector<64x128xf32>
    %191 = arith.subf %189, %190 : vector<64x128xf32>
    %192 = arith.select %188, %184, %191 : vector<64x128xi1>, vector<64x128xf32>
    %193 = vector.broadcast %176 : vector<1x128xf32> to vector<64x128xf32>
    %194 = arith.mulf %192, %193 : vector<64x128xf32>
    %195 = vector.broadcast %178 : vector<1x128xf32> to vector<64x128xf32>
    %196 = arith.addf %194, %195 : vector<64x128xf32>
    %197 = arith.truncf %196 : vector<64x128xf32> to vector<64x128xbf16>
    %c6 = arith.constant 6 : index
    %c0_118 = arith.constant 0 : index
    %c0_119 = arith.constant 0 : index
    %198 = vector.load %arg8[%c6, %c0_118, %c0_119] : memref<7x256x128xbf16, #tpu.memory_space<vmem>>, vector<1x256x128xbf16>
    %199 = vector.shape_cast %198 : vector<1x256x128xbf16> to vector<256x128xbf16>
    %c6_120 = arith.constant 6 : index
    %c0_121 = arith.constant 0 : index
    %c0_122 = arith.constant 0 : index
    %200 = vector.load %arg9[%c6_120, %c0_121, %c0_122] : memref<7x1x128xf32, #tpu.memory_space<vmem>>, vector<1x1x128xf32>
    %201 = vector.shape_cast %200 : vector<1x1x128xf32> to vector<1x128xf32>
    %c6_123 = arith.constant 6 : index
    %c0_124 = arith.constant 0 : index
    %c0_125 = arith.constant 0 : index
    %202 = vector.load %arg10[%c6_123, %c0_124, %c0_125] : memref<7x1x128xf32, #tpu.memory_space<vmem>>, vector<1x1x128xf32>
    %203 = vector.shape_cast %202 : vector<1x1x128xf32> to vector<1x128xf32>
    %c6_126 = arith.constant 6 : index
    %c0_127 = arith.constant 0 : index
    %c0_128 = arith.constant 0 : index
    %204 = vector.load %arg11[%c6_126, %c0_127, %c0_128] : memref<7x1x128xf32, #tpu.memory_space<vmem>>, vector<1x1x128xf32>
    %205 = vector.shape_cast %204 : vector<1x1x128xf32> to vector<1x128xf32>
    %cst_129 = arith.constant dense<0.000000e+00> : vector<64x128xf32>
    %206 = tpu.matmul %1, %197, %cst_129 {dimension_numbers = #tpu.dot_dimension_numbers<[1], [0], [0], [1], [0, 0, 1, 1], [], []>} : vector<64x64xbf16>, vector<64x128xbf16>, vector<64x128xf32> -> vector<64x128xf32>
    %207 = arith.truncf %206 : vector<64x128xf32> to vector<64x128xbf16>
    %208 = tpu.concatenate %207, %197 in 1 : vector<64x128xbf16>, vector<64x128xbf16> -> vector<64x256xbf16>
    %cst_130 = arith.constant dense<0.000000e+00> : vector<64x128xf32>
    %209 = tpu.matmul %208, %199, %cst_130 {dimension_numbers = #tpu.dot_dimension_numbers<[1], [0], [0], [1], [0, 0, 1, 1], [], []>} : vector<64x256xbf16>, vector<256x128xbf16>, vector<64x128xf32> -> vector<64x128xf32>
    %210 = vector.broadcast %201 : vector<1x128xf32> to vector<64x128xf32>
    %211 = arith.addf %209, %210 : vector<64x128xf32>
    %cst_131 = arith.constant 0.000000e+00 : f32
    %212 = vector.broadcast %cst_131 : f32 to vector<64x128xf32>
    %213 = arith.minimumf %211, %212 : vector<64x128xf32>
    %cst_132 = arith.constant 0.000000e+00 : f32
    %214 = vector.broadcast %cst_132 : f32 to vector<64x128xf32>
    %215 = arith.cmpf ogt, %211, %214 : vector<64x128xf32>
    %216 = math.exp %213 : vector<64x128xf32>
    %cst_133 = arith.constant 1.000000e+00 : f32
    %217 = vector.broadcast %cst_133 : f32 to vector<64x128xf32>
    %218 = arith.subf %216, %217 : vector<64x128xf32>
    %219 = arith.select %215, %211, %218 : vector<64x128xi1>, vector<64x128xf32>
    %220 = vector.broadcast %203 : vector<1x128xf32> to vector<64x128xf32>
    %221 = arith.mulf %219, %220 : vector<64x128xf32>
    %222 = vector.broadcast %205 : vector<1x128xf32> to vector<64x128xf32>
    %223 = arith.addf %221, %222 : vector<64x128xf32>
    %224 = vector.broadcast %7 : vector<64x1xf32> to vector<64x128xf32>
    %225 = arith.addf %223, %224 : vector<64x128xf32>
    %226 = vector.shape_cast %225 : vector<64x128xf32> to vector<8x8x128xf32>
    %cst_134 = arith.constant dense<0xFF800000> : vector<8x128xf32>
    %227 = vector.multi_reduction <maximumf>, %226, %cst_134 [1] : vector<8x8x128xf32> to vector<8x128xf32>
    %228 = tpu.concatenate %112, %170, %227 in 1 : vector<8x128xf32>, vector<8x128xf32>, vector<8x128xf32> -> vector<8x384xf32>
    %229 = arith.truncf %228 : vector<8x384xf32> to vector<8x384xbf16>
    %c0_135 = arith.constant 0 : index
    %c0_136 = arith.constant 0 : index
    %230 = vector.load %arg12[%c0_135, %c0_136] : memref<384x128xbf16, #tpu.memory_space<vmem>>, vector<384x128xbf16>
    %cst_137 = arith.constant dense<0.000000e+00> : vector<8x128xf32>
    %231 = tpu.matmul %229, %230, %cst_137 {dimension_numbers = #tpu.dot_dimension_numbers<[1], [0], [0], [1], [0, 0, 1, 1], [], []>} : vector<8x384xbf16>, vector<384x128xbf16>, vector<8x128xf32> -> vector<8x128xf32>
    %c0_138 = arith.constant 0 : index
    %c0_139 = arith.constant 0 : index
    %232 = vector.load %arg13[%c0_138, %c0_139] : memref<1x128xf32, #tpu.memory_space<vmem>>, vector<1x128xf32>
    %233 = vector.broadcast %232 : vector<1x128xf32> to vector<8x128xf32>
    %234 = arith.addf %231, %233 : vector<8x128xf32>
    %cst_140 = arith.constant 0.000000e+00 : f32
    %235 = vector.broadcast %cst_140 : f32 to vector<8x128xf32>
    %236 = arith.minimumf %234, %235 : vector<8x128xf32>
    %cst_141 = arith.constant 0.000000e+00 : f32
    %237 = vector.broadcast %cst_141 : f32 to vector<8x128xf32>
    %238 = arith.cmpf ogt, %234, %237 : vector<8x128xf32>
    %239 = math.exp %236 : vector<8x128xf32>
    %cst_142 = arith.constant 1.000000e+00 : f32
    %240 = vector.broadcast %cst_142 : f32 to vector<8x128xf32>
    %241 = arith.subf %239, %240 : vector<8x128xf32>
    %242 = arith.select %238, %234, %241 : vector<8x128xi1>, vector<8x128xf32>
    %243 = arith.truncf %242 : vector<8x128xf32> to vector<8x128xbf16>
    %c0_143 = arith.constant 0 : index
    %c0_144 = arith.constant 0 : index
    %244 = vector.load %arg14[%c0_143, %c0_144] : memref<128x128xbf16, #tpu.memory_space<vmem>>, vector<128x128xbf16>
    %cst_145 = arith.constant dense<0.000000e+00> : vector<8x128xf32>
    %245 = tpu.matmul %243, %244, %cst_145 {dimension_numbers = #tpu.dot_dimension_numbers<[1], [0], [0], [1], [0, 0, 1, 1], [], []>} : vector<8x128xbf16>, vector<128x128xbf16>, vector<8x128xf32> -> vector<8x128xf32>
    %c0_146 = arith.constant 0 : index
    %c0_147 = arith.constant 0 : index
    %246 = vector.load %arg15[%c0_146, %c0_147] : memref<1x128xf32, #tpu.memory_space<vmem>>, vector<1x128xf32>
    %247 = vector.broadcast %246 : vector<1x128xf32> to vector<8x128xf32>
    %248 = arith.addf %245, %247 : vector<8x128xf32>
    %cst_148 = arith.constant 0.000000e+00 : f32
    %249 = vector.broadcast %cst_148 : f32 to vector<8x128xf32>
    %250 = arith.minimumf %248, %249 : vector<8x128xf32>
    %cst_149 = arith.constant 0.000000e+00 : f32
    %251 = vector.broadcast %cst_149 : f32 to vector<8x128xf32>
    %252 = arith.cmpf ogt, %248, %251 : vector<8x128xf32>
    %253 = math.exp %250 : vector<8x128xf32>
    %cst_150 = arith.constant 1.000000e+00 : f32
    %254 = vector.broadcast %cst_150 : f32 to vector<8x128xf32>
    %255 = arith.subf %253, %254 : vector<8x128xf32>
    %256 = arith.select %252, %248, %255 : vector<8x128xi1>, vector<8x128xf32>
    %257 = arith.truncf %256 : vector<8x128xf32> to vector<8x128xbf16>
    %c0_151 = arith.constant 0 : index
    %c0_152 = arith.constant 0 : index
    %258 = vector.load %arg16[%c0_151, %c0_152] : memref<128x128xbf16, #tpu.memory_space<vmem>>, vector<128x128xbf16>
    %cst_153 = arith.constant dense<0.000000e+00> : vector<8x128xf32>
    %259 = tpu.matmul %257, %258, %cst_153 {dimension_numbers = #tpu.dot_dimension_numbers<[1], [0], [0], [1], [0, 0, 1, 1], [], []>} : vector<8x128xbf16>, vector<128x128xbf16>, vector<8x128xf32> -> vector<8x128xf32>
    %c0_154 = arith.constant 0 : index
    %c0_155 = arith.constant 0 : index
    %260 = vector.load %arg17[%c0_154, %c0_155] : memref<1x128xf32, #tpu.memory_space<vmem>>, vector<1x128xf32>
    %261 = vector.broadcast %260 : vector<1x128xf32> to vector<8x128xf32>
    %262 = arith.addf %259, %261 : vector<8x128xf32>
    %263 = tpu.iota {dimensions = array<i32: 1>} : vector<8x128xi32>
    %c3_i32 = arith.constant 3 : i32
    %264 = vector.broadcast %c3_i32 : i32 to vector<8x128xi32>
    %265 = arith.cmpi slt, %263, %264 : vector<8x128xi32>
    %cst_156 = arith.constant -1.000000e+30 : f32
    %266 = vector.broadcast %cst_156 : f32 to vector<8x128xf32>
    %267 = arith.select %265, %262, %266 : vector<8x128xi1>, vector<8x128xf32>
    %cst_157 = arith.constant dense<0xFF800000> : vector<8xf32>
    %268 = vector.multi_reduction <maximumf>, %267, %cst_157 [1] : vector<8x128xf32> to vector<8xf32>
    %269 = vector.shape_cast %268 : vector<8xf32> to vector<8x1xf32>
    %270 = vector.broadcast %269 : vector<8x1xf32> to vector<8x128xf32>
    %271 = arith.subf %267, %270 : vector<8x128xf32>
    %272 = math.exp %271 : vector<8x128xf32>
    %cst_158 = arith.constant dense<0.000000e+00> : vector<8xf32>
    %273 = vector.multi_reduction <add>, %272, %cst_158 [1] : vector<8x128xf32> to vector<8xf32>
    %274 = vector.shape_cast %273 : vector<8xf32> to vector<8x1xf32>
    %275 = math.log %274 : vector<8x1xf32>
    %276 = arith.addf %269, %275 : vector<8x1xf32>
    %277 = vector.broadcast %276 : vector<8x1xf32> to vector<8x128xf32>
    %278 = arith.subf %267, %277 : vector<8x128xf32>
    %c0_159 = arith.constant 0 : index
    %c0_160 = arith.constant 0 : index
    %279 = vector.load %arg18[%c0_159, %c0_160] : memref<8x128xf32, #tpu.memory_space<vmem>>, vector<8x128xf32>
    tpu.vector_store %arg18[%c0_159, %c0_160], %278 {strides = array<i32>} : memref<8x128xf32, #tpu.memory_space<vmem>>, vector<8x128xf32>,
    return
  }
  func.func @transform_0(%arg0: i32) -> (i32, i32) {
    %c0_i32 = arith.constant 0 : i32
    %c0_i32_0 = arith.constant 0 : i32
    %c0_i32_1 = arith.constant 0 : i32
    return %c0_i32, %c0_i32_0 : i32, i32
  }
  func.func @transform_1(%arg0: i32) -> (i32, i32) {
    %c0_i32 = arith.constant 0 : i32
    %c0_i32_0 = arith.constant 0 : i32
    %c0_i32_1 = arith.constant 0 : i32
    return %c0_i32, %c0_i32_0 : i32, i32
  }
  func.func @transform_2(%arg0: i32) -> (i32, i32) {
    %c0_i32 = arith.constant 0 : i32
    %c0_i32_0 = arith.constant 0 : i32
    %c0_i32_1 = arith.constant 0 : i32
    return %c0_i32, %c0_i32_0 : i32, i32
  }
  func.func @transform_3(%arg0: i32) -> (i32, i32) {
    %c0_i32 = arith.constant 0 : i32
    %c0_i32_0 = arith.constant 0 : i32
    %c0_i32_1 = arith.constant 0 : i32
    return %c0_i32, %c0_i32_0 : i32, i32
  }
  func.func @transform_4(%arg0: i32) -> (i32, i32) {
    %c0_i32 = arith.constant 0 : i32
    %c0_i32_0 = arith.constant 0 : i32
    %c0_i32_1 = arith.constant 0 : i32
    return %c0_i32, %c0_i32_0 : i32, i32
  }
  func.func @transform_5(%arg0: i32) -> (i32, i32) {
    %c0_i32 = arith.constant 0 : i32
    %c0_i32_0 = arith.constant 0 : i32
    %c0_i32_1 = arith.constant 0 : i32
    return %c0_i32, %c0_i32_0 : i32, i32
  }
  func.func @transform_6(%arg0: i32) -> (i32, i32) {
    %c0_i32 = arith.constant 0 : i32
    %c0_i32_0 = arith.constant 0 : i32
    %c0_i32_1 = arith.constant 0 : i32
    return %c0_i32, %c0_i32_0 : i32, i32
  }
  func.func @transform_7(%arg0: i32) -> (i32, i32, i32) {
    %c0_i32 = arith.constant 0 : i32
    %c0_i32_0 = arith.constant 0 : i32
    %c0_i32_1 = arith.constant 0 : i32
    %c0_i32_2 = arith.constant 0 : i32
    return %c0_i32, %c0_i32_0, %c0_i32_1 : i32, i32, i32
  }
  func.func @transform_8(%arg0: i32) -> (i32, i32, i32) {
    %c0_i32 = arith.constant 0 : i32
    %c0_i32_0 = arith.constant 0 : i32
    %c0_i32_1 = arith.constant 0 : i32
    %c0_i32_2 = arith.constant 0 : i32
    return %c0_i32, %c0_i32_0, %c0_i32_1 : i32, i32, i32
  }
  func.func @transform_9(%arg0: i32) -> (i32, i32, i32) {
    %c0_i32 = arith.constant 0 : i32
    %c0_i32_0 = arith.constant 0 : i32
    %c0_i32_1 = arith.constant 0 : i32
    %c0_i32_2 = arith.constant 0 : i32
    return %c0_i32, %c0_i32_0, %c0_i32_1 : i32, i32, i32
  }
  func.func @transform_10(%arg0: i32) -> (i32, i32, i32) {
    %c0_i32 = arith.constant 0 : i32
    %c0_i32_0 = arith.constant 0 : i32
    %c0_i32_1 = arith.constant 0 : i32
    %c0_i32_2 = arith.constant 0 : i32
    return %c0_i32, %c0_i32_0, %c0_i32_1 : i32, i32, i32
  }
  func.func @transform_11(%arg0: i32) -> (i32, i32) {
    %c0_i32 = arith.constant 0 : i32
    %c0_i32_0 = arith.constant 0 : i32
    %c0_i32_1 = arith.constant 0 : i32
    return %c0_i32, %c0_i32_0 : i32, i32
  }
  func.func @transform_12(%arg0: i32) -> (i32, i32) {
    %c0_i32 = arith.constant 0 : i32
    %c0_i32_0 = arith.constant 0 : i32
    %c0_i32_1 = arith.constant 0 : i32
    return %c0_i32, %c0_i32_0 : i32, i32
  }
  func.func @transform_13(%arg0: i32) -> (i32, i32) {
    %c0_i32 = arith.constant 0 : i32
    %c0_i32_0 = arith.constant 0 : i32
    %c0_i32_1 = arith.constant 0 : i32
    return %c0_i32, %c0_i32_0 : i32, i32
  }
  func.func @transform_14(%arg0: i32) -> (i32, i32) {
    %c0_i32 = arith.constant 0 : i32
    %c0_i32_0 = arith.constant 0 : i32
    %c0_i32_1 = arith.constant 0 : i32
    return %c0_i32, %c0_i32_0 : i32, i32
  }
  func.func @transform_15(%arg0: i32) -> (i32, i32) {
    %c0_i32 = arith.constant 0 : i32
    %c0_i32_0 = arith.constant 0 : i32
    %c0_i32_1 = arith.constant 0 : i32
    return %c0_i32, %c0_i32_0 : i32, i32
  }
  func.func @transform_16(%arg0: i32) -> (i32, i32) {
    %c0_i32 = arith.constant 0 : i32
    %c0_i32_0 = arith.constant 0 : i32
    %c0_i32_1 = arith.constant 0 : i32
    return %c0_i32, %c0_i32_0 : i32, i32
  }
  func.func @transform_17(%arg0: i32) -> (i32, i32) {
    %c0_i32 = arith.constant 0 : i32
    %c0_i32_0 = arith.constant 0 : i32
    %c0_i32_1 = arith.constant 0 : i32
    return %c0_i32, %c0_i32_0 : i32, i32
  }
}

</mosaic_0001>

<bundles_post_ra>
// kernel: net_forward.1
= control target key start
LH: loop header
LB: loop body
LE: loop exit
PB: predicated region body
PF: predicated region fallthrough
CT: control target
= control target key end

     0   :  { %s6006_s0 = inlined_call_operand.hbm [shape: bf16[64,128], index: 0, kind: input, shape index: {}]   ;;  %s6007_s1 = inlined_call_operand.hbm [shape: bf16[64,64], index: 1, kind: input, shape index: {}]   ;;  %s6008_s2 = inlined_call_operand.vmem [shape: f32[64,1], index: 2, kind: input, shape index: {}]   ;;  %s6009_s3 = inlined_call_operand.vmem [shape: bf16[128,128], index: 3, kind: input, shape index: {}]   ;;  %s6010_s4 = inlined_call_operand.vmem [shape: f32[1,128], index: 4, kind: input, shape index: {}]   ;;  %s6011_s5 = inlined_call_operand.vmem [shape: f32[1,128], index: 5, kind: input, shape index: {}]   ;;  %s6012_s6 = inlined_call_operand.hbm [shape: f32[1,128], index: 6, kind: input, shape index: {}]   ;;  %s6013_s7 = inlined_call_operand.hbm [shape: bf16[7,256,128], index: 7, kind: input, shape index: {}]   ;;  %s6014_s8 = inlined_call_operand.vmem [shape: f32[7,1,128], index: 8, kind: input, shape index: {}]   ;;  %s6015_s9 = inlined_call_operand.vmem [shape: f32[7,1,128], index: 9, kind: input, shape index: {}]   ;;  %s6016_s10 = inlined_call_operand.vmem [shape: f32[7,1,128], index: 10, kind: input, shape index: {}]   ;;  %s6017_s11 = inlined_call_operand.hbm [shape: bf16[384,128], index: 11, kind: input, shape index: {}]   ;;  %s6018_s12 = inlined_call_operand.vmem [shape: f32[1,128], index: 12, kind: input, shape index: {}]   ;;  %s6019_s13 = inlined_call_operand.hbm [shape: bf16[128,128], index: 13, kind: input, shape index: {}]   ;;  %s6020_s14 = inlined_call_operand.vmem [shape: f32[1,128], index: 14, kind: input, shape index: {}]   ;;  %s6021_s15 = inlined_call_operand.hbm [shape: bf16[128,128], index: 15, kind: input, shape index: {}]   ;;  %s6022_s16 = inlined_call_operand.vmem [shape: f32[1,128], index: 16, kind: input, shape index: {}]   ;;  %s6023_s17 = inlined_call_operand.vmem [shape: f32[8,128], index: 17, kind: output, shape index: {}]  }
   0x1   :  { %6026 = sst [smem:[#allocation17_spill]] %s6006_s0 }
   0x2   :  { %6027 = sst [smem:[#allocation18_spill]] %s6007_s1 }
   0x3   :  { %6028 = sst [smem:[#allocation19_spill]] %s6023_s17 }
   0x4   :  { %22 = vsyncpa [#allocation3], 0 }
   0x5   :  { %23 = vsyncpa [#allocation5], 0 }
   0x6   :  { %24 = vsyncpa [#allocation8], 0 }
   0x7   :  { %25 = vsyncpa [#allocation11], 0  ;;  %s5135_s24 = smov [#allocation4]   ;;  %s5136_s26 = smov [#allocation7]  }
   0x8   :  { %s43_s25 = sshll.u32 %s5135_s24, 4  ;;  %s73_s27 = sshll.u32 %s5136_s26, 4  ;;  %s44_s25 = int_to_ptr.vmem [resolvable:$true] %s43_s25  ;;  %s5238_s27 = int_to_ptr.vmem [resolvable:$true] %s73_s27 }
   0x9   :  { %s6029_s0 = sld [smem:[#allocation18_spill]] }
   0xf   :  { %s4973_s30 = scalar_lea.hbm %s6029_s0, 512 }
  0x10   :  { %p4974_p0 = scmp.ne.s32.totalorder %s6029_s0, %s4973_s30  ;;  %p4977_p1 = scmp.lt.u32.totalorder %s4973_s30, %s6029_s0 }
  0x12   :  { %p4979_p2 = pnand %p4977_p1, %p4974_p0 }
  0x14   :  { %4982 = shalt.err (!%p4979_p2)
}
  0x15   :  { %s4983_s21 = scalar_lea.vmem %s44_s25, 512  ;;  %p4988_p4 = scmp.lt.s32.totalorder %s44_s25, %s44_s25 }
  0x16   :  { %p4984_p3 = scmp.ne.s32.totalorder %s44_s25, %s4983_s21  ;;  %p4989_p5 = scmp.lt.s32.totalorder %s4983_s21, %s4983_s21 }
  0x18   :  { %p4990_p6 = por %p4989_p5, %p4988_p4 }
  0x1a   :  { %p4991_p7 = pnand %p4990_p6, %p4984_p3 }
  0x1c   :  { %4994 = shalt.err (!%p4991_p7)
}
  0x1d   :  { %s5137_s22 = smov 64   ;;  %s5138_s23 = smov 4  }
  0x1e   :  { %49 = dma.hbm_to_vmem [thread:$0]  %s6029_s0, 512, %s44_s25, [#allocation5], %s5137_s22, %s5137_s22, %s5138_s23  }
  0x1f   :  { %s4995_s30 = scalar_lea.hbm %s6013_s7, 14336 }
  0x20   :  { %p4996_p8 = scmp.ne.s32.totalorder %s6013_s7, %s4995_s30  ;;  %p4999_p9 = scmp.lt.u32.totalorder %s4995_s30, %s6013_s7 }
  0x22   :  { %p5001_p10 = pnand %p4999_p9, %p4996_p8 }
  0x24   :  { %5004 = shalt.err (!%p5001_p10)
}
  0x25   :  { %s5005_s21 = scalar_lea.vmem %s5238_s27, 14336  ;;  %p5010_p12 = scmp.lt.s32.totalorder %s5238_s27, %s5238_s27 }
  0x26   :  { %p5006_p11 = scmp.ne.s32.totalorder %s5238_s27, %s5005_s21  ;;  %p5011_p13 = scmp.lt.s32.totalorder %s5005_s21, %s5005_s21 }
  0x28   :  { %p5012_p0 = por %p5011_p13, %p5010_p12 }
  0x2a   :  { %p5013_p1 = pnand %p5012_p0, %p5006_p11 }
  0x2c   :  { %5016 = shalt.err (!%p5013_p1)
}
  0x2d   :  { %79 = dma.hbm_to_vmem [thread:$0]  %s6013_s7, 14336, %s5238_s27, [#allocation8], %s5137_s22, %s5137_s22, %s5138_s23  }
  0x2e   :  { %s5139_s24 = smov [#allocation10]   ;;  %s5140_s28 = smov [#allocation2]  }
  0x2f   :  { %s105_s26 = sshll.u32 %s5139_s24, 4  ;;  %s31_s29 = sshll.u32 %s5140_s28, 4  ;;  %s106_s26 = int_to_ptr.vmem [resolvable:$true] %s105_s26  ;;  %s5275_s29 = int_to_ptr.vmem [resolvable:$true] %s31_s29 }
  0x30   :  { %s5017_s19 = scalar_lea.hbm %s6019_s13, 1024 }
  0x31   :  { %p5018_p2 = scmp.ne.s32.totalorder %s6019_s13, %s5017_s19  ;;  %p5021_p3 = scmp.lt.u32.totalorder %s5017_s19, %s6019_s13 }
  0x33   :  { %p5023_p4 = pnand %p5021_p3, %p5018_p2 }
  0x35   :  { %5026 = shalt.err (!%p5023_p4)
}
  0x36   :  { %s5027_s7 = scalar_lea.vmem %s106_s26, 1024  ;;  %p5032_p6 = scmp.lt.s32.totalorder %s106_s26, %s106_s26 }
  0x37   :  { %p5028_p5 = scmp.ne.s32.totalorder %s106_s26, %s5027_s7  ;;  %p5033_p7 = scmp.lt.s32.totalorder %s5027_s7, %s5027_s7 }
  0x39   :  { %p5034_p8 = por %p5033_p7, %p5032_p6 }
  0x3b   :  { %p5035_p9 = pnand %p5034_p8, %p5028_p5 }
  0x3d   :  { %5038 = shalt.err (!%p5035_p9)
}
  0x3e   :  { %111 = dma.hbm_to_vmem [thread:$0]  %s6019_s13, 1024, %s106_s26, [#allocation11], %s5137_s22, %s5137_s22, %s5138_s23  }
  0x3f   :  { %s6030_s17 = sld [smem:[#allocation17_spill]] }
  0x45   :  { %s5039_s28 = scalar_lea.hbm %s6030_s17, 512 }
  0x46   :  { %p5040_p10 = scmp.ne.s32.totalorder %s6030_s17, %s5039_s28  ;;  %p5043_p11 = scmp.lt.u32.totalorder %s5039_s28, %s6030_s17 }
  0x48   :  { %p5045_p12 = pnand %p5043_p11, %p5040_p10 }
  0x4a   :  { %5048 = shalt.err (!%p5045_p12)
}
  0x4b   :  { %s5049_s20 = scalar_lea.vmem %s5275_s29, 512  ;;  %p5054_p0 = scmp.lt.s32.totalorder %s5275_s29, %s5275_s29 }
  0x4c   :  { %p5050_p13 = scmp.ne.s32.totalorder %s5275_s29, %s5049_s20  ;;  %p5055_p1 = scmp.lt.s32.totalorder %s5049_s20, %s5049_s20 }
  0x4e   :  { %p5056_p2 = por %p5055_p1, %p5054_p0 }
  0x50   :  { %p5057_p3 = pnand %p5056_p2, %p5050_p13 }
  0x52   :  { %5060 = shalt.err (!%p5057_p3)
}
  0x53   :  { %37 = dma.hbm_to_vmem [thread:$0]  %s6030_s17, 512, %s5275_s29, [#allocation3], %s5137_s22, %s5137_s22, %s5138_s23  }
  0x54   :  { %s5141_s21 = smov [#allocation6]   ;;  %s5142_s27 = smov [#allocation9]  }
  0x55   :  { %s64_s7 = sshll.u32 %s5141_s21, 4  ;;  %s91_s25 = sshll.u32 %s5142_s27, 4  ;;  %s65_s7 = int_to_ptr.vmem [resolvable:$true] %s64_s7  ;;  %s5312_s25 = int_to_ptr.vmem [resolvable:$true] %s91_s25 }
  0x56   :  { %s5061_s28 = scalar_lea.hbm %s6012_s6, 16 }
  0x57   :  { %p5062_p4 = scmp.ne.s32.totalorder %s6012_s6, %s5061_s28  ;;  %p5065_p5 = scmp.lt.u32.totalorder %s5061_s28, %s6012_s6 }
  0x59   :  { %p5067_p6 = pnand %p5065_p5, %p5062_p4 }
  0x5b   :  { %5070 = shalt.err (!%p5067_p6)
}
  0x5c   :  { %s5071_s29 = scalar_lea.vmem %s65_s7, 16  ;;  %s5075_s17 = scalar_lea.vmem %s65_s7, 32 }
  0x5d   :  { %p5072_p7 = scmp.ne.s32.totalorder %s65_s7, %s5071_s29  ;;  %p5076_p8 = scmp.lt.s32.totalorder %s65_s7, %s65_s7 }
  0x5e   :  { %p5077_p9 = scmp.lt.s32.totalorder %s5075_s17, %s5071_s29 }
  0x60   :  { %p5078_p10 = por %p5077_p9, %p5076_p8 }
  0x62   :  { %p5079_p11 = pnand %p5078_p10, %p5072_p7 }
  0x64   :  { %5082 = shalt.err (!%p5079_p11)
}
  0x65   :  { %67 = dma.hbm_to_vmem [thread:$0]  %s6012_s6, 16, %s65_s7, [#allocation5]  }
  0x66   :  { %s5083_s27 = scalar_lea.hbm %s6017_s11, 3072 }
  0x67   :  { %p5084_p12 = scmp.ne.s32.totalorder %s6017_s11, %s5083_s27  ;;  %p5087_p13 = scmp.lt.u32.totalorder %s5083_s27, %s6017_s11 }
  0x69   :  { %p5089_p0 = pnand %p5087_p13, %p5084_p12 }
  0x6b   :  { %5092 = shalt.err (!%p5089_p0)
}
  0x6c   :  { %s5093_s18 = scalar_lea.vmem %s5312_s25, 3072  ;;  %p5098_p2 = scmp.lt.s32.totalorder %s5312_s25, %s5312_s25 }
  0x6d   :  { %p5094_p1 = scmp.ne.s32.totalorder %s5312_s25, %s5093_s18  ;;  %p5099_p3 = scmp.lt.s32.totalorder %s5093_s18, %s5093_s18 }
  0x6f   :  { %p5100_p4 = por %p5099_p3, %p5098_p2 }
  0x71   :  { %p5101_p5 = pnand %p5100_p4, %p5094_p1 }
  0x73   :  { %5104 = shalt.err (!%p5101_p5)
}
  0x74   :  { %97 = dma.hbm_to_vmem [thread:$0]  %s6017_s11, 3072, %s5312_s25, [#allocation8], %s5137_s22, %s5137_s22, %s5138_s23  }
  0x75   :  { %s5143_s19 = smov [#allocation12]   ;;  %s5105_s20 = scalar_lea.hbm %s6021_s15, 1024 }
  0x76   :  { %s119_s1 = sshll.u32 %s5143_s19, 4  ;;  %p5106_p6 = scmp.ne.s32.totalorder %s6021_s15, %s5105_s20  ;;  %s120_s1 = int_to_ptr.vmem [resolvable:$true] %s119_s1 }
  0x77   :  { %p5109_p7 = scmp.lt.u32.totalorder %s5105_s20, %s6021_s15 }
  0x79   :  { %p5111_p8 = pnand %p5109_p7, %p5106_p6 }
  0x7b   :  { %5114 = shalt.err (!%p5111_p8)
}
  0x7c   :  { %s5115_s0 = scalar_lea.vmem %s120_s1, 1024  ;;  %p5120_p10 = scmp.lt.s32.totalorder %s120_s1, %s120_s1 }
  0x7d   :  { %p5116_p9 = scmp.ne.s32.totalorder %s120_s1, %s5115_s0  ;;  %p5121_p11 = scmp.lt.s32.totalorder %s5115_s0, %s5115_s0 }
  0x7f   :  { %p5122_p12 = por %p5121_p11, %p5120_p10 }
  0x81   :  { %p5123_p13 = pnand %p5122_p12, %p5116_p9 }
  0x83   :  { %5126 = shalt.err (!%p5123_p13)
}
  0x84   :  { %125 = dma.hbm_to_vmem [thread:$0]  %s6021_s15, 1024, %s120_s1, [#allocation11], %s5137_s22, %s5137_s22, %s5138_s23  }
  0x85   :  { %5127 = dma.done.wait [#allocation3], 512  }
  0x86   :  { %5128 = vsyncadd [#allocation3], 4294966784 }
  0x87   :  { %5129 = dma.done.wait [#allocation5], 528  }
  0x88   :  { %5130 = vsyncadd [#allocation5], 4294966768 }
  0x89   :  { %5131 = dma.done.wait [#allocation8], 17408  }
  0x8a   :  { %5132 = vsyncadd [#allocation8], 4294949888 }
  0x8b   :  { %5133 = dma.done.wait [#allocation11], 2048  }
  0x8c   :  { %5134 = vsyncadd [#allocation11], 4294965248  ;;  %v4662_v0 = vld [vmem:[%s6009_s3] sm:$0xff]   ;;  %v4663_v1 = vld [vmem:[%s6009_s3 + $0x8] sm:$0xff]   ;;  %vm487_vm0 = vcmask 523264   ;;  %s6031_s23 = sld [smem:[#allocation19_spill]] }
  0x8d   :  { %4451 = vmatprep.subr.bf16.mxu0 %v4662_v0  ;;  %v4664_v2 = vld [vmem:[%s6009_s3 + $0x10] sm:$0xff]   ;;  %v4665_v3 = vld [vmem:[%s6009_s3 + $0x18] sm:$0xff]   ;;  %v4670_v4 = vld [vmem:[#allocation2] sm:$0xff]  }
  0x8e   :  { %4452 = vmatpush3.bf16.msra.mxu0 %v4662_v0  ;;  %4467 = vmatprep.mubr.bf16.mxu0 %v4670_v4  ;;  %v4666_v5 = vld [vmem:[%s6009_s3 + $0x20] sm:$0xff]   ;;  %v4667_v6 = vld [vmem:[%s6009_s3 + $0x28] sm:$0xff]   ;;  %v4668_v7 = vld [vmem:[%s6009_s3 + $0x30] sm:$0xff]  }
  0x8f   :  { %4453 = vmatprep.subr.bf16.mxu0 %v4663_v1  ;;  %v4669_v8 = vld [vmem:[%s6009_s3 + $0x38] sm:$0xff]   ;;  %v4671_v9 = vld [vmem:[#allocation2 + $0x8] sm:$0xff]   ;;  %v4672_v10 = vld [vmem:[#allocation2 + $0x10] sm:$0xff]  }
  0x90   :  { %v4673_v11 = vld [vmem:[#allocation2 + $0x18] sm:$0xff]   ;;  %v5385_v12 = vld [vmem:[#allocation4] sm:$0xff]  }
  0x91   :  { %4483 = vmatprep.mubr.msk.bf16.mxu1 %vm487_vm0, %v5385_v12  ;;  %v3747_v13 = vld [vmem:[%s6010_s4] ss:$0 sm:$0xff] }
  0x92   :  { %4454 = vmatpush3.bf16.msra.mxu0 %v4663_v1  ;;  %v3768_v49 = vld [vmem:[%s6011_s5] ss:$0 sm:$0xff] }
  0x93   :  { %4455 = vmatprep.subr.bf16.mxu0 %v4664_v2  ;;  %v3769_v60 = vld [vmem:[#allocation6] ss:$0 sm:$0xff] }
  0x96   :  { %4456 = vmatpush3.bf16.msra.mxu0 %v4664_v2 }
  0x97   :  { %4457 = vmatprep.subr.bf16.mxu0 %v4665_v3 }
  0x9a   :  { %4458 = vmatpush3.bf16.msra.mxu0 %v4665_v3 }
  0x9b   :  { %4459 = vmatprep.subr.bf16.mxu0 %v4666_v5 }
  0x9e   :  { %4460 = vmatpush3.bf16.msra.mxu0 %v4666_v5 }
  0x9f   :  { %4461 = vmatprep.subr.bf16.mxu0 %v4667_v6 }
  0xa2   :  { %4462 = vmatpush3.bf16.msra.mxu0 %v4667_v6 }
  0xa3   :  { %4463 = vmatprep.subr.bf16.mxu0 %v4668_v7 }
  0xa6   :  { %4464 = vmatpush3.bf16.msra.mxu0 %v4668_v7 }
  0xa7   :  { %4465 = vmatprep.subr.bf16.mxu0 %v4669_v8 }
  0xaa   :  { %4466 = vmatpush3.bf16.msra.mxu0 %v4669_v8 }
  0xad   :  { %4468 = vmatmul.mubr.bf16.vlgmr.msra.gmra.mrb[0].mxu0 %v4671_v9 }
  0xae   :  { %4471 = vmatprep.mubr.bf16.mxu0 %v4672_v10 }
  0xb5   :  { %4472 = vmatmul.mubr.bf16.gmra.mrb[4].mxu0 %v4673_v11 }
 0x180   :  { %v4469_v14 = vpop.f32.mrb[0].mxu0 }
 0x181   :  { %v328_v15 = vadd.f32 %v4469_v14, %v3747_v13  ;;  %v319_v16 = vpop.f32.mrb[1].mxu0 }
 0x182   :  { %v320_v17 = vadd.f32 %v3747_v13, %v319_v16  ;;  %v4470_v18 = vpop.f32.mrb[2].mxu0 }
 0x183   :  { %v352_v19 = vmin.f32 %v328_v15, 0.0  ;;  %v331_v20 = vadd.f32 %v4470_v18, %v3747_v13  ;;  %v322_v21 = vpop.f32.mrb[3].mxu0  ;;  %vm360_vm1 = vcmp.gt.f32.partialorder %v328_v15, 0.0 }
 0x184   :  { %v350_v22 = vmin.f32 %v320_v17, 0.0  ;;  %v323_v23 = vadd.f32 %v3747_v13, %v322_v21  ;;  %vm358_vm2 = vcmp.gt.f32.partialorder %v320_v17, 0.0 }
 0x185   :  { %v370_v24 = vmul.f32 1.442695, %v352_v19  ;;  %v353_v25 = vmin.f32 %v331_v20, 0.0  ;;  %vm361_vm3 = vcmp.gt.f32.partialorder %v331_v20, 0.0 }
 0x186   :  { %v366_v26 = vmul.f32 1.442695, %v350_v22  ;;  %v351_v27 = vmin.f32 %v323_v23, 0.0  ;;  %vm359_vm4 = vcmp.gt.f32.partialorder %v323_v23, 0.0 }
 0x187   :  { %4830 = vpow2.f32 %v370_v24  ;;  %v372_v28 = vmul.f32 1.442695, %v353_v25 }
 0x188   :  { %4832 = vpow2.f32 %v366_v26  ;;  %v368_v29 = vmul.f32 1.442695, %v351_v27  ;;  %v4473_v30 = vpop.f32.mrb[4].mxu0 }
 0x189   :  { %4834 = vpow2.f32 %v372_v28  ;;  %v344_v31 = vadd.f32 %v4473_v30, %v3747_v13  ;;  %v335_v32 = vpop.f32.mrb[5].mxu0  ;;  %v5399_v30 = vld [vmem:[#allocation4 + $0x8] sm:$0xff]  }
 0x18a   :  { %4836 = vpow2.f32 %v368_v29  ;;  %v336_v33 = vadd.f32 %v3747_v13, %v335_v32  ;;  %v4474_v34 = vpop.f32.mrb[6].mxu0  ;;  %v4678_v29 = vld [vmem:[#allocation7 + $0x40] sm:$0xff]  }
 0x18b   :  { %v356_v35 = vmin.f32 %v344_v31, 0.0  ;;  %v347_v36 = vadd.f32 %v4474_v34, %v3747_v13  ;;  %v338_v37 = vpop.f32.mrb[7].mxu0  ;;  %vm364_vm5 = vcmp.gt.f32.partialorder %v344_v31, 0.0  ;;  %v4679_v32 = vld [vmem:[#allocation7] sm:$0xff]   ;;  %v4681_v34 = vld [vmem:[#allocation7 + $0x8] sm:$0xff]  }
 0x18c   :  { %v354_v38 = vmin.f32 %v336_v33, 0.0  ;;  %v339_v39 = vadd.f32 %v3747_v13, %v338_v37  ;;  %vm362_vm6 = vcmp.gt.f32.partialorder %v336_v33, 0.0  ;;  %v4683_v37 = vld [vmem:[#allocation7 + $0x10] sm:$0xff]  }
 0x18d   :  { %v378_v40 = vmul.f32 1.442695, %v356_v35  ;;  %v357_v41 = vmin.f32 %v347_v36, 0.0  ;;  %vm365_vm7 = vcmp.gt.f32.partialorder %v347_v36, 0.0  ;;  %v4682_v35 = vld [vmem:[#allocation7 + $0x50] sm:$0xff]  }
 0x18e   :  { %v374_v42 = vmul.f32 1.442695, %v354_v38  ;;  %v355_v43 = vmin.f32 %v339_v39, 0.0  ;;  %vm363_vm8 = vcmp.gt.f32.partialorder %v339_v39, 0.0  ;;  %v4684_v38 = vld [vmem:[#allocation7 + $0x58] sm:$0xff]  }
 0x18f   :  { %4838 = vpow2.f32 %v378_v40  ;;  %v380_v44 = vmul.f32 1.442695, %v357_v41  ;;  %v4686_v40 = vld [vmem:[#allocation7 + $0x60] sm:$0xff]  }
 0x190   :  { %4840 = vpow2.f32 %v374_v42  ;;  %v376_v45 = vmul.f32 1.442695, %v355_v43  ;;  %v4687_v41 = vld [vmem:[#allocation7 + $0x20] sm:$0xff]   ;;  %v4688_v42 = vld [vmem:[#allocation7 + $0x68] sm:$0xff]  }
 0x191   :  { %v4831_v46 = vpop.eup %4830  ;;  %4842 = vpow2.f32 %v380_v44  ;;  %v4689_v43 = vld [vmem:[#allocation7 + $0x28] sm:$0xff]   ;;  %v4690_v44 = vld [vmem:[#allocation7 + $0x70] sm:$0xff]  }
 0x192   :  { %v4833_v47 = vpop.eup %4832  ;;  %v3762_v48 = vadd.f32 -1.0, %v4831_v46  ;;  %4844 = vpow2.f32 %v376_v45  ;;  %v4691_v45 = vld [vmem:[#allocation7 + $0x30] sm:$0xff]   ;;  %v4692_v46 = vld [vmem:[#allocation7 + $0x78] sm:$0xff]  }
 0x193   :  { %v4835_v50 = vpop.eup %4834  ;;  %v3760_v51 = vadd.f32 -1.0, %v4833_v47  ;;  %v4693_v47 = vld [vmem:[#allocation7 + $0x38] sm:$0xff]  }
 0x194   :  { %v4837_v52 = vpop.eup %4836  ;;  %v392_v53 = vsel %vm360_vm1, %v328_v15, %v3762_v48  ;;  %v3763_v54 = vadd.f32 -1.0, %v4835_v50 }
 0x195   :  { %v407_v55 = vmul.f32 %v3768_v49, %v392_v53  ;;  %v390_v56 = vsel %vm358_vm2, %v320_v17, %v3760_v51  ;;  %v3761_v57 = vadd.f32 -1.0, %v4837_v52 }
 0x196   :  { %v405_v58 = vmul.f32 %v3768_v49, %v390_v56  ;;  %v393_v59 = vsel %vm361_vm3, %v331_v20, %v3763_v54 }
 0x197   :  { %v408_v61 = vmul.f32 %v3768_v49, %v393_v59  ;;  %v391_v62 = vsel %vm359_vm4, %v323_v23, %v3761_v57  ;;  %v422_v1 = vadd.f32 %v3769_v60, %v407_v55 }
 0x198   :  { %v406_v63 = vmul.f32 %v3768_v49, %v391_v62  ;;  %v420_v5 = vadd.f32 %v3769_v60, %v405_v58  ;;  %v4696_v62 = vld [vmem:[#allocation7 + $0xc8] sm:$0xff]  }
 0x199   :  { %v4839_v0 = vpop.eup %4838  ;;  %v423_v2 = vadd.f32 %v3769_v60, %v408_v61  ;;  %v4695_v61 = vld [vmem:[#allocation7 + $0x80] sm:$0xff]  }
 0x19a   :  { %v4841_v3 = vpop.eup %4840  ;;  %v3766_v4 = vadd.f32 -1.0, %v4839_v0  ;;  %v421_v6 = vadd.f32 %v3769_v60, %v406_v63  ;;  %v4697_v63 = vld [vmem:[#allocation7 + $0x88] sm:$0xff]   ;;  %v4698_v0 = vld [vmem:[#allocation7 + $0xd0] sm:$0xff]  }
 0x19b   :  { %v4843_v7 = vpop.eup %4842  ;;  %v3764_v8 = vadd.f32 -1.0, %v4841_v3  ;;  %v5395_v9 = vpack.c.bf16 %v423_v2, %v422_v1  ;;  %v4699_v1 = vld [vmem:[#allocation7 + $0x90] sm:$0xff]   ;;  %v4700_v2 = vld [vmem:[#allocation7 + $0xd8] sm:$0xff]  }
 0x19c   :  { %v4845_v10 = vpop.eup %4844  ;;  %v396_v11 = vsel %vm364_vm5, %v344_v31, %v3766_v4  ;;  %v3767_v13 = vadd.f32 -1.0, %v4843_v7  ;;  %v428_v14 = vpack.c.bf16 %v421_v6, %v420_v5  ;;  %v5401_v31 = vld [vmem:[#allocation4 + $0x10] sm:$0xff]   ;;  %v4701_v3 = vld [vmem:[#allocation7 + $0x98] sm:$0xff]   ;;  %v4702_v4 = vld [vmem:[#allocation7 + $0xe0] sm:$0xff]  }
 0x19d   :  { %v411_v15 = vmul.f32 %v3768_v49, %v396_v11  ;;  %v394_v16 = vsel %vm362_vm6, %v336_v33, %v3764_v8  ;;  %v3765_v17 = vadd.f32 -1.0, %v4845_v10  ;;  %v4680_v33 = vld [vmem:[#allocation7 + $0x48] sm:$0xff]   ;;  %v4703_v5 = vld [vmem:[#allocation7 + $0xa0] sm:$0xff]   ;;  %v4706_v8 = vld [vmem:[#allocation7 + $0xf0] sm:$0xff]  }
 0x19e   :  { %v409_v18 = vmul.f32 %v3768_v49, %v394_v16  ;;  %v397_v19 = vsel %vm365_vm7, %v347_v36, %v3767_v13  ;;  %4475 = vmatprep.subr.bf16.mxu1 %v428_v14  ;;  %v5407_v36 = vld [vmem:[#allocation4 + $0x18] sm:$0xff]   ;;  %v4704_v6 = vld [vmem:[#allocation7 + $0xe8] sm:$0xff]   ;;  %v5417_v11 = vld [vmem:[%s6014_s8] ss:$0 sm:$0xff] }
 0x19f   :  { %v412_v20 = vmul.f32 %v3768_v49, %v397_v19  ;;  %v395_v21 = vsel %vm363_vm8, %v339_v39, %v3765_v17  ;;  %4476 = vmatpush3.bf16.msra.mxu1 %v428_v14  ;;  %v426_v23 = vadd.f32 %v3769_v60, %v411_v15  ;;  %v4685_v39 = vld [vmem:[#allocation7 + $0x18] sm:$0xff]   ;;  %v4705_v7 = vld [vmem:[#allocation7 + $0xa8] sm:$0xff]  }
 0x1a0   :  { %v410_v22 = vmul.f32 %v3768_v49, %v395_v21  ;;  %4477 = vmatprep.subr.bf16.mxu1 %v5395_v9  ;;  %v424_v25 = vadd.f32 %v3769_v60, %v409_v18 }
 0x1a1   :  { %v427_v24 = vadd.f32 %v3769_v60, %v412_v20 }
 0x1a2   :  { %v425_v26 = vadd.f32 %v3769_v60, %v410_v22  ;;  %v4694_v60 = vld [vmem:[#allocation7 + $0xc0] sm:$0xff]  }
 0x1a3   :  { %4478 = vmatpush3.bf16.msra.mxu1 %v5395_v9  ;;  %v431_v27 = vpack.c.bf16 %v427_v24, %v426_v23  ;;  %4122 = vmatprep.subr.bf16.mxu0 %v4694_v60 }
 0x1a4   :  { %v430_v28 = vpack.c.bf16 %v425_v26, %v424_v25  ;;  %4123 = vmatpush3.bf16.msra.mxu0 %v4695_v61 }
 0x1a5   :  { %4124 = vmatprep.subr.bf16.mxu0 %v4696_v62 }
 0x1a6   :  { %4479 = vmatprep.subr.bf16.mxu1 %v430_v28 }
 0x1a7   :  { %4480 = vmatpush3.bf16.msra.mxu1 %v430_v28 }
 0x1a8   :  { %4481 = vmatprep.subr.bf16.mxu1 %v431_v27  ;;  %4125 = vmatpush3.bf16.msra.mxu0 %v4697_v63 }
 0x1a9   :  { %4126 = vmatprep.subr.bf16.mxu0 %v4698_v0 }
 0x1ab   :  { %4482 = vmatpush3.bf16.msra.mxu1 %v431_v27 }
 0x1ac   :  { %4074 = vmatprep.subr.bf16.mxu1 %v4678_v29  ;;  %4127 = vmatpush3.bf16.msra.mxu0 %v4699_v1 }
 0x1ad   :  { %4128 = vmatprep.subr.bf16.mxu0 %v4700_v2 }
 0x1ae   :  { %4484 = vmatmul.mubr.msk.bf16.vlgmr.msra.gmra.mrb[0].mxu1 %vm487_vm0, %v5399_v30 }
 0x1af   :  { %4487 = vmatprep.mubr.msk.bf16.mxu1 %vm487_vm0, %v5401_v31  ;;  %4075 = vmatpush3.bf16.msra.mxu1 %v4679_v32 }
 0x1b0   :  { %4076 = vmatprep.subr.bf16.mxu1 %v4680_v33  ;;  %4129 = vmatpush3.bf16.msra.mxu0 %v4701_v3 }
 0x1b1   :  { %4130 = vmatprep.subr.bf16.mxu0 %v4702_v4 }
 0x1b3   :  { %4077 = vmatpush3.bf16.msra.mxu1 %v4681_v34 }
 0x1b4   :  { %4078 = vmatprep.subr.bf16.mxu1 %v4682_v35  ;;  %4131 = vmatpush3.bf16.msra.mxu0 %v4703_v5 }
 0x1b5   :  { %4132 = vmatprep.subr.bf16.mxu0 %v4704_v6 }
 0x1b6   :  { %4488 = vmatmul.mubr.msk.bf16.gmra.mrb[4].mxu1 %vm487_vm0, %v5407_v36 }
 0x1b7   :  { %703 = vmatprep.mubr.bf16.mxu1 %v428_v14  ;;  %4079 = vmatpush3.bf16.msra.mxu1 %v4683_v37 }
 0x1b8   :  { %4080 = vmatprep.subr.bf16.mxu1 %v4684_v38  ;;  %4133 = vmatpush3.bf16.msra.mxu0 %v4705_v7 }
 0x1b9   :  { %4134 = vmatprep.subr.bf16.mxu0 %v4706_v8 }
 0x1bb   :  { %4081 = vmatpush3.bf16.msra.mxu1 %v4685_v39 }
 0x1bc   :  { %4082 = vmatprep.subr.bf16.mxu1 %v4686_v40 }
 0x1bf   :  { %4083 = vmatpush3.bf16.msra.mxu1 %v4687_v41 }
 0x1c0   :  { %4084 = vmatprep.subr.bf16.mxu1 %v4688_v42 }
 0x1c3   :  { %4085 = vmatpush3.bf16.msra.mxu1 %v4689_v43 }
 0x1c4   :  { %4086 = vmatprep.subr.bf16.mxu1 %v4690_v44 }
 0x1c7   :  { %4087 = vmatpush3.bf16.msra.mxu1 %v4691_v45 }
 0x1c8   :  { %4088 = vmatprep.subr.bf16.mxu1 %v4692_v46 }
 0x1cb   :  { %4089 = vmatpush3.bf16.msra.mxu1 %v4693_v47 }
 0x281   :  { %v4485_v48 = vpop.f32.mrb[0].mxu1 }
 0x282   :  { %v534_v49 = vpop.f32.mrb[1].mxu1 }
 0x283   :  { %v4486_v50 = vpop.f32.mrb[2].mxu1 }
 0x284   :  { %v566_v51 = vpack.c.bf16 %v4486_v50, %v4485_v48  ;;  %v537_v52 = vpop.f32.mrb[3].mxu1  ;;  %v5427_v48 = vld [vmem:[%s6015_s9] ss:$0 sm:$0xff] }
 0x285   :  { %v565_v53 = vpack.c.bf16 %v537_v52, %v534_v49 }
 0x287   :  { %704 = vmatmul.mubr.bf16.vlgmr.msra.gmra.mrb[8].mxu1 %v565_v53 }
 0x288   :  { %711 = vmatprep.mubr.bf16.mxu1 %v5395_v9  ;;  %v4707_v9 = vld [vmem:[#allocation7 + $0xb0] sm:$0xff]  }
 0x289   :  { %v4489_v54 = vpop.f32.mrb[4].mxu1  ;;  %4135 = vmatpush3.bf16.msra.mxu0 %v4707_v9 }
 0x28a   :  { %v550_v55 = vpop.f32.mrb[5].mxu1 }
 0x28b   :  { %v4490_v56 = vpop.f32.mrb[6].mxu1 }
 0x28c   :  { %v568_v57 = vpack.c.bf16 %v4490_v56, %v4489_v54  ;;  %v553_v58 = vpop.f32.mrb[7].mxu1  ;;  %v5433_v54 = vld [vmem:[%s6016_s10] ss:$0 sm:$0xff] }
 0x28d   :  { %v567_v59 = vpack.c.bf16 %v553_v58, %v550_v55 }
 0x28f   :  { %712 = vmatmul.mubr.bf16.gmra.mrb[12].mxu1 %v566_v51 }
 0x290   :  { %719 = vmatprep.mubr.bf16.mxu1 %v430_v28 }
 0x297   :  { %720 = vmatmul.mubr.bf16.gmra.mrb[16].mxu1 %v567_v59 }
 0x298   :  { %727 = vmatprep.mubr.bf16.mxu1 %v431_v27 }
 0x29f   :  { %728 = vmatmul.mubr.bf16.gmra.mrb[20].mxu1 %v568_v57 }
 0x2a0   :  { %4499 = vmatprep.mubr.msk.bf16.mxu1 %vm487_vm0, %v5385_v12 }
 0x35a   :  { %v4090_v10 = vpop.f32.mrb[8].mxu1 }
 0x35b   :  { %v4091_v13 = vpop.f32.mrb[9].mxu1 }
 0x35c   :  { %v4092_v14 = vadd.f32 %v4091_v13, %v4090_v10  ;;  %v4093_v15 = vpop.f32.mrb[10].mxu1 }
 0x35d   :  { %v4094_v16 = vpop.f32.mrb[11].mxu1 }
 0x35e   :  { %v706_v17 = vadd.f32 %v4092_v14, %v5417_v11  ;;  %v4095_v18 = vadd.f32 %v4094_v16, %v4093_v15 }
 0x360   :  { %v736_v19 = vmin.f32 %v706_v17, 0.0  ;;  %v709_v20 = vadd.f32 %v4095_v18, %v5417_v11  ;;  %vm744_vm9 = vcmp.gt.f32.partialorder %v706_v17, 0.0 }
 0x362   :  { %v752_v21 = vmul.f32 1.442695, %v736_v19  ;;  %v737_v22 = vmin.f32 %v709_v20, 0.0  ;;  %v4096_v23 = vpop.f32.mrb[12].mxu1  ;;  %vm745_vm10 = vcmp.gt.f32.partialorder %v709_v20, 0.0 }
 0x363   :  { %v4097_v24 = vpop.f32.mrb[13].mxu1 }
 0x364   :  { %4846 = vpow2.f32 %v752_v21  ;;  %v754_v25 = vmul.f32 1.442695, %v737_v22  ;;  %v4098_v26 = vadd.f32 %v4097_v24, %v4096_v23  ;;  %v4099_v27 = vpop.f32.mrb[14].mxu1 }
 0x365   :  { %v4100_v28 = vpop.f32.mrb[15].mxu1 }
 0x366   :  { %4848 = vpow2.f32 %v754_v25  ;;  %v714_v29 = vadd.f32 %v4098_v26, %v5417_v11  ;;  %v4101_v32 = vadd.f32 %v4100_v28, %v4099_v27 }
 0x368   :  { %v738_v33 = vmin.f32 %v714_v29, 0.0  ;;  %v717_v34 = vadd.f32 %v4101_v32, %v5417_v11  ;;  %vm746_vm11 = vcmp.gt.f32.partialorder %v714_v29, 0.0 }
 0x36a   :  { %v756_v35 = vmul.f32 1.442695, %v738_v33  ;;  %v739_v37 = vmin.f32 %v717_v34, 0.0  ;;  %v4102_v38 = vpop.f32.mrb[16].mxu1  ;;  %vm747_vm12 = vcmp.gt.f32.partialorder %v717_v34, 0.0 }
 0x36b   :  { %v4103_v39 = vpop.f32.mrb[17].mxu1 }
 0x36c   :  { %4850 = vpow2.f32 %v756_v35  ;;  %v758_v40 = vmul.f32 1.442695, %v739_v37  ;;  %v4104_v41 = vadd.f32 %v4103_v39, %v4102_v38  ;;  %v4105_v42 = vpop.f32.mrb[18].mxu1 }
 0x36d   :  { %v4106_v43 = vpop.f32.mrb[19].mxu1 }
 0x36e   :  { %v4847_v44 = vpop.eup %4846  ;;  %4852 = vpow2.f32 %v758_v40  ;;  %v722_v45 = vadd.f32 %v4104_v41, %v5417_v11  ;;  %v4107_v46 = vadd.f32 %v4106_v43, %v4105_v42 }
 0x36f   :  { %v3795_v47 = vadd.f32 -1.0, %v4847_v44 }
 0x370   :  { %v4849_v49 = vpop.eup %4848  ;;  %v740_v50 = vmin.f32 %v722_v45, 0.0  ;;  %v725_v51 = vadd.f32 %v4107_v46, %v5417_v11  ;;  %vm748_vm13 = vcmp.gt.f32.partialorder %v722_v45, 0.0 }
 0x371   :  { %v776_v52 = vsel %vm744_vm9, %v706_v17, %v3795_v47  ;;  %v3796_v53 = vadd.f32 -1.0, %v4849_v49 }
 0x372   :  { %v760_v55 = vmul.f32 1.442695, %v740_v50  ;;  %v741_v56 = vmin.f32 %v725_v51, 0.0  ;;  %v4108_v57 = vpop.f32.mrb[20].mxu1  ;;  %v790_v58 = vmul.f32 %v5427_v48, %v776_v52  ;;  %vm749_vm14 = vcmp.gt.f32.partialorder %v725_v51, 0.0  ;;  %v4709_v50 = vld [vmem:[#allocation7 + $0xb8] sm:$0xff]  }
 0x373   :  { %v777_v59 = vsel %vm745_vm10, %v709_v20, %v3796_v53  ;;  %v4109_v60 = vpop.f32.mrb[21].mxu1 }
 0x374   :  { %4854 = vpow2.f32 %v760_v55  ;;  %v762_v61 = vmul.f32 1.442695, %v741_v56  ;;  %v4110_v62 = vadd.f32 %v4109_v60, %v4108_v57  ;;  %v4111_v63 = vpop.f32.mrb[22].mxu1  ;;  %v791_v0 = vmul.f32 %v5427_v48, %v777_v59 }
 0x375   :  { %v4112_v1 = vpop.f32.mrb[23].mxu1  ;;  %v804_v2 = vadd.f32 %v5433_v54, %v790_v58 }
 0x376   :  { %v4851_v3 = vpop.eup %4850  ;;  %4856 = vpow2.f32 %v762_v61  ;;  %v730_v4 = vadd.f32 %v4110_v62, %v5417_v11  ;;  %v4113_v5 = vadd.f32 %v4112_v1, %v4111_v63  ;;  %v805_v6 = vadd.f32 %v5433_v54, %v791_v0  ;;  %v4710_v63 = vld [vmem:[#allocation7 + $0x140] sm:$0xff]   ;;  %v4712_v1 = vld [vmem:[#allocation7 + $0x148] sm:$0xff]  }
 0x377   :  { %v3797_v7 = vadd.f32 -1.0, %v4851_v3  ;;  %v4711_v0 = vld [vmem:[#allocation7 + $0x100] sm:$0xff]   ;;  %v4714_v3 = vld [vmem:[#allocation7 + $0x150] sm:$0xff]  }
 0x378   :  { %v4853_v8 = vpop.eup %4852  ;;  %v742_v9 = vmin.f32 %v730_v4, 0.0  ;;  %v733_v10 = vadd.f32 %v4113_v5, %v5417_v11  ;;  %v812_v13 = vpack.c.bf16 %v805_v6, %v804_v2  ;;  %vm750_vm15 = vcmp.gt.f32.partialorder %v730_v4, 0.0  ;;  %v4713_v2 = vld [vmem:[#allocation7 + $0x108] sm:$0xff]   ;;  %v4716_v5 = vld [vmem:[#allocation7 + $0x158] sm:$0xff]  }
 0x379   :  { %v778_v14 = vsel %vm746_vm11, %v714_v29, %v3797_v7  ;;  %v3798_v15 = vadd.f32 -1.0, %v4853_v8  ;;  %v4717_v6 = vld [vmem:[#allocation7 + $0x118] sm:$0xff]   ;;  %v4718_v7 = vld [vmem:[#allocation7 + $0x160] sm:$0xff]  }
 0x37a   :  { %v764_v16 = vmul.f32 1.442695, %v742_v9  ;;  %v743_v17 = vmin.f32 %v733_v10, 0.0  ;;  %4491 = vmatprep.subr.bf16.mxu1 %v812_v13  ;;  %1058 = vmatprep.mubr.bf16.mxu0 %v812_v13  ;;  %v792_v18 = vmul.f32 %v5427_v48, %v778_v14  ;;  %vm751_vm1 = vcmp.gt.f32.partialorder %v733_v10, 0.0  ;;  %v4719_v8 = vld [vmem:[#allocation7 + $0x120] sm:$0xff]   ;;  %v4720_v9 = vld [vmem:[#allocation7 + $0x168] sm:$0xff]  }
 0x37b   :  { %v779_v19 = vsel %vm747_vm12, %v717_v34, %v3798_v15  ;;  %4492 = vmatpush3.bf16.msra.mxu1 %v812_v13  ;;  %v4722_v13 = vld [vmem:[#allocation7 + $0x170] sm:$0xff]  }
 0x37c   :  { %4858 = vpow2.f32 %v764_v16  ;;  %v766_v20 = vmul.f32 1.442695, %v743_v17  ;;  %v793_v21 = vmul.f32 %v5427_v48, %v779_v19  ;;  %v806_v11 = vadd.f32 %v5433_v54, %v792_v18  ;;  %v4723_v14 = vld [vmem:[#allocation7 + $0x130] sm:$0xff]   ;;  %v5464_v16 = vld [vmem:[%s6014_s8 + $0x1] ss:$0 sm:$0xff] }
 0x37e   :  { %v4855_v22 = vpop.eup %4854  ;;  %4860 = vpow2.f32 %v766_v20  ;;  %v807_v23 = vadd.f32 %v5433_v54, %v793_v21 }
 0x37f   :  { %v3799_v24 = vadd.f32 -1.0, %v4855_v22 }
 0x380   :  { %v4857_v25 = vpop.eup %4856  ;;  %v813_v26 = vpack.c.bf16 %v807_v23, %v806_v11 }
 0x381   :  { %v780_v27 = vsel %vm748_vm13, %v722_v45, %v3799_v24  ;;  %v3800_v28 = vadd.f32 -1.0, %v4857_v25 }
 0x382   :  { %4493 = vmatprep.subr.bf16.mxu1 %v813_v26  ;;  %v794_v29 = vmul.f32 %v5427_v48, %v780_v27 }
 0x383   :  { %v781_v32 = vsel %vm749_vm14, %v725_v51, %v3800_v28  ;;  %4494 = vmatpush3.bf16.msra.mxu1 %v813_v26 }
 0x384   :  { %v795_v33 = vmul.f32 %v5427_v48, %v781_v32  ;;  %v808_v35 = vadd.f32 %v5433_v54, %v794_v29 }
 0x386   :  { %v4859_v34 = vpop.eup %4858  ;;  %v809_v37 = vadd.f32 %v5433_v54, %v795_v33 }
 0x387   :  { %v3801_v38 = vadd.f32 -1.0, %v4859_v34 }
 0x388   :  { %v4861_v39 = vpop.eup %4860  ;;  %v814_v40 = vpack.c.bf16 %v809_v37, %v808_v35 }
 0x389   :  { %v782_v41 = vsel %vm750_vm15, %v730_v4, %v3801_v38  ;;  %v3802_v42 = vadd.f32 -1.0, %v4861_v39  ;;  %v4715_v4 = vld [vmem:[#allocation7 + $0x110] sm:$0xff]  }
 0x38a   :  { %4495 = vmatprep.subr.bf16.mxu1 %v814_v40  ;;  %v796_v43 = vmul.f32 %v5427_v48, %v782_v41 }
 0x38b   :  { %v783_v44 = vsel %vm751_vm1, %v733_v10, %v3802_v42  ;;  %4496 = vmatpush3.bf16.msra.mxu1 %v814_v40  ;;  %v4721_v10 = vld [vmem:[#allocation7 + $0x128] sm:$0xff]  }
 0x38c   :  { %v797_v45 = vmul.f32 %v5427_v48, %v783_v44  ;;  %v810_v46 = vadd.f32 %v5433_v54, %v796_v43  ;;  %v4708_v48 = vld [vmem:[#allocation7 + $0xf8] sm:$0xff]  }
 0x38d   :  { %4136 = vmatprep.subr.bf16.mxu0 %v4708_v48 }
 0x38e   :  { %v811_v47 = vadd.f32 %v5433_v54, %v797_v45  ;;  %4137 = vmatpush3.bf16.msra.mxu0 %v4709_v50 }
 0x38f   :  { %4170 = vmatprep.subr.bf16.mxu0 %v4710_v63 }
 0x390   :  { %v815_v49 = vpack.c.bf16 %v811_v47, %v810_v46 }
 0x392   :  { %4497 = vmatprep.subr.bf16.mxu1 %v815_v49 }
 0x393   :  { %4498 = vmatpush3.bf16.msra.mxu1 %v815_v49 }
 0x396   :  { %4500 = vmatmul.mubr.msk.bf16.vlgmr.msra.gmra.mrb[24].mxu1 %vm487_vm0, %v5399_v30 }
 0x397   :  { %4503 = vmatprep.mubr.msk.bf16.mxu1 %vm487_vm0, %v5401_v31 }
 0x39e   :  { %4504 = vmatmul.mubr.msk.bf16.gmra.mrb[28].mxu1 %vm487_vm0, %v5407_v36 }
 0x39f   :  { %4515 = vmatprep.mubr.msk.bf16.mxu1 %vm487_vm0, %v5385_v12 }
 0x469   :  { %v4501_v51 = vpop.f32.mrb[24].mxu1 }
 0x46a   :  { %v889_v52 = vpop.f32.mrb[25].mxu1 }
 0x46b   :  { %v4502_v53 = vpop.f32.mrb[26].mxu1 }
 0x46c   :  { %v921_v54 = vpack.c.bf16 %v4502_v53, %v4501_v51  ;;  %v892_v55 = vpop.f32.mrb[27].mxu1  ;;  %v5474_v51 = vld [vmem:[%s6015_s9 + $0x1] ss:$0 sm:$0xff] }
 0x46d   :  { %v920_v56 = vpack.c.bf16 %v892_v55, %v889_v52 }
 0x46f   :  { %1059 = vmatmul.mubr.bf16.vlgmr.msra.gmra.mrb[8].mxu0 %v920_v56 }
 0x470   :  { %1066 = vmatprep.mubr.bf16.mxu0 %v813_v26  ;;  %4171 = vmatpush3.bf16.msra.mxu0 %v4711_v0 }
 0x471   :  { %v4505_v57 = vpop.f32.mrb[28].mxu1  ;;  %4172 = vmatprep.subr.bf16.mxu0 %v4712_v1 }
 0x472   :  { %v905_v58 = vpop.f32.mrb[29].mxu1 }
 0x473   :  { %v4506_v59 = vpop.f32.mrb[30].mxu1 }
 0x474   :  { %v923_v60 = vpack.c.bf16 %v4506_v59, %v4505_v57  ;;  %v908_v61 = vpop.f32.mrb[31].mxu1  ;;  %4173 = vmatpush3.bf16.msra.mxu0 %v4713_v2  ;;  %v5480_v57 = vld [vmem:[%s6016_s10 + $0x1] ss:$0 sm:$0xff] }
 0x475   :  { %v922_v62 = vpack.c.bf16 %v908_v61, %v905_v58  ;;  %4174 = vmatprep.subr.bf16.mxu0 %v4714_v3 }
 0x477   :  { %1067 = vmatmul.mubr.bf16.gmra.mrb[12].mxu0 %v921_v54 }
 0x478   :  { %1074 = vmatprep.mubr.bf16.mxu0 %v814_v40  ;;  %4175 = vmatpush3.bf16.msra.mxu0 %v4715_v4 }
 0x479   :  { %4176 = vmatprep.subr.bf16.mxu0 %v4716_v5 }
 0x47c   :  { %4177 = vmatpush3.bf16.msra.mxu0 %v4717_v6 }
 0x47d   :  { %4178 = vmatprep.subr.bf16.mxu0 %v4718_v7 }
 0x47f   :  { %1075 = vmatmul.mubr.bf16.gmra.mrb[16].mxu0 %v922_v62 }
 0x480   :  { %1082 = vmatprep.mubr.bf16.mxu0 %v815_v49  ;;  %4179 = vmatpush3.bf16.msra.mxu0 %v4719_v8 }
 0x481   :  { %4180 = vmatprep.subr.bf16.mxu0 %v4720_v9 }
 0x484   :  { %4181 = vmatpush3.bf16.msra.mxu0 %v4721_v10 }
 0x485   :  { %4182 = vmatprep.subr.bf16.mxu0 %v4722_v13 }
 0x487   :  { %1083 = vmatmul.mubr.bf16.gmra.mrb[20].mxu0 %v923_v60 }
 0x488   :  { %4183 = vmatpush3.bf16.msra.mxu0 %v4723_v14 }
 0x542   :  { %v4138_v15 = vpop.f32.mrb[8].mxu0 }
 0x543   :  { %v4139_v17 = vpop.f32.mrb[9].mxu0 }
 0x544   :  { %v4140_v18 = vadd.f32 %v4139_v17, %v4138_v15  ;;  %v4141_v19 = vpop.f32.mrb[10].mxu0 }
 0x545   :  { %v4142_v20 = vpop.f32.mrb[11].mxu0 }
 0x546   :  { %v1061_v21 = vadd.f32 %v4140_v18, %v5464_v16  ;;  %v4143_v22 = vadd.f32 %v4142_v20, %v4141_v19 }
 0x548   :  { %v1091_v11 = vmin.f32 %v1061_v21, 0.0  ;;  %v1064_v23 = vadd.f32 %v4143_v22, %v5464_v16  ;;  %vm1099_vm2 = vcmp.gt.f32.partialorder %v1061_v21, 0.0 }
 0x54a   :  { %v1107_v24 = vmul.f32 1.442695, %v1091_v11  ;;  %v1092_v25 = vmin.f32 %v1064_v23, 0.0  ;;  %v4144_v26 = vpop.f32.mrb[12].mxu0  ;;  %vm1100_vm3 = vcmp.gt.f32.partialorder %v1064_v23, 0.0 }
 0x54b   :  { %v4145_v27 = vpop.f32.mrb[13].mxu0 }
 0x54c   :  { %4862 = vpow2.f32 %v1107_v24  ;;  %v1109_v28 = vmul.f32 1.442695, %v1092_v25  ;;  %v4146_v29 = vadd.f32 %v4145_v27, %v4144_v26  ;;  %v4147_v32 = vpop.f32.mrb[14].mxu0 }
 0x54d   :  { %v4148_v33 = vpop.f32.mrb[15].mxu0 }
 0x54e   :  { %4864 = vpow2.f32 %v1109_v28  ;;  %v1069_v34 = vadd.f32 %v4146_v29, %v5464_v16  ;;  %v4149_v35 = vadd.f32 %v4148_v33, %v4147_v32 }
 0x550   :  { %v1093_v37 = vmin.f32 %v1069_v34, 0.0  ;;  %v1072_v38 = vadd.f32 %v4149_v35, %v5464_v16  ;;  %vm1101_vm4 = vcmp.gt.f32.partialorder %v1069_v34, 0.0 }
 0x552   :  { %v1111_v39 = vmul.f32 1.442695, %v1093_v37  ;;  %v1094_v40 = vmin.f32 %v1072_v38, 0.0  ;;  %v4150_v41 = vpop.f32.mrb[16].mxu0  ;;  %vm1102_vm5 = vcmp.gt.f32.partialorder %v1072_v38, 0.0 }
 0x553   :  { %v4151_v42 = vpop.f32.mrb[17].mxu0 }
 0x554   :  { %4866 = vpow2.f32 %v1111_v39  ;;  %v1113_v43 = vmul.f32 1.442695, %v1094_v40  ;;  %v4152_v44 = vadd.f32 %v4151_v42, %v4150_v41  ;;  %v4153_v45 = vpop.f32.mrb[18].mxu0 }
 0x555   :  { %v4154_v46 = vpop.f32.mrb[19].mxu0 }
 0x556   :  { %v4863_v47 = vpop.eup %4862  ;;  %4868 = vpow2.f32 %v1113_v43  ;;  %v1077_v49 = vadd.f32 %v4152_v44, %v5464_v16  ;;  %v4155_v48 = vadd.f32 %v4154_v46, %v4153_v45 }
 0x557   :  { %v3829_v50 = vadd.f32 -1.0, %v4863_v47 }
 0x558   :  { %v4865_v52 = vpop.eup %4864  ;;  %v1095_v53 = vmin.f32 %v1077_v49, 0.0  ;;  %v1080_v54 = vadd.f32 %v4155_v48, %v5464_v16  ;;  %vm1103_vm6 = vcmp.gt.f32.partialorder %v1077_v49, 0.0 }
 0x559   :  { %v1131_v55 = vsel %vm1099_vm2, %v1061_v21, %v3829_v50  ;;  %v3830_v56 = vadd.f32 -1.0, %v4865_v52 }
 0x55a   :  { %v1115_v58 = vmul.f32 1.442695, %v1095_v53  ;;  %v1096_v59 = vmin.f32 %v1080_v54, 0.0  ;;  %v4156_v60 = vpop.f32.mrb[20].mxu0  ;;  %v1145_v61 = vmul.f32 %v5474_v51, %v1131_v55  ;;  %vm1104_vm7 = vcmp.gt.f32.partialorder %v1080_v54, 0.0  ;;  %v4725_v53 = vld [vmem:[#allocation7 + $0x138] sm:$0xff]  }
 0x55b   :  { %v1132_v62 = vsel %vm1100_vm3, %v1064_v23, %v3830_v56  ;;  %v4157_v63 = vpop.f32.mrb[21].mxu0  ;;  %v5145_v55 = vmov -1e+30  }
 0x55c   :  { %4870 = vpow2.f32 %v1115_v58  ;;  %v1117_v0 = vmul.f32 1.442695, %v1096_v59  ;;  %v4158_v1 = vadd.f32 %v4157_v63, %v4156_v60  ;;  %v4159_v2 = vpop.f32.mrb[22].mxu0  ;;  %v1146_v3 = vmul.f32 %v5474_v51, %v1132_v62  ;;  %v170_v58 = vld [vmem:[%s6008_s2 + $0x20] sm:$0xff]  ;;  %v171_v59 = vld [vmem:[%s6008_s2 + $0x28] sm:$0xff]  ;;  %v172_v62 = vld [vmem:[%s6008_s2 + $0x30] sm:$0xff] }
 0x55d   :  { %v4160_v4 = vpop.f32.mrb[23].mxu0  ;;  %v1159_v5 = vadd.f32 %v5480_v57, %v1145_v61  ;;  %vm178_vm14 = vcmp.gt.f32.partialorder %v170_v58, 0.0  ;;  %vm179_vm15 = vcmp.gt.f32.partialorder %v171_v59, 0.0  ;;  %v173_v63 = vld [vmem:[%s6008_s2 + $0x38] sm:$0xff]  ;;  %vm180_vm1 = vcmp.gt.f32.partialorder %v172_v62, 0.0 }
 0x55e   :  { %v4867_v6 = vpop.eup %4866  ;;  %4872 = vpow2.f32 %v1117_v0  ;;  %v1085_v7 = vadd.f32 %v4158_v1, %v5464_v16  ;;  %v4161_v8 = vadd.f32 %v4160_v4, %v4159_v2  ;;  %v1160_v9 = vadd.f32 %v5480_v57, %v1146_v3  ;;  %v5577_v58 = vld [vmem:[%s6016_s10 + $0x2] ss:$0 sm:$0xff] }
 0x55f   :  { %v3831_v10 = vadd.f32 -1.0, %v4867_v6  ;;  %v186_v0 = vsel %vm178_vm14, 0.0, %v5145_v55  ;;  %v187_v1 = vsel %vm179_vm15, 0.0, %v5145_v55  ;;  %vm181_vm2 = vcmp.gt.f32.partialorder %v173_v63, 0.0 }
 0x560   :  { %v4869_v13 = vpop.eup %4868  ;;  %v1097_v14 = vmin.f32 %v1085_v7, 0.0  ;;  %v1088_v15 = vadd.f32 %v4161_v8, %v5464_v16  ;;  %v1167_v17 = vpack.c.bf16 %v1160_v9, %v1159_v5  ;;  %vm1105_vm8 = vcmp.gt.f32.partialorder %v1085_v7, 0.0 }
 0x561   :  { %v1133_v18 = vsel %vm1101_vm4, %v1069_v34, %v3831_v10  ;;  %v3832_v19 = vadd.f32 -1.0, %v4869_v13  ;;  %v188_v2 = vsel %vm180_vm1, 0.0, %v5145_v55  ;;  %v189_v3 = vsel %vm181_vm2, 0.0, %v5145_v55 }
 0x562   :  { %v1119_v20 = vmul.f32 1.442695, %v1097_v14  ;;  %v1098_v21 = vmin.f32 %v1088_v15, 0.0  ;;  %4507 = vmatprep.subr.bf16.mxu1 %v1167_v17  ;;  %1413 = vmatprep.mubr.bf16.mxu0 %v1167_v17  ;;  %v1147_v22 = vmul.f32 %v5474_v51, %v1133_v18  ;;  %vm1106_vm9 = vcmp.gt.f32.partialorder %v1088_v15, 0.0 }
 0x563   :  { %v1134_v11 = vsel %vm1102_vm5, %v1072_v38, %v3832_v19  ;;  %4508 = vmatpush3.bf16.msra.mxu1 %v1167_v17  ;;  %v5547_v19 = vld [vmem:[#allocation4] sm:$0xff]   ;;  %vm3164_vm14 = vcmask 1044484   ;;  %vm3166_vm15 = vcmask 1045509   ;;  %vm3168_vm1 = vcmask 1046534  }
 0x564   :  { %4874 = vpow2.f32 %v1119_v20  ;;  %v1121_v23 = vmul.f32 1.442695, %v1098_v21  ;;  %v1148_v24 = vmul.f32 %v5474_v51, %v1134_v11  ;;  %v1161_v16 = vadd.f32 %v5480_v57, %v1147_v22  ;;  %v5554_v21 = vld [vmem:[%s6014_s8 + $0x2] ss:$0 sm:$0xff] }
 0x565   :  { %vm3170_vm2 = vcmask 1047559  }
 0x566   :  { %v4871_v25 = vpop.eup %4870  ;;  %4876 = vpow2.f32 %v1121_v23  ;;  %v1162_v26 = vadd.f32 %v5480_v57, %v1148_v24 }
 0x567   :  { %v3833_v27 = vadd.f32 -1.0, %v4871_v25 }
 0x568   :  { %v4873_v28 = vpop.eup %4872  ;;  %v5492_v29 = vpack.c.bf16 %v1162_v26, %v1161_v16 }
 0x569   :  { %v1135_v32 = vsel %vm1103_vm6, %v1077_v49, %v3833_v27  ;;  %v3834_v33 = vadd.f32 -1.0, %v4873_v28 }
 0x56a   :  { %4509 = vmatprep.subr.bf16.mxu1 %v5492_v29  ;;  %v1149_v34 = vmul.f32 %v5474_v51, %v1135_v32 }
 0x56b   :  { %v1136_v35 = vsel %vm1104_vm7, %v1080_v54, %v3834_v33  ;;  %4510 = vmatpush3.bf16.msra.mxu1 %v5492_v29  ;;  %v166_v54 = vld [vmem:[%s6008_s2] sm:$0xff] }
 0x56c   :  { %v1150_v37 = vmul.f32 %v5474_v51, %v1136_v35  ;;  %v1163_v39 = vadd.f32 %v5480_v57, %v1149_v34  ;;  %vm174_vm10 = vcmp.gt.f32.partialorder %v166_v54, 0.0 }
 0x56d   :  { %v182_v56 = vsel %vm174_vm10, 0.0, %v5145_v55  ;;  %vm3160_vm10 = vcmask 1042434  }
 0x56e   :  { %v4875_v38 = vpop.eup %4874  ;;  %v1164_v40 = vadd.f32 %v5480_v57, %v1150_v37 }
 0x56f   :  { %v3835_v41 = vadd.f32 -1.0, %v4875_v38 }
 0x570   :  { %v4877_v42 = vpop.eup %4876  ;;  %v5500_v43 = vpack.c.bf16 %v1164_v40, %v1163_v39 }
 0x571   :  { %v1137_v44 = vsel %vm1105_vm8, %v1085_v7, %v3835_v41  ;;  %v3836_v45 = vadd.f32 -1.0, %v4877_v42 }
 0x572   :  { %4511 = vmatprep.subr.bf16.mxu1 %v5500_v43  ;;  %v1151_v46 = vmul.f32 %v5474_v51, %v1137_v44 }
 0x573   :  { %v1138_v47 = vsel %vm1106_vm9, %v1088_v15, %v3836_v45  ;;  %4512 = vmatpush3.bf16.msra.mxu1 %v5500_v43  ;;  %vm3158_vm9 = vcmask 1041409  }
 0x574   :  { %v1152_v49 = vmul.f32 %v5474_v51, %v1138_v47  ;;  %v1165_v48 = vadd.f32 %v5480_v57, %v1151_v46  ;;  %v4724_v51 = vld [vmem:[#allocation7 + $0x178] sm:$0xff]  }
 0x575   :  { %4184 = vmatprep.subr.bf16.mxu0 %v4724_v51 }
 0x576   :  { %v1166_v50 = vadd.f32 %v5480_v57, %v1152_v49  ;;  %4185 = vmatpush3.bf16.msra.mxu0 %v4725_v53 }
 0x578   :  { %v5508_v52 = vpack.c.bf16 %v1166_v50, %v1165_v48 }
 0x57a   :  { %4513 = vmatprep.subr.bf16.mxu1 %v5508_v52 }
 0x57b   :  { %4514 = vmatpush3.bf16.msra.mxu1 %v5508_v52 }
 0x57e   :  { %4516 = vmatmul.mubr.msk.bf16.vlgmr.msra.gmra.mrb[32].mxu1 %vm487_vm0, %v5399_v30  ;;  %v167_v30 = vld [vmem:[%s6008_s2 + $0x8] sm:$0xff] }
 0x57f   :  { %4519 = vmatprep.mubr.msk.bf16.mxu1 %vm487_vm0, %v5401_v31  ;;  %v168_v31 = vld [vmem:[%s6008_s2 + $0x10] sm:$0xff]  ;;  %vm175_vm11 = vcmp.gt.f32.partialorder %v167_v30, 0.0  ;;  %v5566_v30 = vld [vmem:[%s6015_s9 + $0x2] ss:$0 sm:$0xff] }
 0x580   :  { %vm176_vm12 = vcmp.gt.f32.partialorder %v168_v31, 0.0  ;;  %v183_v60 = vsel %vm175_vm11, 0.0, %v5145_v55 }
 0x581   :  { %v184_v57 = vsel %vm176_vm12, 0.0, %v5145_v55 }
 0x586   :  { %4520 = vmatmul.mubr.msk.bf16.gmra.mrb[36].mxu1 %vm487_vm0, %v5407_v36  ;;  %v5144_v36 = vmov 0  }
 0x587   :  { %4531 = vmatprep.mubr.msk.bf16.mxu1 %vm487_vm0, %v5385_v12  ;;  %4660 = vset.pattern.permute.xlu0 %v5144_v36  ;;  %v169_v12 = vld [vmem:[%s6008_s2 + $0x18] sm:$0xff] }
 0x588   :  { %4661 = vset.pattern.permute.xlu1 %v5144_v36  ;;  %vm177_vm13 = vcmp.gt.f32.partialorder %v169_v12, 0.0  ;;  %1528 = vperm.xlu0 %4660, %v182_v56  }
 0x589   :  { %1538 = vperm.xlu1 %4661, %v184_v57   ;;  %v185_v61 = vsel %vm177_vm13, 0.0, %v5145_v55  ;;  %vm3162_vm13 = vcmask 1043459  }
 0x58c   :  { %1533 = vperm.xlu0 %4660, %v183_v60  }
 0x58d   :  { %1543 = vperm.xlu1 %4661, %v185_v61  }
 0x590   :  { %1548 = vperm.xlu0 %4660, %v186_v0  }
 0x591   :  { %1553 = vperm.xlu1 %4661, %v187_v1  }
 0x594   :  { %1558 = vperm.xlu0 %4660, %v188_v2  }
 0x595   :  { %1563 = vperm.xlu1 %4661, %v189_v3  }
 0x607   :  { %v5572_v55 = vpop.permute.xlu0 %1528 }
 0x651   :  { %v4517_v4 = vpop.f32.mrb[32].mxu1 }
 0x652   :  { %v1244_v5 = vpop.f32.mrb[33].mxu1 }
 0x653   :  { %v4518_v6 = vpop.f32.mrb[34].mxu1 }
 0x654   :  { %v1276_v7 = vpack.c.bf16 %v4518_v6, %v4517_v4  ;;  %v1247_v8 = vpop.f32.mrb[35].mxu1 }
 0x655   :  { %v1275_v9 = vpack.c.bf16 %v1247_v8, %v1244_v5 }
 0x657   :  { %1414 = vmatmul.mubr.bf16.vlgmr.msra.gmra.mrb[24].mxu0 %v1275_v9 }
 0x658   :  { %1421 = vmatprep.mubr.bf16.mxu0 %v5492_v29 }
 0x659   :  { %v4521_v10 = vpop.f32.mrb[36].mxu1 }
 0x65a   :  { %v1260_v13 = vpop.f32.mrb[37].mxu1 }
 0x65b   :  { %v4522_v14 = vpop.f32.mrb[38].mxu1 }
 0x65c   :  { %v1278_v15 = vpack.c.bf16 %v4522_v14, %v4521_v10  ;;  %v1263_v17 = vpop.f32.mrb[39].mxu1 }
 0x65d   :  { %v1277_v18 = vpack.c.bf16 %v1263_v17, %v1260_v13  ;;  %v5587_v13 = vpop.permute.xlu0 %1533  ;;  %v5590_v17 = vpop.permute.xlu1 %1538 }
 0x65f   :  { %1422 = vmatmul.mubr.bf16.gmra.mrb[28].mxu0 %v1276_v7 }
 0x660   :  { %1429 = vmatprep.mubr.bf16.mxu0 %v5500_v43 }
 0x667   :  { %1430 = vmatmul.mubr.bf16.gmra.mrb[32].mxu0 %v1277_v18 }
 0x668   :  { %1437 = vmatprep.mubr.bf16.mxu0 %v5508_v52 }
 0x66f   :  { %1438 = vmatmul.mubr.bf16.gmra.mrb[36].mxu0 %v1278_v15 }
 0x670   :  { %4547 = vmatprep.mubr.msk.bf16.mxu0 %vm487_vm0, %v5547_v19 }
 0x72a   :  { %v4186_v20 = vpop.f32.mrb[24].mxu0 }
 0x72b   :  { %v4187_v22 = vpop.f32.mrb[25].mxu0 }
 0x72c   :  { %v4188_v11 = vadd.f32 %v4187_v22, %v4186_v20  ;;  %v4189_v23 = vpop.f32.mrb[26].mxu0 }
 0x72d   :  { %v4190_v24 = vpop.f32.mrb[27].mxu0 }
 0x72e   :  { %v1416_v25 = vadd.f32 %v4188_v11, %v5554_v21  ;;  %v4191_v16 = vadd.f32 %v4190_v24, %v4189_v23 }
 0x730   :  { %v1446_v26 = vmin.f32 %v1416_v25, 0.0  ;;  %v1419_v27 = vadd.f32 %v4191_v16, %v5554_v21  ;;  %vm1454_vm3 = vcmp.gt.f32.partialorder %v1416_v25, 0.0 }
 0x732   :  { %v1462_v28 = vmul.f32 1.442695, %v1446_v26  ;;  %v1447_v29 = vmin.f32 %v1419_v27, 0.0  ;;  %v4192_v32 = vpop.f32.mrb[28].mxu0  ;;  %vm1455_vm4 = vcmp.gt.f32.partialorder %v1419_v27, 0.0 }
 0x733   :  { %v4193_v33 = vpop.f32.mrb[29].mxu0 }
 0x734   :  { %4878 = vpow2.f32 %v1462_v28  ;;  %v1464_v34 = vmul.f32 1.442695, %v1447_v29  ;;  %v4194_v35 = vadd.f32 %v4193_v33, %v4192_v32  ;;  %v4195_v37 = vpop.f32.mrb[30].mxu0 }
 0x735   :  { %v4196_v38 = vpop.f32.mrb[31].mxu0 }
 0x736   :  { %4880 = vpow2.f32 %v1464_v34  ;;  %v1424_v39 = vadd.f32 %v4194_v35, %v5554_v21  ;;  %v4197_v40 = vadd.f32 %v4196_v38, %v4195_v37 }
 0x738   :  { %v1448_v41 = vmin.f32 %v1424_v39, 0.0  ;;  %v1427_v42 = vadd.f32 %v4197_v40, %v5554_v21  ;;  %vm1456_vm5 = vcmp.gt.f32.partialorder %v1424_v39, 0.0 }
 0x73a   :  { %v1466_v43 = vmul.f32 1.442695, %v1448_v41  ;;  %v1449_v44 = vmin.f32 %v1427_v42, 0.0  ;;  %v4198_v45 = vpop.f32.mrb[32].mxu0  ;;  %vm1457_vm6 = vcmp.gt.f32.partialorder %v1427_v42, 0.0 }
 0x73b   :  { %v4199_v46 = vpop.f32.mrb[33].mxu0 }
 0x73c   :  { %4882 = vpow2.f32 %v1466_v43  ;;  %v1468_v47 = vmul.f32 1.442695, %v1449_v44  ;;  %v4200_v49 = vadd.f32 %v4199_v46, %v4198_v45  ;;  %v4201_v48 = vpop.f32.mrb[34].mxu0 }
 0x73d   :  { %v4202_v50 = vpop.f32.mrb[35].mxu0 }
 0x73e   :  { %v4879_v52 = vpop.eup %4878  ;;  %4884 = vpow2.f32 %v1468_v47  ;;  %v5561_v51 = vadd.f32 %v4200_v49, %v5554_v21  ;;  %v4203_v53 = vadd.f32 %v4202_v50, %v4201_v48 }
 0x73f   :  { %v3863_v54 = vadd.f32 -1.0, %v4879_v52 }
 0x740   :  { %v4881_v31 = vpop.eup %4880  ;;  %v1450_v36 = vmin.f32 %v5561_v51, 0.0  ;;  %v5570_v12 = vadd.f32 %v4203_v53, %v5554_v21  ;;  %vm1458_vm7 = vcmp.gt.f32.partialorder %v5561_v51, 0.0 }
 0x741   :  { %v1486_v56 = vsel %vm1454_vm3, %v1416_v25, %v3863_v54  ;;  %v3864_v57 = vadd.f32 -1.0, %v4881_v31 }
 0x742   :  { %v1470_v59 = vmul.f32 1.442695, %v1450_v36  ;;  %v1451_v60 = vmin.f32 %v5570_v12, 0.0  ;;  %v4204_v61 = vpop.f32.mrb[36].mxu0  ;;  %v1500_v62 = vmul.f32 %v5566_v30, %v1486_v56  ;;  %vm1459_vm8 = vcmp.gt.f32.partialorder %v5570_v12, 0.0 }
 0x743   :  { %v1487_v63 = vsel %vm1455_vm4, %v1419_v27, %v3864_v57  ;;  %v4205_v0 = vpop.f32.mrb[37].mxu0 }
 0x744   :  { %4886 = vpow2.f32 %v1470_v59  ;;  %v1472_v1 = vmul.f32 1.442695, %v1451_v60  ;;  %v1514_v2 = vadd.f32 %v5577_v58, %v1500_v62  ;;  %v4206_v3 = vadd.f32 %v4205_v0, %v4204_v61  ;;  %v4207_v4 = vpop.f32.mrb[38].mxu0  ;;  %v5619_v60 = vpop.permute.xlu0 %1548 }
 0x745   :  { %v4208_v5 = vpop.f32.mrb[39].mxu0  ;;  %v1501_v6 = vmul.f32 %v5566_v30, %v1487_v63 }
 0x746   :  { %v4883_v7 = vpop.eup %4882  ;;  %4888 = vpow2.f32 %v1472_v1  ;;  %v1566_v8 = vadd.f32 %v5572_v55, %v1514_v2  ;;  %v5585_v9 = vadd.f32 %v4206_v3, %v5554_v21  ;;  %v4209_v10 = vadd.f32 %v4208_v5, %v4207_v4 }
 0x747   :  { %v3865_v14 = vadd.f32 -1.0, %v4883_v7  ;;  %v1515_v15 = vadd.f32 %v5577_v58, %v1501_v6 }
 0x748   :  { %v4885_v18 = vpop.eup %4884  ;;  %v1574_v20 = vrot.slane %v1566_v8, 4  ;;  %v1452_v22 = vmin.f32 %v5585_v9, 0.0  ;;  %v5594_v11 = vadd.f32 %v4209_v10, %v5554_v21  ;;  %vm1460_vm11 = vcmp.gt.f32.partialorder %v5585_v9, 0.0 }
 0x749   :  { %v1488_v23 = vsel %vm1456_vm5, %v1424_v39, %v3865_v14  ;;  %v3866_v24 = vadd.f32 -1.0, %v4885_v18  ;;  %v1567_v25 = vadd.f32 %v5587_v13, %v1515_v15  ;;  %v5597_v16 = vpack.c.bf16 %v1515_v15, %v1514_v2  ;;  %v5605_v39 = vpop.permute.xlu1 %1543 }
 0x74a   :  { %v1575_v26 = vmax.f32 %v1566_v8, %v1574_v20  ;;  %v1474_v27 = vmul.f32 1.442695, %v1452_v22  ;;  %v1453_v28 = vmin.f32 %v5594_v11, 0.0  ;;  %v1502_v33 = vmul.f32 %v5566_v30, %v1488_v23 }
 0x74b   :  { %v1489_v29 = vsel %vm1457_vm6, %v1427_v42, %v3866_v24  ;;  %v1580_v32 = vrot.slane %v1567_v25, 4  ;;  %4523 = vmatprep.subr.bf16.mxu1 %v5597_v16  ;;  %vm1461_vm12 = vcmp.gt.f32.partialorder %v5594_v11, 0.0 }
 0x74c   :  { %v1576_v34 = vrot.slane %v1575_v26, 2  ;;  %4890 = vpow2.f32 %v1474_v27  ;;  %v1476_v21 = vmul.f32 1.442695, %v1453_v28  ;;  %4524 = vmatpush3.bf16.msra.mxu1 %v5597_v16  ;;  %v1503_v35 = vmul.f32 %v5566_v30, %v1489_v29 }
 0x74d   :  { %v1581_v37 = vmax.f32 %v1567_v25, %v1580_v32  ;;  %v1516_v38 = vadd.f32 %v5577_v58, %v1502_v33  ;;  %v5623_v2 = vpop.permute.xlu1 %1553  ;;  %v5638_v33 = vpop.permute.xlu0 %1558 }
 0x74e   :  { %v4887_v40 = vpop.eup %4886  ;;  %v1577_v41 = vmax.f32 %v1575_v26, %v1576_v34  ;;  %4892 = vpow2.f32 %v1476_v21  ;;  %v1517_v42 = vadd.f32 %v5577_v58, %v1503_v35 }
 0x74f   :  { %v3867_v43 = vadd.f32 -1.0, %v4887_v40  ;;  %v1582_v44 = vrot.slane %v1581_v37, 2  ;;  %v1568_v45 = vadd.f32 %v5590_v17, %v1516_v38 }
 0x750   :  { %v4889_v46 = vpop.eup %4888  ;;  %v1578_v47 = vrot.slane %v1577_v41, 1  ;;  %v1569_v49 = vadd.f32 %v5605_v39, %v1517_v42  ;;  %v5611_v48 = vpack.c.bf16 %v1517_v42, %v1516_v38 }
 0x751   :  { %v1490_v50 = vsel %vm1458_vm7, %v5561_v51, %v3867_v43  ;;  %v3868_v52 = vadd.f32 -1.0, %v4889_v46  ;;  %v1583_v53 = vmax.f32 %v1581_v37, %v1582_v44  ;;  %v1586_v54 = vrot.slane %v1568_v45, 4  ;;  %v5645_v43 = vpop.permute.xlu1 %1563 }
 0x752   :  { %v1592_v31 = vrot.slane %v1569_v49, 4  ;;  %4525 = vmatprep.subr.bf16.mxu1 %v5611_v48  ;;  %v1504_v36 = vmul.f32 %v5566_v30, %v1490_v50  ;;  %v1579_v63 = vmax.f32 %v1577_v41, %v1578_v47 }
 0x753   :  { %v1491_v56 = vsel %vm1459_vm8, %v5570_v12, %v3868_v52  ;;  %v1584_v57 = vrot.slane %v1583_v53, 1  ;;  %v1587_v59 = vmax.f32 %v1568_v45, %v1586_v54  ;;  %4526 = vmatpush3.bf16.msra.mxu1 %v5611_v48  ;;  %v4726_v52 = vld [vmem:[#allocation7 + $0x1c0] sm:$0xff]  }
 0x754   :  { %v1593_v51 = vmax.f32 %v1569_v49, %v1592_v31  ;;  %v1518_v61 = vadd.f32 %v5577_v58, %v1504_v36  ;;  %v1505_v62 = vmul.f32 %v5566_v30, %v1491_v56 }
 0x755   :  { %v1585_v0 = vmax.f32 %v1583_v53, %v1584_v57  ;;  %v1588_v1 = vrot.slane %v1587_v59, 2 }
 0x756   :  { %v4891_v3 = vpop.eup %4890  ;;  %v1594_v12 = vrot.slane %v1593_v51, 2  ;;  %v1570_v4 = vadd.f32 %v5619_v60, %v1518_v61  ;;  %v1519_v5 = vadd.f32 %v5577_v58, %v1505_v62 }
 0x757   :  { %v3869_v6 = vadd.f32 -1.0, %v4891_v3  ;;  %v3159_v7 = vsel %vm3158_vm9, %v1585_v0, %v1579_v63  ;;  %v1589_v8 = vmax.f32 %v1587_v59, %v1588_v1  ;;  %v5655_v0 = vld [vmem:[#allocation4 + $0x8] sm:$0xff]   ;;  %v5659_v3 = vld [vmem:[#allocation4 + $0x10] sm:$0xff]  }
 0x758   :  { %v4893_v10 = vpop.eup %4892  ;;  %v1595_v14 = vmax.f32 %v1593_v51, %v1594_v12  ;;  %v1598_v15 = vrot.slane %v1570_v4, 4  ;;  %v1571_v18 = vadd.f32 %v5623_v2, %v1519_v5  ;;  %v5630_v20 = vpack.c.bf16 %v1519_v5, %v1518_v61  ;;  %v4728_v51 = vld [vmem:[#allocation7 + $0x1c8] sm:$0xff]   ;;  %v4730_v5 = vld [vmem:[#allocation7 + $0x1d0] sm:$0xff]  }
 0x759   :  { %v1492_v22 = vsel %vm1460_vm11, %v5585_v9, %v3869_v6  ;;  %v3870_v23 = vadd.f32 -1.0, %v4893_v10  ;;  %v1590_v24 = vrot.slane %v1589_v8, 1  ;;  %v4729_v12 = vld [vmem:[#allocation7 + $0x188] sm:$0xff]  }
 0x75a   :  { %v1596_v25 = vrot.slane %v1595_v14, 1  ;;  %v1599_v26 = vmax.f32 %v1570_v4, %v1598_v15  ;;  %v1604_v27 = vrot.slane %v1571_v18, 4  ;;  %4527 = vmatprep.subr.bf16.mxu1 %v5630_v20  ;;  %v1506_v28 = vmul.f32 %v5566_v30, %v1492_v22  ;;  %v4732_v15 = vld [vmem:[#allocation7 + $0x1d8] sm:$0xff]  }
 0x75b   :  { %v1493_v29 = vsel %vm1461_vm12, %v5594_v11, %v3870_v23  ;;  %v1591_v32 = vmax.f32 %v1589_v8, %v1590_v24  ;;  %4528 = vmatpush3.bf16.msra.mxu1 %v5630_v20  ;;  %v4731_v8 = vld [vmem:[#allocation7 + $0x190] sm:$0xff]   ;;  %v4733_v23 = vld [vmem:[#allocation7 + $0x198] sm:$0xff]   ;;  %v4734_v24 = vld [vmem:[#allocation7 + $0x1e0] sm:$0xff]  }
 0x75c   :  { %v1597_v9 = vmax.f32 %v1595_v14, %v1596_v25  ;;  %v1600_v34 = vrot.slane %v1599_v26, 2  ;;  %v1605_v21 = vmax.f32 %v1571_v18, %v1604_v27  ;;  %v1520_v35 = vadd.f32 %v5577_v58, %v1506_v28  ;;  %v5664_v18 = vld [vmem:[#allocation4 + $0x18] sm:$0xff]   ;;  %v4735_v25 = vld [vmem:[#allocation7 + $0x1a0] sm:$0xff]   ;;  %v4737_v27 = vld [vmem:[#allocation7 + $0x1a8] sm:$0xff]  }
 0x75d   :  { %v3161_v37 = vsel %vm3160_vm10, %v1591_v32, %v3159_v7  ;;  %v1507_v38 = vmul.f32 %v5566_v30, %v1493_v29  ;;  %v4738_v28 = vld [vmem:[#allocation7 + $0x1f0] sm:$0xff]   ;;  %v4740_v32 = vld [vmem:[#allocation7 + $0x1f8] sm:$0xff]  }
 0x75e   :  { %v3163_v40 = vsel %vm3162_vm13, %v1597_v9, %v3161_v37  ;;  %v1601_v41 = vmax.f32 %v1599_v26, %v1600_v34  ;;  %v1606_v42 = vrot.slane %v1605_v21, 2  ;;  %v1572_v11 = vadd.f32 %v5638_v33, %v1520_v35  ;;  %v4736_v26 = vld [vmem:[#allocation7 + $0x1e8] sm:$0xff]   ;;  %v4739_v29 = vld [vmem:[#allocation7 + $0x1b0] sm:$0xff]   ;;  %v4741_v9 = vld [vmem:[#allocation7 + $0x1b8] sm:$0xff]  }
 0x75f   :  { %v1521_v44 = vadd.f32 %v5577_v58, %v1507_v38  ;;  %v4727_v58 = vld [vmem:[#allocation7 + $0x180] sm:$0xff]  }
 0x760   :  { %v1602_v45 = vrot.slane %v1601_v41, 1  ;;  %v1607_v46 = vmax.f32 %v1605_v21, %v1606_v42  ;;  %v1610_v47 = vrot.slane %v1572_v11, 4 }
 0x761   :  { %v1573_v49 = vadd.f32 %v5645_v43, %v1521_v44  ;;  %v5649_v50 = vpack.c.bf16 %v1521_v44, %v1520_v35 }
 0x762   :  { %v1603_v30 = vmax.f32 %v1601_v41, %v1602_v45  ;;  %v1608_v53 = vrot.slane %v1607_v46, 1  ;;  %v1611_v54 = vmax.f32 %v1572_v11, %v1610_v47  ;;  %v4743_v47 = vld [vmem:[#allocation7 + $0x200] sm:$0xff]  }
 0x763   :  { %v1616_v31 = vrot.slane %v1573_v49, 4  ;;  %4529 = vmatprep.subr.bf16.mxu1 %v5649_v50 }
 0x764   :  { %v1609_v36 = vmax.f32 %v1607_v46, %v1608_v53  ;;  %v1612_v56 = vrot.slane %v1611_v54, 2  ;;  %4530 = vmatpush3.bf16.msra.mxu1 %v5649_v50  ;;  %v3165_v57 = vsel %vm3164_vm14, %v1603_v30, %v3163_v40  ;;  %v4742_v46 = vld [vmem:[#allocation7 + $0x240] sm:$0xff]   ;;  %v4747_v30 = vld [vmem:[#allocation7 + $0x210] sm:$0xff]   ;;  %v4748_v53 = vld [vmem:[#allocation7 + $0x258] sm:$0xff]  }
 0x765   :  { %v1617_v59 = vmax.f32 %v1573_v49, %v1616_v31  ;;  %4218 = vmatprep.subr.bf16.mxu1 %v4726_v52  ;;  %v4744_v49 = vld [vmem:[#allocation7 + $0x248] sm:$0xff]   ;;  %v4751_v31 = vld [vmem:[#allocation7 + $0x220] sm:$0xff]  }
 0x766   :  { %v1613_v61 = vmax.f32 %v1611_v54, %v1612_v56  ;;  %v3167_v62 = vsel %vm3166_vm15, %v1609_v36, %v3165_v57  ;;  %v4745_v52 = vld [vmem:[#allocation7 + $0x208] sm:$0xff]   ;;  %v4749_v54 = vld [vmem:[#allocation7 + $0x218] sm:$0xff]   ;;  %v4754_v56 = vld [vmem:[#allocation7 + $0x270] sm:$0xff]  }
 0x767   :  { %v1618_v63 = vrot.slane %v1617_v59, 2  ;;  %4532 = vmatmul.mubr.msk.bf16.vlgmr.msra.gmra.mrb[40].mxu1 %vm487_vm0, %v5655_v0  ;;  %v4753_v36 = vld [vmem:[#allocation7 + $0x228] sm:$0xff]  }
 0x768   :  { %v1614_v1 = vrot.slane %v1613_v61, 1  ;;  %4535 = vmatprep.mubr.msk.bf16.mxu1 %vm487_vm0, %v5659_v3  ;;  %4219 = vmatpush3.bf16.msra.mxu1 %v4727_v58  ;;  %v4755_v58 = vld [vmem:[#allocation7 + $0x230] sm:$0xff]  }
 0x769   :  { %v1619_v4 = vmax.f32 %v1617_v59, %v1618_v63  ;;  %4220 = vmatprep.subr.bf16.mxu1 %v4728_v51  ;;  %v5678_v59 = vld [vmem:[%s6014_s8 + $0x3] ss:$0 sm:$0xff] }
 0x76a   :  { %v1615_v6 = vmax.f32 %v1613_v61, %v1614_v1 }
 0x76b   :  { %v1620_v7 = vrot.slane %v1619_v4, 1 }
 0x76c   :  { %4221 = vmatpush3.bf16.msra.mxu1 %v4729_v12  ;;  %v3169_v10 = vsel %vm3168_vm1, %v1615_v6, %v3167_v62 }
 0x76d   :  { %v1621_v14 = vmax.f32 %v1619_v4, %v1620_v7  ;;  %4222 = vmatprep.subr.bf16.mxu1 %v4730_v5 }
 0x76f   :  { %4536 = vmatmul.mubr.msk.bf16.gmra.mrb[44].mxu1 %vm487_vm0, %v5664_v18  ;;  %v5669_v22 = vsel %vm3170_vm2, %v1621_v14, %v3169_v10 }
 0x770   :  { %1864 = vmatprep.mubr.bf16.mxu1 %v5597_v16  ;;  %4223 = vmatpush3.bf16.msra.mxu1 %v4731_v8 }
 0x771   :  { %4224 = vmatprep.subr.bf16.mxu1 %v4732_v15 }
 0x774   :  { %4225 = vmatpush3.bf16.msra.mxu1 %v4733_v23 }
 0x775   :  { %4226 = vmatprep.subr.bf16.mxu1 %v4734_v24 }
 0x778   :  { %4227 = vmatpush3.bf16.msra.mxu1 %v4735_v25 }
 0x779   :  { %4228 = vmatprep.subr.bf16.mxu1 %v4736_v26 }
 0x77c   :  { %4229 = vmatpush3.bf16.msra.mxu1 %v4737_v27 }
 0x77d   :  { %4230 = vmatprep.subr.bf16.mxu1 %v4738_v28 }
 0x780   :  { %4231 = vmatpush3.bf16.msra.mxu1 %v4739_v29 }
 0x781   :  { %4232 = vmatprep.subr.bf16.mxu1 %v4740_v32 }
 0x784   :  { %4233 = vmatpush3.bf16.msra.mxu1 %v4741_v9 }
 0x785   :  { %4266 = vmatprep.subr.bf16.mxu1 %v4742_v46 }
 0x83a   :  { %v4533_v16 = vpop.f32.mrb[40].mxu1 }
 0x83b   :  { %v1695_v34 = vpop.f32.mrb[41].mxu1 }
 0x83c   :  { %v4534_v21 = vpop.f32.mrb[42].mxu1 }
 0x83d   :  { %v1727_v35 = vpack.c.bf16 %v4534_v21, %v4533_v16  ;;  %v1698_v37 = vpop.f32.mrb[43].mxu1 }
 0x83e   :  { %v1726_v38 = vpack.c.bf16 %v1698_v37, %v1695_v34 }
 0x840   :  { %1865 = vmatmul.mubr.bf16.vlgmr.msra.gmra.mrb[48].mxu1 %v1726_v38 }
 0x841   :  { %1872 = vmatprep.mubr.bf16.mxu1 %v5611_v48  ;;  %4267 = vmatpush3.bf16.msra.mxu1 %v4743_v47  ;;  %v4746_v48 = vld [vmem:[#allocation7 + $0x250] sm:$0xff]  }
 0x842   :  { %v4537_v40 = vpop.f32.mrb[44].mxu1  ;;  %4268 = vmatprep.subr.bf16.mxu1 %v4744_v49 }
 0x843   :  { %v1711_v41 = vpop.f32.mrb[45].mxu1 }
 0x844   :  { %v4538_v42 = vpop.f32.mrb[46].mxu1 }
 0x845   :  { %v1729_v11 = vpack.c.bf16 %v4538_v42, %v4537_v40  ;;  %v1714_v44 = vpop.f32.mrb[47].mxu1  ;;  %4269 = vmatpush3.bf16.msra.mxu1 %v4745_v52  ;;  %v5694_v52 = vld [vmem:[%s6016_s10 + $0x3] ss:$0 sm:$0xff] }
 0x846   :  { %v1728_v45 = vpack.c.bf16 %v1714_v44, %v1711_v41  ;;  %4270 = vmatprep.subr.bf16.mxu1 %v4746_v48 }
 0x848   :  { %1873 = vmatmul.mubr.bf16.gmra.mrb[52].mxu1 %v1727_v35 }
 0x849   :  { %1880 = vmatprep.mubr.bf16.mxu1 %v5630_v20  ;;  %4271 = vmatpush3.bf16.msra.mxu1 %v4747_v30  ;;  %v4750_v20 = vld [vmem:[#allocation7 + $0x260] sm:$0xff]  }
 0x84a   :  { %4272 = vmatprep.subr.bf16.mxu1 %v4748_v53 }
 0x84d   :  { %4273 = vmatpush3.bf16.msra.mxu1 %v4749_v54 }
 0x84e   :  { %4274 = vmatprep.subr.bf16.mxu1 %v4750_v20 }
 0x850   :  { %1881 = vmatmul.mubr.bf16.gmra.mrb[56].mxu1 %v1728_v45 }
 0x851   :  { %1888 = vmatprep.mubr.bf16.mxu1 %v5649_v50  ;;  %v4752_v50 = vld [vmem:[#allocation7 + $0x268] sm:$0xff]   ;;  %4275 = vmatpush3.bf16.msra.mxu1 %v4751_v31 }
 0x852   :  { %4276 = vmatprep.subr.bf16.mxu1 %v4752_v50 }
 0x855   :  { %4277 = vmatpush3.bf16.msra.mxu1 %v4753_v36 }
 0x856   :  { %4278 = vmatprep.subr.bf16.mxu1 %v4754_v56 }
 0x858   :  { %1889 = vmatmul.mubr.bf16.gmra.mrb[60].mxu1 %v1729_v11  ;;  %v5688_v11 = vld [vmem:[%s6015_s9 + $0x3] ss:$0 sm:$0xff] }
 0x859   :  { %4279 = vmatpush3.bf16.msra.mxu1 %v4755_v58 }
 0x913   :  { %v4234_v57 = vpop.f32.mrb[48].mxu1 }
 0x914   :  { %v4235_v51 = vpop.f32.mrb[49].mxu1 }
 0x915   :  { %v4236_v61 = vadd.f32 %v4235_v51, %v4234_v57  ;;  %v4237_v62 = vpop.f32.mrb[50].mxu1 }
 0x916   :  { %v4238_v63 = vpop.f32.mrb[51].mxu1 }
 0x917   :  { %v1867_v1 = vadd.f32 %v4236_v61, %v5678_v59  ;;  %v4239_v12 = vadd.f32 %v4238_v63, %v4237_v62 }
 0x919   :  { %v1897_v4 = vmin.f32 %v1867_v1, 0.0  ;;  %v1870_v5 = vadd.f32 %v4239_v12, %v5678_v59  ;;  %vm1905_vm3 = vcmp.gt.f32.partialorder %v1867_v1, 0.0 }
 0x91b   :  { %v1913_v6 = vmul.f32 1.442695, %v1897_v4  ;;  %v1898_v7 = vmin.f32 %v1870_v5, 0.0  ;;  %v4240_v8 = vpop.f32.mrb[52].mxu1  ;;  %vm1906_vm4 = vcmp.gt.f32.partialorder %v1870_v5, 0.0 }
 0x91c   :  { %v4241_v10 = vpop.f32.mrb[53].mxu1 }
 0x91d   :  { %4894 = vpow2.f32 %v1913_v6  ;;  %v1915_v14 = vmul.f32 1.442695, %v1898_v7  ;;  %v4242_v15 = vadd.f32 %v4241_v10, %v4240_v8  ;;  %v4243_v23 = vpop.f32.mrb[54].mxu1 }
 0x91e   :  { %v4244_v24 = vpop.f32.mrb[55].mxu1 }
 0x91f   :  { %4896 = vpow2.f32 %v1915_v14  ;;  %v1875_v25 = vadd.f32 %v4242_v15, %v5678_v59  ;;  %v4245_v26 = vadd.f32 %v4244_v24, %v4243_v23 }
 0x921   :  { %v1899_v27 = vmin.f32 %v1875_v25, 0.0  ;;  %v1878_v28 = vadd.f32 %v4245_v26, %v5678_v59  ;;  %vm1907_vm5 = vcmp.gt.f32.partialorder %v1875_v25, 0.0 }
 0x923   :  { %v1917_v29 = vmul.f32 1.442695, %v1899_v27  ;;  %v1900_v32 = vmin.f32 %v1878_v28, 0.0  ;;  %v4246_v9 = vpop.f32.mrb[56].mxu1  ;;  %vm1908_vm6 = vcmp.gt.f32.partialorder %v1878_v28, 0.0 }
 0x924   :  { %v4247_v16 = vpop.f32.mrb[57].mxu1 }
 0x925   :  { %4898 = vpow2.f32 %v1917_v29  ;;  %v1919_v34 = vmul.f32 1.442695, %v1900_v32  ;;  %v4248_v21 = vadd.f32 %v4247_v16, %v4246_v9  ;;  %v4249_v35 = vpop.f32.mrb[58].mxu1 }
 0x926   :  { %v4250_v37 = vpop.f32.mrb[59].mxu1 }
 0x927   :  { %v4895_v38 = vpop.eup %4894  ;;  %4900 = vpow2.f32 %v1919_v34  ;;  %v1883_v40 = vadd.f32 %v4248_v21, %v5678_v59  ;;  %v4251_v41 = vadd.f32 %v4250_v37, %v4249_v35 }
 0x928   :  { %v3897_v42 = vadd.f32 -1.0, %v4895_v38 }
 0x929   :  { %v4897_v44 = vpop.eup %4896  ;;  %v1901_v45 = vmin.f32 %v1883_v40, 0.0  ;;  %v1886_v46 = vadd.f32 %v4251_v41, %v5678_v59  ;;  %vm1909_vm7 = vcmp.gt.f32.partialorder %v1883_v40, 0.0 }
 0x92a   :  { %v1937_v47 = vsel %vm1905_vm3, %v1867_v1, %v3897_v42  ;;  %v3898_v49 = vadd.f32 -1.0, %v4897_v44 }
 0x92b   :  { %v1921_v48 = vmul.f32 1.442695, %v1901_v45  ;;  %v1902_v30 = vmin.f32 %v1886_v46, 0.0  ;;  %v4252_v53 = vpop.f32.mrb[60].mxu1  ;;  %v1951_v54 = vmul.f32 %v5688_v11, %v1937_v47  ;;  %vm1910_vm8 = vcmp.gt.f32.partialorder %v1886_v46, 0.0 }
 0x92c   :  { %v1938_v20 = vsel %vm1906_vm4, %v1870_v5, %v3898_v49  ;;  %v4253_v31 = vpop.f32.mrb[61].mxu1 }
 0x92d   :  { %4902 = vpow2.f32 %v1921_v48  ;;  %v1923_v50 = vmul.f32 1.442695, %v1902_v30  ;;  %v4254_v36 = vadd.f32 %v4253_v31, %v4252_v53  ;;  %v4255_v56 = vpop.f32.mrb[62].mxu1  ;;  %v1952_v58 = vmul.f32 %v5688_v11, %v1938_v20  ;;  %v4757_v31 = vld [vmem:[#allocation7 + $0x238] sm:$0xff]  }
 0x92e   :  { %v4256_v57 = vpop.f32.mrb[63].mxu1  ;;  %v1965_v51 = vadd.f32 %v5694_v52, %v1951_v54 }
 0x92f   :  { %v4899_v61 = vpop.eup %4898  ;;  %4904 = vpow2.f32 %v1923_v50  ;;  %v1891_v62 = vadd.f32 %v4254_v36, %v5678_v59  ;;  %v4257_v63 = vadd.f32 %v4256_v57, %v4255_v56  ;;  %v1966_v1 = vadd.f32 %v5694_v52, %v1952_v58 }
 0x930   :  { %v3899_v12 = vadd.f32 -1.0, %v4899_v61 }
 0x931   :  { %v4901_v4 = vpop.eup %4900  ;;  %v1903_v5 = vmin.f32 %v1891_v62, 0.0  ;;  %v1894_v6 = vadd.f32 %v4257_v63, %v5678_v59  ;;  %v1973_v7 = vpack.c.bf16 %v1966_v1, %v1965_v51  ;;  %vm1911_vm11 = vcmp.gt.f32.partialorder %v1891_v62, 0.0 }
 0x932   :  { %v1939_v8 = vsel %vm1907_vm5, %v1875_v25, %v3899_v12  ;;  %v3900_v10 = vadd.f32 -1.0, %v4901_v4 }
 0x933   :  { %v1925_v14 = vmul.f32 1.442695, %v1903_v5  ;;  %v1904_v15 = vmin.f32 %v1894_v6, 0.0  ;;  %4539 = vmatprep.subr.bf16.mxu0 %v1973_v7  ;;  %2219 = vmatprep.mubr.bf16.mxu1 %v1973_v7  ;;  %v1953_v23 = vmul.f32 %v5688_v11, %v1939_v8  ;;  %vm1912_vm12 = vcmp.gt.f32.partialorder %v1894_v6, 0.0  ;;  %v5727_v5 = vld [vmem:[%s6014_s8 + $0x4] ss:$0 sm:$0xff] }
 0x934   :  { %v1940_v24 = vsel %vm1908_vm6, %v1878_v28, %v3900_v10  ;;  %4540 = vmatpush3.bf16.msra.mxu0 %v1973_v7 }
 0x935   :  { %4906 = vpow2.f32 %v1925_v14  ;;  %v1927_v26 = vmul.f32 1.442695, %v1904_v15  ;;  %v1954_v27 = vmul.f32 %v5688_v11, %v1940_v24  ;;  %v1967_v59 = vadd.f32 %v5694_v52, %v1953_v23 }
 0x937   :  { %v4903_v29 = vpop.eup %4902  ;;  %4908 = vpow2.f32 %v1927_v26  ;;  %v1968_v25 = vadd.f32 %v5694_v52, %v1954_v27 }
 0x938   :  { %v3901_v32 = vadd.f32 -1.0, %v4903_v29 }
 0x939   :  { %v4905_v9 = vpop.eup %4904  ;;  %v1974_v16 = vpack.c.bf16 %v1968_v25, %v1967_v59 }
 0x93a   :  { %v1941_v34 = vsel %vm1909_vm7, %v1883_v40, %v3901_v32  ;;  %v3902_v21 = vadd.f32 -1.0, %v4905_v9 }
 0x93b   :  { %4541 = vmatprep.subr.bf16.mxu0 %v1974_v16  ;;  %v1955_v28 = vmul.f32 %v5688_v11, %v1941_v34 }
 0x93c   :  { %v1942_v35 = vsel %vm1910_vm8, %v1886_v46, %v3902_v21  ;;  %4542 = vmatpush3.bf16.msra.mxu0 %v1974_v16 }
 0x93d   :  { %v1956_v37 = vmul.f32 %v5688_v11, %v1942_v35  ;;  %v1969_v41 = vadd.f32 %v5694_v52, %v1955_v28 }
 0x93f   :  { %v4907_v38 = vpop.eup %4906  ;;  %v1970_v42 = vadd.f32 %v5694_v52, %v1956_v37 }
 0x940   :  { %v3903_v44 = vadd.f32 -1.0, %v4907_v38 }
 0x941   :  { %v4909_v45 = vpop.eup %4908  ;;  %v1975_v47 = vpack.c.bf16 %v1970_v42, %v1969_v41 }
 0x942   :  { %v1943_v49 = vsel %vm1911_vm11, %v1891_v62, %v3903_v44  ;;  %v3904_v40 = vadd.f32 -1.0, %v4909_v45 }
 0x943   :  { %4543 = vmatprep.subr.bf16.mxu0 %v1975_v47  ;;  %v1957_v48 = vmul.f32 %v5688_v11, %v1943_v49 }
 0x944   :  { %v1944_v30 = vsel %vm1912_vm12, %v1894_v6, %v3904_v40  ;;  %4544 = vmatpush3.bf16.msra.mxu0 %v1975_v47 }
 0x945   :  { %v1958_v46 = vmul.f32 %v5688_v11, %v1944_v30  ;;  %v1971_v53 = vadd.f32 %v5694_v52, %v1957_v48  ;;  %v4756_v11 = vld [vmem:[#allocation7 + $0x278] sm:$0xff]  }
 0x946   :  { %4280 = vmatprep.subr.bf16.mxu1 %v4756_v11 }
 0x947   :  { %v1972_v54 = vadd.f32 %v5694_v52, %v1958_v46  ;;  %4281 = vmatpush3.bf16.msra.mxu1 %v4757_v31  ;;  %v5739_v46 = vld [vmem:[%s6015_s9 + $0x4] ss:$0 sm:$0xff] }
 0x949   :  { %v1976_v20 = vpack.c.bf16 %v1972_v54, %v1971_v53 }
 0x94b   :  { %4545 = vmatprep.subr.bf16.mxu0 %v1976_v20 }
 0x94c   :  { %4546 = vmatpush3.bf16.msra.mxu0 %v1976_v20 }
 0x94f   :  { %4548 = vmatmul.mubr.msk.bf16.vlgmr.msra.gmra.mrb[40].mxu0 %vm487_vm0, %v5655_v0 }
 0x950   :  { %4551 = vmatprep.mubr.msk.bf16.mxu0 %vm487_vm0, %v5659_v3 }
 0x957   :  { %4552 = vmatmul.mubr.msk.bf16.gmra.mrb[44].mxu0 %vm487_vm0, %v5664_v18 }
 0x958   :  { %4563 = vmatprep.mubr.msk.bf16.mxu0 %vm487_vm0, %v5547_v19 }
 0xa22   :  { %v4549_v52 = vpop.f32.mrb[40].mxu0 }
 0xa23   :  { %v2050_v50 = vpop.f32.mrb[41].mxu0 }
 0xa24   :  { %v4550_v36 = vpop.f32.mrb[42].mxu0 }
 0xa25   :  { %v2082_v56 = vpack.c.bf16 %v4550_v36, %v4549_v52  ;;  %v2053_v58 = vpop.f32.mrb[43].mxu0  ;;  %v5748_v52 = vld [vmem:[%s6016_s10 + $0x4] ss:$0 sm:$0xff] }
 0xa26   :  { %v2081_v57 = vpack.c.bf16 %v2053_v58, %v2050_v50 }
 0xa28   :  { %2220 = vmatmul.mubr.bf16.vlgmr.msra.gmra.mrb[64].mxu1 %v2081_v57 }
 0xa29   :  { %2227 = vmatprep.mubr.bf16.mxu1 %v1974_v16 }
 0xa2a   :  { %v4553_v51 = vpop.f32.mrb[44].mxu0 }
 0xa2b   :  { %v2066_v61 = vpop.f32.mrb[45].mxu0 }
 0xa2c   :  { %v4554_v62 = vpop.f32.mrb[46].mxu0 }
 0xa2d   :  { %v2084_v63 = vpack.c.bf16 %v4554_v62, %v4553_v51  ;;  %v2069_v1 = vpop.f32.mrb[47].mxu0 }
 0xa2e   :  { %v2083_v12 = vpack.c.bf16 %v2069_v1, %v2066_v61 }
 0xa30   :  { %2228 = vmatmul.mubr.bf16.gmra.mrb[68].mxu1 %v2082_v56 }
 0xa31   :  { %2235 = vmatprep.mubr.bf16.mxu1 %v1975_v47 }
 0xa38   :  { %2236 = vmatmul.mubr.bf16.gmra.mrb[72].mxu1 %v2083_v12 }
 0xa39   :  { %2243 = vmatprep.mubr.bf16.mxu1 %v1976_v20 }
 0xa40   :  { %2244 = vmatmul.mubr.bf16.gmra.mrb[76].mxu1 %v2084_v63 }
 0xa41   :  { %4579 = vmatprep.mubr.msk.bf16.mxu1 %vm487_vm0, %v5547_v19 }
 0xafb   :  { %v4282_v4 = vpop.f32.mrb[64].mxu1 }
 0xafc   :  { %v4283_v6 = vpop.f32.mrb[65].mxu1 }
 0xafd   :  { %v4284_v7 = vadd.f32 %v4283_v6, %v4282_v4  ;;  %v4285_v8 = vpop.f32.mrb[66].mxu1 }
 0xafe   :  { %v4286_v10 = vpop.f32.mrb[67].mxu1 }
 0xaff   :  { %v2222_v14 = vadd.f32 %v4284_v7, %v5727_v5  ;;  %v4287_v15 = vadd.f32 %v4286_v10, %v4285_v8 }
 0xb01   :  { %v2252_v23 = vmin.f32 %v2222_v14, 0.0  ;;  %v2225_v24 = vadd.f32 %v4287_v15, %v5727_v5  ;;  %vm2260_vm3 = vcmp.gt.f32.partialorder %v2222_v14, 0.0 }
 0xb03   :  { %v2268_v26 = vmul.f32 1.442695, %v2252_v23  ;;  %v2253_v27 = vmin.f32 %v2225_v24, 0.0  ;;  %v4288_v29 = vpop.f32.mrb[68].mxu1  ;;  %vm2261_vm4 = vcmp.gt.f32.partialorder %v2225_v24, 0.0 }
 0xb04   :  { %v4289_v19 = vpop.f32.mrb[69].mxu1 }
 0xb05   :  { %4910 = vpow2.f32 %v2268_v26  ;;  %v2270_v59 = vmul.f32 1.442695, %v2253_v27  ;;  %v4290_v25 = vadd.f32 %v4289_v19, %v4288_v29  ;;  %v4291_v32 = vpop.f32.mrb[70].mxu1 }
 0xb06   :  { %v4292_v9 = vpop.f32.mrb[71].mxu1 }
 0xb07   :  { %4912 = vpow2.f32 %v2270_v59  ;;  %v2230_v16 = vadd.f32 %v4290_v25, %v5727_v5  ;;  %v4293_v34 = vadd.f32 %v4292_v9, %v4291_v32 }
 0xb09   :  { %v2254_v21 = vmin.f32 %v2230_v16, 0.0  ;;  %v2233_v28 = vadd.f32 %v4293_v34, %v5727_v5  ;;  %vm2262_vm5 = vcmp.gt.f32.partialorder %v2230_v16, 0.0 }
 0xb0b   :  { %v2272_v35 = vmul.f32 1.442695, %v2254_v21  ;;  %v2255_v37 = vmin.f32 %v2233_v28, 0.0  ;;  %v4294_v38 = vpop.f32.mrb[72].mxu1  ;;  %vm2263_vm6 = vcmp.gt.f32.partialorder %v2233_v28, 0.0 }
 0xb0c   :  { %v4295_v41 = vpop.f32.mrb[73].mxu1 }
 0xb0d   :  { %4914 = vpow2.f32 %v2272_v35  ;;  %v2274_v42 = vmul.f32 1.442695, %v2255_v37  ;;  %v4296_v44 = vadd.f32 %v4295_v41, %v4294_v38  ;;  %v4297_v45 = vpop.f32.mrb[74].mxu1 }
 0xb0e   :  { %v4298_v47 = vpop.f32.mrb[75].mxu1 }
 0xb0f   :  { %v4911_v49 = vpop.eup %4910  ;;  %4916 = vpow2.f32 %v2274_v42  ;;  %v5734_v40 = vadd.f32 %v4296_v44, %v5727_v5  ;;  %v4299_v48 = vadd.f32 %v4298_v47, %v4297_v45 }
 0xb10   :  { %v3931_v30 = vadd.f32 -1.0, %v4911_v49 }
 0xb11   :  { %v4913_v53 = vpop.eup %4912  ;;  %v2256_v54 = vmin.f32 %v5734_v40, 0.0  ;;  %v5743_v20 = vadd.f32 %v4299_v48, %v5727_v5  ;;  %vm2264_vm7 = vcmp.gt.f32.partialorder %v5734_v40, 0.0 }
 0xb12   :  { %v2292_v11 = vsel %vm2260_vm3, %v2222_v14, %v3931_v30  ;;  %v3932_v31 = vadd.f32 -1.0, %v4913_v53 }
 0xb13   :  { %v2276_v50 = vmul.f32 1.442695, %v2256_v54  ;;  %v2257_v36 = vmin.f32 %v5743_v20, 0.0  ;;  %v4300_v56 = vpop.f32.mrb[76].mxu1  ;;  %v2306_v58 = vmul.f32 %v5739_v46, %v2292_v11  ;;  %vm2265_vm8 = vcmp.gt.f32.partialorder %v5743_v20, 0.0 }
 0xb14   :  { %v2293_v57 = vsel %vm2261_vm4, %v2225_v24, %v3932_v31  ;;  %v4301_v51 = vpop.f32.mrb[77].mxu1 }
 0xb15   :  { %4918 = vpow2.f32 %v2276_v50  ;;  %v2278_v61 = vmul.f32 1.442695, %v2257_v36  ;;  %v4302_v62 = vadd.f32 %v4301_v51, %v4300_v56  ;;  %v4303_v63 = vpop.f32.mrb[78].mxu1  ;;  %v2307_v1 = vmul.f32 %v5739_v46, %v2293_v57 }
 0xb16   :  { %v4304_v12 = vpop.f32.mrb[79].mxu1  ;;  %v2320_v4 = vadd.f32 %v5748_v52, %v2306_v58 }
 0xb17   :  { %v4915_v6 = vpop.eup %4914  ;;  %4920 = vpow2.f32 %v2278_v61  ;;  %v5755_v7 = vadd.f32 %v4302_v62, %v5727_v5  ;;  %v4305_v8 = vadd.f32 %v4304_v12, %v4303_v63  ;;  %v2321_v10 = vadd.f32 %v5748_v52, %v2307_v1 }
 0xb18   :  { %v3933_v14 = vadd.f32 -1.0, %v4915_v6  ;;  %v2332_v15 = vadd.f32 %v2320_v4, %v5572_v55 }
 0xb19   :  { %v4917_v23 = vpop.eup %4916  ;;  %v2258_v24 = vmin.f32 %v5755_v7, 0.0  ;;  %v5761_v26 = vadd.f32 %v4305_v8, %v5727_v5  ;;  %v5763_v27 = vpack.c.bf16 %v2321_v10, %v2320_v4  ;;  %v2333_v59 = vadd.f32 %v2321_v10, %v5587_v13 }
 0xb1a   :  { %v2294_v29 = vsel %vm2262_vm5, %v2230_v16, %v3933_v14  ;;  %v3934_v19 = vadd.f32 -1.0, %v4917_v23  ;;  %v2340_v25 = vrot.slane %v2332_v15, 4  ;;  %vm2266_vm11 = vcmp.gt.f32.partialorder %v5755_v7, 0.0 }
 0xb1b   :  { %v2280_v32 = vmul.f32 1.442695, %v2258_v24  ;;  %v2259_v9 = vmin.f32 %v5761_v26, 0.0  ;;  %4555 = vmatprep.subr.bf16.mxu0 %v5763_v27  ;;  %v2308_v34 = vmul.f32 %v5739_v46, %v2294_v29  ;;  %v2346_v37 = vrot.slane %v2333_v59, 4 }
 0xb1c   :  { %v2295_v21 = vsel %vm2263_vm6, %v2233_v28, %v3934_v19  ;;  %v2341_v35 = vmax.f32 %v2332_v15, %v2340_v25  ;;  %4556 = vmatpush3.bf16.msra.mxu0 %v5763_v27  ;;  %vm2267_vm12 = vcmp.gt.f32.partialorder %v5761_v26, 0.0 }
 0xb1d   :  { %4922 = vpow2.f32 %v2280_v32  ;;  %v2282_v5 = vmul.f32 1.442695, %v2259_v9  ;;  %v2309_v16 = vmul.f32 %v5739_v46, %v2295_v21  ;;  %v2322_v38 = vadd.f32 %v5748_v52, %v2308_v34 }
 0xb1e   :  { %v2342_v41 = vrot.slane %v2341_v35, 2  ;;  %v2347_v42 = vmax.f32 %v2333_v59, %v2346_v37 }
 0xb1f   :  { %v4919_v44 = vpop.eup %4918  ;;  %4924 = vpow2.f32 %v2282_v5  ;;  %v2323_v45 = vadd.f32 %v5748_v52, %v2309_v16  ;;  %v2334_v47 = vadd.f32 %v2322_v38, %v5590_v17 }
 0xb20   :  { %v3935_v49 = vadd.f32 -1.0, %v4919_v44  ;;  %v2343_v28 = vmax.f32 %v2341_v35, %v2342_v41  ;;  %v2348_v48 = vrot.slane %v2347_v42, 2 }
 0xb21   :  { %v4921_v30 = vpop.eup %4920  ;;  %v5775_v53 = vpack.c.bf16 %v2323_v45, %v2322_v38  ;;  %v2335_v54 = vadd.f32 %v2323_v45, %v5605_v39  ;;  %v2352_v11 = vrot.slane %v2334_v47, 4 }
 0xb22   :  { %v2296_v31 = vsel %vm2264_vm7, %v5734_v40, %v3935_v49  ;;  %v3936_v50 = vadd.f32 -1.0, %v4921_v30  ;;  %v2344_v36 = vrot.slane %v2343_v28, 1  ;;  %v2349_v56 = vmax.f32 %v2347_v42, %v2348_v48 }
 0xb23   :  { %v2353_v58 = vmax.f32 %v2334_v47, %v2352_v11  ;;  %v2358_v57 = vrot.slane %v2335_v54, 4  ;;  %4557 = vmatprep.subr.bf16.mxu0 %v5775_v53  ;;  %v2310_v51 = vmul.f32 %v5739_v46, %v2296_v31 }
 0xb24   :  { %v2297_v61 = vsel %vm2265_vm8, %v5743_v20, %v3936_v50  ;;  %v2350_v62 = vrot.slane %v2349_v56, 1  ;;  %4558 = vmatpush3.bf16.msra.mxu0 %v5775_v53  ;;  %v2345_v4 = vmax.f32 %v2343_v28, %v2344_v36 }
 0xb25   :  { %v2354_v63 = vrot.slane %v2353_v58, 2  ;;  %v2359_v1 = vmax.f32 %v2335_v54, %v2358_v57  ;;  %v2311_v40 = vmul.f32 %v5739_v46, %v2297_v61  ;;  %v2324_v12 = vadd.f32 %v5748_v52, %v2310_v51 }
 0xb26   :  { %v2351_v6 = vmax.f32 %v2349_v56, %v2350_v62 }
 0xb27   :  { %v4923_v8 = vpop.eup %4922  ;;  %v2355_v10 = vmax.f32 %v2353_v58, %v2354_v63  ;;  %v2360_v14 = vrot.slane %v2359_v1, 2  ;;  %v2325_v15 = vadd.f32 %v5748_v52, %v2311_v40  ;;  %v2336_v23 = vadd.f32 %v2324_v12, %v5619_v60 }
 0xb28   :  { %v3937_v20 = vadd.f32 -1.0, %v4923_v8  ;;  %v3181_v24 = vsel %vm3158_vm9, %v2351_v6, %v2345_v4 }
 0xb29   :  { %v4925_v29 = vpop.eup %4924  ;;  %v2356_v19 = vrot.slane %v2355_v10, 1  ;;  %v2361_v59 = vmax.f32 %v2359_v1, %v2360_v14  ;;  %v5790_v25 = vpack.c.bf16 %v2325_v15, %v2324_v12  ;;  %v2337_v32 = vadd.f32 %v2325_v15, %v5623_v2  ;;  %v4760_v1 = vld [vmem:[#allocation7 + $0x2c8] sm:$0xff]   ;;  %v4762_v14 = vld [vmem:[#allocation7 + $0x2d0] sm:$0xff]  }
 0xb2a   :  { %v2298_v9 = vsel %vm2266_vm11, %v5755_v7, %v3937_v20  ;;  %v3938_v34 = vadd.f32 -1.0, %v4925_v29  ;;  %v2364_v21 = vrot.slane %v2336_v23, 4  ;;  %v4763_v29 = vld [vmem:[#allocation7 + $0x290] sm:$0xff]  }
 0xb2b   :  { %v2357_v35 = vmax.f32 %v2355_v10, %v2356_v19  ;;  %v2362_v37 = vrot.slane %v2361_v59, 1  ;;  %v2370_v5 = vrot.slane %v2337_v32, 4  ;;  %4559 = vmatprep.subr.bf16.mxu0 %v5790_v25  ;;  %v2312_v16 = vmul.f32 %v5739_v46, %v2298_v9  ;;  %v4761_v10 = vld [vmem:[#allocation7 + $0x288] sm:$0xff]   ;;  %v4764_v19 = vld [vmem:[#allocation7 + $0x2d8] sm:$0xff]   ;;  %v4766_v9 = vld [vmem:[#allocation7 + $0x2e0] sm:$0xff]  }
 0xb2c   :  { %v2299_v38 = vsel %vm2267_vm12, %v5761_v26, %v3938_v34  ;;  %v2365_v41 = vmax.f32 %v2336_v23, %v2364_v21  ;;  %4560 = vmatpush3.bf16.msra.mxu0 %v5790_v25  ;;  %v4767_v34 = vld [vmem:[#allocation7 + $0x2a0] sm:$0xff]   ;;  %v4768_v21 = vld [vmem:[#allocation7 + $0x2e8] sm:$0xff]  }
 0xb2d   :  { %v2363_v42 = vmax.f32 %v2361_v59, %v2362_v37  ;;  %v2371_v44 = vmax.f32 %v2337_v32, %v2370_v5  ;;  %v2313_v7 = vmul.f32 %v5739_v46, %v2299_v38  ;;  %v2326_v45 = vadd.f32 %v5748_v52, %v2312_v16  ;;  %v4758_v46 = vld [vmem:[#allocation7 + $0x2c0] sm:$0xff]   ;;  %v4765_v32 = vld [vmem:[#allocation7 + $0x298] sm:$0xff]   ;;  %v4770_v37 = vld [vmem:[#allocation7 + $0x2f0] sm:$0xff]  }
 0xb2e   :  { %v2366_v47 = vrot.slane %v2365_v41, 2  ;;  %v3182_v49 = vsel %vm3160_vm10, %v2357_v35, %v3181_v24  ;;  %v4769_v35 = vld [vmem:[#allocation7 + $0x2a8] sm:$0xff]   ;;  %v4771_v5 = vld [vmem:[#allocation7 + $0x2b0] sm:$0xff]   ;;  %v4773_v16 = vld [vmem:[#allocation7 + $0x2b8] sm:$0xff]  }
 0xb2f   :  { %v2372_v28 = vrot.slane %v2371_v44, 2  ;;  %v2327_v48 = vadd.f32 %v5748_v52, %v2313_v7  ;;  %v2338_v30 = vadd.f32 %v2326_v45, %v5638_v33  ;;  %v3183_v54 = vsel %vm3162_vm13, %v2363_v42, %v3182_v49  ;;  %v4759_v52 = vld [vmem:[#allocation7 + $0x280] sm:$0xff]  }
 0xb30   :  { %v2367_v26 = vmax.f32 %v2365_v41, %v2366_v47 }
 0xb31   :  { %v2373_v11 = vmax.f32 %v2371_v44, %v2372_v28  ;;  %v5805_v31 = vpack.c.bf16 %v2327_v48, %v2326_v45  ;;  %v2339_v50 = vadd.f32 %v2327_v48, %v5645_v43  ;;  %v2376_v36 = vrot.slane %v2338_v30, 4 }
 0xb32   :  { %v2368_v56 = vrot.slane %v2367_v26, 1 }
 0xb33   :  { %v2374_v58 = vrot.slane %v2373_v11, 1  ;;  %v2377_v57 = vmax.f32 %v2338_v30, %v2376_v36  ;;  %v2382_v51 = vrot.slane %v2339_v50, 4  ;;  %4561 = vmatprep.subr.bf16.mxu0 %v5805_v31  ;;  %v4795_v36 = vld [vmem:[#allocation7 + $0x310] sm:$0xff]  }
 0xb34   :  { %v2369_v61 = vmax.f32 %v2367_v26, %v2368_v56  ;;  %4562 = vmatpush3.bf16.msra.mxu0 %v5805_v31  ;;  %v4791_v26 = vld [vmem:[#allocation7 + $0x300] sm:$0xff]   ;;  %v4797_v56 = vld [vmem:[#allocation7 + $0x318] sm:$0xff]  }
 0xb35   :  { %v2378_v62 = vrot.slane %v2377_v57, 2  ;;  %v2383_v63 = vmax.f32 %v2339_v50, %v2382_v51  ;;  %4314 = vmatprep.subr.bf16.mxu0 %v4758_v46  ;;  %v2375_v40 = vmax.f32 %v2373_v11, %v2374_v58  ;;  %v4792_v11 = vld [vmem:[#allocation7 + $0x348] sm:$0xff]   ;;  %v4796_v46 = vld [vmem:[#allocation7 + $0x358] sm:$0xff]   ;;  %v4799_v58 = vld [vmem:[#allocation7 + $0x320] sm:$0xff]  }
 0xb36   :  { %v3184_v12 = vsel %vm3164_vm14, %v2369_v61, %v3183_v54  ;;  %v4790_v54 = vld [vmem:[#allocation7 + $0x340] sm:$0xff]   ;;  %v4793_v50 = vld [vmem:[#allocation7 + $0x308] sm:$0xff]   ;;  %v4802_v51 = vld [vmem:[#allocation7 + $0x370] sm:$0xff]  }
 0xb37   :  { %v2379_v4 = vmax.f32 %v2377_v57, %v2378_v62  ;;  %v2384_v6 = vrot.slane %v2383_v63, 2  ;;  %4564 = vmatmul.mubr.msk.bf16.vlgmr.msra.gmra.mrb[48].mxu0 %vm487_vm0, %v5655_v0  ;;  %v3185_v8 = vsel %vm3166_vm15, %v2375_v40, %v3184_v12  ;;  %v4801_v57 = vld [vmem:[#allocation7 + $0x328] sm:$0xff]   ;;  %v4803_v61 = vld [vmem:[#allocation7 + $0x330] sm:$0xff]   ;;  %v5829_v62 = vld [vmem:[%s6014_s8 + $0x5] ss:$0 sm:$0xff] }
 0xb38   :  { %4567 = vmatprep.mubr.msk.bf16.mxu0 %vm487_vm0, %v5659_v3  ;;  %4315 = vmatpush3.bf16.msra.mxu0 %v4759_v52 }
 0xb39   :  { %4316 = vmatprep.subr.bf16.mxu0 %v4760_v1  ;;  %v2380_v15 = vrot.slane %v2379_v4, 1  ;;  %v2385_v23 = vmax.f32 %v2383_v63, %v2384_v6 }
 0xb3b   :  { %v2381_v20 = vmax.f32 %v2379_v4, %v2380_v15  ;;  %v2386_v24 = vrot.slane %v2385_v23, 1 }
 0xb3c   :  { %4317 = vmatpush3.bf16.msra.mxu0 %v4761_v10 }
 0xb3d   :  { %4318 = vmatprep.subr.bf16.mxu0 %v4762_v14  ;;  %v2387_v59 = vmax.f32 %v2385_v23, %v2386_v24  ;;  %v3186_v0 = vsel %vm3168_vm1, %v2381_v20, %v3185_v8 }
 0xb3f   :  { %4568 = vmatmul.mubr.msk.bf16.gmra.mrb[52].mxu0 %vm487_vm0, %v5664_v18  ;;  %v5820_v3 = vsel %vm3170_vm2, %v2387_v59, %v3186_v0  ;;  %v4772_v18 = vld [vmem:[#allocation7 + $0x2f8] sm:$0xff]  }
 0xb40   :  { %2630 = vmatprep.mubr.bf16.mxu0 %v5763_v27  ;;  %4319 = vmatpush3.bf16.msra.mxu0 %v4763_v29 }
 0xb41   :  { %4320 = vmatprep.subr.bf16.mxu0 %v4764_v19 }
 0xb44   :  { %4321 = vmatpush3.bf16.msra.mxu0 %v4765_v32 }
 0xb45   :  { %4322 = vmatprep.subr.bf16.mxu0 %v4766_v9 }
 0xb48   :  { %4323 = vmatpush3.bf16.msra.mxu0 %v4767_v34 }
 0xb49   :  { %4324 = vmatprep.subr.bf16.mxu0 %v4768_v21 }
 0xb4c   :  { %4325 = vmatpush3.bf16.msra.mxu0 %v4769_v35 }
 0xb4d   :  { %4326 = vmatprep.subr.bf16.mxu0 %v4770_v37 }
 0xb50   :  { %4327 = vmatpush3.bf16.msra.mxu0 %v4771_v5 }
 0xb51   :  { %4328 = vmatprep.subr.bf16.mxu0 %v4772_v18 }
 0xb54   :  { %4329 = vmatpush3.bf16.msra.mxu0 %v4773_v16 }
 0xb55   :  { %4362 = vmatprep.subr.bf16.mxu0 %v4790_v54  ;;  %v5845_v54 = vld [vmem:[%s6016_s10 + $0x5] ss:$0 sm:$0xff] }
 0xc0a   :  { %v4565_v27 = vpop.f32.mrb[48].mxu0 }
 0xc0b   :  { %v2461_v38 = vpop.f32.mrb[49].mxu0 }
 0xc0c   :  { %v4566_v41 = vpop.f32.mrb[50].mxu0 }
 0xc0d   :  { %v2493_v42 = vpack.c.bf16 %v4566_v41, %v4565_v27  ;;  %v2464_v44 = vpop.f32.mrb[51].mxu0 }
 0xc0e   :  { %v2492_v7 = vpack.c.bf16 %v2464_v44, %v2461_v38 }
 0xc10   :  { %2631 = vmatmul.mubr.bf16.vlgmr.msra.gmra.mrb[56].mxu0 %v2492_v7 }
 0xc11   :  { %2638 = vmatprep.mubr.bf16.mxu0 %v5775_v53  ;;  %4363 = vmatpush3.bf16.msra.mxu0 %v4791_v26  ;;  %v4794_v53 = vld [vmem:[#allocation7 + $0x350] sm:$0xff]  }
 0xc12   :  { %v4569_v45 = vpop.f32.mrb[52].mxu0  ;;  %4364 = vmatprep.subr.bf16.mxu0 %v4792_v11 }
 0xc13   :  { %v2477_v47 = vpop.f32.mrb[53].mxu0 }
 0xc14   :  { %v4570_v49 = vpop.f32.mrb[54].mxu0 }
 0xc15   :  { %v2495_v28 = vpack.c.bf16 %v4570_v49, %v4569_v45  ;;  %v2480_v48 = vpop.f32.mrb[55].mxu0  ;;  %4365 = vmatpush3.bf16.msra.mxu0 %v4793_v50  ;;  %v5839_v45 = vld [vmem:[%s6015_s9 + $0x5] ss:$0 sm:$0xff] }
 0xc16   :  { %v2494_v30 = vpack.c.bf16 %v2480_v48, %v2477_v47  ;;  %4366 = vmatprep.subr.bf16.mxu0 %v4794_v53 }
 0xc18   :  { %2639 = vmatmul.mubr.bf16.gmra.mrb[60].mxu0 %v2493_v42 }
 0xc19   :  { %2646 = vmatprep.mubr.bf16.mxu0 %v5790_v25  ;;  %4367 = vmatpush3.bf16.msra.mxu0 %v4795_v36  ;;  %v4798_v25 = vld [vmem:[#allocation7 + $0x360] sm:$0xff]  }
 0xc1a   :  { %4368 = vmatprep.subr.bf16.mxu0 %v4796_v46 }
 0xc1d   :  { %4369 = vmatpush3.bf16.msra.mxu0 %v4797_v56 }
 0xc1e   :  { %4370 = vmatprep.subr.bf16.mxu0 %v4798_v25 }
 0xc20   :  { %2647 = vmatmul.mubr.bf16.gmra.mrb[64].mxu0 %v2494_v30 }
 0xc21   :  { %2654 = vmatprep.mubr.bf16.mxu0 %v5805_v31  ;;  %v4800_v31 = vld [vmem:[#allocation7 + $0x368] sm:$0xff]   ;;  %4371 = vmatpush3.bf16.msra.mxu0 %v4799_v58 }
 0xc22   :  { %4372 = vmatprep.subr.bf16.mxu0 %v4800_v31 }
 0xc25   :  { %4373 = vmatpush3.bf16.msra.mxu0 %v4801_v57 }
 0xc26   :  { %4374 = vmatprep.subr.bf16.mxu0 %v4802_v51 }
 0xc28   :  { %2655 = vmatmul.mubr.bf16.gmra.mrb[68].mxu0 %v2495_v28 }
 0xc29   :  { %4375 = vmatpush3.bf16.msra.mxu0 %v4803_v61 }
 0xce3   :  { %v4330_v52 = vpop.f32.mrb[56].mxu0 }
 0xce4   :  { %v4331_v63 = vpop.f32.mrb[57].mxu0 }
 0xce5   :  { %v4332_v1 = vadd.f32 %v4331_v63, %v4330_v52  ;;  %v4333_v40 = vpop.f32.mrb[58].mxu0 }
 0xce6   :  { %v4334_v12 = vpop.f32.mrb[59].mxu0 }
 0xce7   :  { %v2633_v4 = vadd.f32 %v4332_v1, %v5829_v62  ;;  %v4335_v6 = vadd.f32 %v4334_v12, %v4333_v40 }
 0xce9   :  { %v2663_v8 = vmin.f32 %v2633_v4, 0.0  ;;  %v2636_v10 = vadd.f32 %v4335_v6, %v5829_v62  ;;  %vm2671_vm3 = vcmp.gt.f32.partialorder %v2633_v4, 0.0 }
 0xceb   :  { %v2679_v14 = vmul.f32 1.442695, %v2663_v8  ;;  %v2664_v15 = vmin.f32 %v2636_v10, 0.0  ;;  %v4336_v23 = vpop.f32.mrb[60].mxu0  ;;  %vm2672_vm4 = vcmp.gt.f32.partialorder %v2636_v10, 0.0 }
 0xcec   :  { %v4337_v20 = vpop.f32.mrb[61].mxu0 }
 0xced   :  { %4926 = vpow2.f32 %v2679_v14  ;;  %v2681_v24 = vmul.f32 1.442695, %v2664_v15  ;;  %v4338_v29 = vadd.f32 %v4337_v20, %v4336_v23  ;;  %v4339_v19 = vpop.f32.mrb[62].mxu0 }
 0xcee   :  { %v4340_v59 = vpop.f32.mrb[63].mxu0 }
 0xcef   :  { %4928 = vpow2.f32 %v2681_v24  ;;  %v2641_v0 = vadd.f32 %v4338_v29, %v5829_v62  ;;  %v4341_v32 = vadd.f32 %v4340_v59, %v4339_v19 }
 0xcf1   :  { %v2665_v9 = vmin.f32 %v2641_v0, 0.0  ;;  %v2644_v34 = vadd.f32 %v4341_v32, %v5829_v62  ;;  %vm2673_vm5 = vcmp.gt.f32.partialorder %v2641_v0, 0.0 }
 0xcf3   :  { %v2683_v21 = vmul.f32 1.442695, %v2665_v9  ;;  %v2666_v35 = vmin.f32 %v2644_v34, 0.0  ;;  %v4342_v37 = vpop.f32.mrb[64].mxu0  ;;  %vm2674_vm6 = vcmp.gt.f32.partialorder %v2644_v34, 0.0 }
 0xcf4   :  { %v4343_v5 = vpop.f32.mrb[65].mxu0 }
 0xcf5   :  { %4930 = vpow2.f32 %v2683_v21  ;;  %v2685_v18 = vmul.f32 1.442695, %v2666_v35  ;;  %v4344_v16 = vadd.f32 %v4343_v5, %v4342_v37  ;;  %v4345_v27 = vpop.f32.mrb[66].mxu0 }
 0xcf6   :  { %v4346_v38 = vpop.f32.mrb[67].mxu0 }
 0xcf7   :  { %v4927_v41 = vpop.eup %4926  ;;  %4932 = vpow2.f32 %v2685_v18  ;;  %v2649_v42 = vadd.f32 %v4344_v16, %v5829_v62  ;;  %v4347_v44 = vadd.f32 %v4346_v38, %v4345_v27 }
 0xcf8   :  { %v3965_v7 = vadd.f32 -1.0, %v4927_v41 }
 0xcf9   :  { %v4929_v47 = vpop.eup %4928  ;;  %v2667_v49 = vmin.f32 %v2649_v42, 0.0  ;;  %v2652_v28 = vadd.f32 %v4347_v44, %v5829_v62  ;;  %vm2675_vm7 = vcmp.gt.f32.partialorder %v2649_v42, 0.0 }
 0xcfa   :  { %v2703_v48 = vsel %vm2671_vm3, %v2633_v4, %v3965_v7  ;;  %v3966_v30 = vadd.f32 -1.0, %v4929_v47 }
 0xcfb   :  { %v2687_v26 = vmul.f32 1.442695, %v2667_v49  ;;  %v2668_v11 = vmin.f32 %v2652_v28, 0.0  ;;  %v4348_v50 = vpop.f32.mrb[68].mxu0  ;;  %v2717_v53 = vmul.f32 %v5839_v45, %v2703_v48  ;;  %vm2676_vm8 = vcmp.gt.f32.partialorder %v2652_v28, 0.0 }
 0xcfc   :  { %v2704_v36 = vsel %vm2672_vm4, %v2636_v10, %v3966_v30  ;;  %v4349_v46 = vpop.f32.mrb[69].mxu0 }
 0xcfd   :  { %4934 = vpow2.f32 %v2687_v26  ;;  %v2689_v56 = vmul.f32 1.442695, %v2668_v11  ;;  %v4350_v25 = vadd.f32 %v4349_v46, %v4348_v50  ;;  %v4351_v58 = vpop.f32.mrb[70].mxu0  ;;  %v2718_v31 = vmul.f32 %v5839_v45, %v2704_v36  ;;  %v4774_v50 = vld [vmem:[#allocation9 + $0x40] sm:$0xff]   ;;  %v4776_v36 = vld [vmem:[#allocation9 + $0x48] sm:$0xff]  }
 0xcfe   :  { %v4352_v57 = vpop.f32.mrb[71].mxu0  ;;  %v2731_v51 = vadd.f32 %v5845_v54, %v2717_v53  ;;  %v4775_v53 = vld [vmem:[#allocation9] sm:$0xff]  }
 0xcff   :  { %v4931_v61 = vpop.eup %4930  ;;  %4936 = vpow2.f32 %v2689_v56  ;;  %v2657_v52 = vadd.f32 %v4350_v25, %v5829_v62  ;;  %v4353_v63 = vadd.f32 %v4352_v57, %v4351_v58  ;;  %v2732_v1 = vadd.f32 %v5845_v54, %v2718_v31  ;;  %v4970_v46 = vld [vmem:[#allocation4 + $0x8] sm:$0xff]   ;;  %v4779_v25 = vld [vmem:[#allocation9 + $0x10] sm:$0xff]   ;;  %v4780_v58 = vld [vmem:[#allocation9 + $0x58] sm:$0xff]  }
 0xd00   :  { %v3967_v40 = vadd.f32 -1.0, %v4931_v61  ;;  %v4777_v56 = vld [vmem:[#allocation9 + $0x8] sm:$0xff]   ;;  %v3206_v31 = vpack.c.bf16 %v5820_v3, %v5820_v3  ;;  %v4972_v57 = vld [vmem:[#allocation4 + $0x18] sm:$0xff]   ;;  %v4782_v61 = vld [vmem:[#allocation9 + $0x60] sm:$0xff]  }
 0xd01   :  { %v4933_v12 = vpop.eup %4932  ;;  %v2669_v4 = vmin.f32 %v2657_v52, 0.0  ;;  %v2660_v6 = vadd.f32 %v4353_v63, %v5829_v62  ;;  %v2739_v8 = vpack.c.bf16 %v2732_v1, %v2731_v51  ;;  %vm2677_vm11 = vcmp.gt.f32.partialorder %v2657_v52, 0.0  ;;  %v4781_v51 = vld [vmem:[#allocation9 + $0x18] sm:$0xff]   ;;  %v4784_v63 = vld [vmem:[#allocation9 + $0x68] sm:$0xff]  }
 0xd02   :  { %v2705_v10 = vsel %vm2673_vm5, %v2641_v0, %v3967_v40  ;;  %v3968_v14 = vadd.f32 -1.0, %v4933_v12  ;;  %v4785_v1 = vld [vmem:[#allocation9 + $0x28] sm:$0xff]   ;;  %v4786_v40 = vld [vmem:[#allocation9 + $0x70] sm:$0xff]   ;;  %v4788_v3 = vld [vmem:[#allocation9 + $0x78] sm:$0xff]  }
 0xd03   :  { %v2691_v15 = vmul.f32 1.442695, %v2669_v4  ;;  %v2670_v23 = vmin.f32 %v2660_v6, 0.0  ;;  %4571 = vmatprep.subr.bf16.mxu1 %v2739_v8  ;;  %2985 = vmatprep.mubr.bf16.mxu0 %v2739_v8  ;;  %v2719_v20 = vmul.f32 %v5839_v45, %v2705_v10  ;;  %vm2678_vm12 = vcmp.gt.f32.partialorder %v2660_v6, 0.0  ;;  %v4787_v12 = vld [vmem:[#allocation9 + $0x30] sm:$0xff]   ;;  %v4789_v4 = vld [vmem:[#allocation9 + $0x38] sm:$0xff]  }
 0xd04   :  { %v2706_v24 = vsel %vm2674_vm6, %v2644_v34, %v3968_v14  ;;  %4572 = vmatpush3.bf16.msra.mxu1 %v2739_v8  ;;  %v4804_v8 = vld [vmem:[#allocation7 + $0x378] sm:$0xff]  }
 0xd05   :  { %4938 = vpow2.f32 %v2691_v15  ;;  %v2693_v29 = vmul.f32 1.442695, %v2670_v23  ;;  %v2720_v19 = vmul.f32 %v5839_v45, %v2706_v24  ;;  %v2733_v62 = vadd.f32 %v5845_v54, %v2719_v20  ;;  %v4805_v10 = vld [vmem:[#allocation7 + $0x338] sm:$0xff]   ;;  %4376 = vmatprep.subr.bf16.mxu0 %v4804_v8 }
 0xd06   :  { %4377 = vmatpush3.bf16.msra.mxu0 %v4805_v10 }
 0xd07   :  { %v4935_v59 = vpop.eup %4934  ;;  %4940 = vpow2.f32 %v2693_v29  ;;  %v2734_v0 = vadd.f32 %v5845_v54, %v2720_v19 }
 0xd08   :  { %v3969_v32 = vadd.f32 -1.0, %v4935_v59 }
 0xd09   :  { %v4937_v9 = vpop.eup %4936  ;;  %v5857_v21 = vpack.c.bf16 %v2734_v0, %v2733_v62 }
 0xd0a   :  { %v2707_v35 = vsel %vm2675_vm7, %v2649_v42, %v3969_v32  ;;  %v3970_v37 = vadd.f32 -1.0, %v4937_v9 }
 0xd0b   :  { %4573 = vmatprep.subr.bf16.mxu1 %v5857_v21  ;;  %v2721_v34 = vmul.f32 %v5839_v45, %v2707_v35 }
 0xd0c   :  { %v2708_v5 = vsel %vm2676_vm8, %v2652_v28, %v3970_v37  ;;  %4574 = vmatpush3.bf16.msra.mxu1 %v5857_v21 }
 0xd0d   :  { %v2722_v18 = vmul.f32 %v5839_v45, %v2708_v5  ;;  %v2735_v27 = vadd.f32 %v5845_v54, %v2721_v34 }
 0xd0f   :  { %v4939_v16 = vpop.eup %4938  ;;  %v2736_v38 = vadd.f32 %v5845_v54, %v2722_v18  ;;  %v5146_v18 = vmov 0.0  }
 0xd10   :  { %v3971_v41 = vadd.f32 -1.0, %v4939_v16  ;;  %4587 = vmatprep.subr.bf16.mxu0 %v5146_v18  ;;  %v4807_v16 = vld [vmem:[#allocation9 + $0x88] sm:$0xff]  }
 0xd11   :  { %v4941_v44 = vpop.eup %4940  ;;  %v5865_v42 = vpack.c.bf16 %v2736_v38, %v2735_v27  ;;  %v4808_v27 = vld [vmem:[#allocation9 + $0x90] sm:$0xff]   ;;  %v4809_v38 = vld [vmem:[#allocation9 + $0x98] sm:$0xff]  }
 0xd12   :  { %v2709_v7 = vsel %vm2677_vm11, %v2657_v52, %v3971_v41  ;;  %v3972_v47 = vadd.f32 -1.0, %v4941_v44  ;;  %v4783_v52 = vld [vmem:[#allocation9 + $0x20] sm:$0xff]   ;;  %v4811_v44 = vld [vmem:[#allocation9 + $0xa8] sm:$0xff]  }
 0xd13   :  { %4575 = vmatprep.subr.bf16.mxu1 %v5865_v42  ;;  %v2723_v49 = vmul.f32 %v5839_v45, %v2709_v7  ;;  %v4810_v41 = vld [vmem:[#allocation9 + $0xa0] sm:$0xff]   ;;  %v4813_v7 = vld [vmem:[#allocation9 + $0xb8] sm:$0xff]  }
 0xd14   :  { %v2710_v28 = vsel %vm2678_vm12, %v2660_v6, %v3972_v47  ;;  %4576 = vmatpush3.bf16.msra.mxu1 %v5865_v42  ;;  %v3205_v6 = vpack.c.bf16 %v5669_v22, %v5669_v22  ;;  %v4814_v47 = vld [vmem:[#allocation10] sm:$0xff]  }
 0xd15   :  { %v2724_v48 = vmul.f32 %v5839_v45, %v2710_v28  ;;  %v2737_v30 = vadd.f32 %v5845_v54, %v2723_v49  ;;  %v4971_v45 = vld [vmem:[#allocation4 + $0x10] sm:$0xff]  }
 0xd16   :  { %v4815_v49 = vld [vmem:[#allocation10 + $0x8] sm:$0xff]  }
 0xd17   :  { %v2738_v26 = vadd.f32 %v5845_v54, %v2724_v48  ;;  %v4778_v54 = vld [vmem:[#allocation9 + $0x50] sm:$0xff]   ;;  %v5908_v48 = vld [vmem:[%s6014_s8 + $0x6] ss:$0 sm:$0xff] }
 0xd19   :  { %v5873_v11 = vpack.c.bf16 %v2738_v26, %v2737_v30 }
 0xd1b   :  { %4577 = vmatprep.subr.bf16.mxu1 %v5873_v11 }
 0xd1c   :  { %4578 = vmatpush3.bf16.msra.mxu1 %v5873_v11 }
 0xd1d   :  { %4402 = vmatprep.subr.bf16.mxu1 %v4774_v50 }
 0xd1f   :  { %4580 = vmatmul.mubr.msk.bf16.vlgmr.msra.gmra.mrb[80].mxu1 %vm487_vm0, %v4970_v46 }
 0xd20   :  { %4403 = vmatpush3.bf16.msra.mxu1 %v4775_v53  ;;  %4583 = vmatprep.mubr.msk.bf16.mxu1 %vm487_vm0, %v4971_v45 }
 0xd21   :  { %4404 = vmatprep.subr.bf16.mxu1 %v4776_v36 }
 0xd24   :  { %4405 = vmatpush3.bf16.msra.mxu1 %v4777_v56 }
 0xd25   :  { %4406 = vmatprep.subr.bf16.mxu1 %v4778_v54 }
 0xd27   :  { %4584 = vmatmul.mubr.msk.bf16.gmra.mrb[84].mxu1 %vm487_vm0, %v4972_v57  ;;  %vm5147_vm0 = vmmov 0  }
 0xd28   :  { %4407 = vmatpush3.bf16.msra.mxu1 %v4779_v25  ;;  %3439 = vmatprep.mubr.bf16.mxu1 %v3206_v31 }
 0xd29   :  { %4408 = vmatprep.subr.bf16.mxu1 %v4780_v58 }
 0xd2c   :  { %4409 = vmatpush3.bf16.msra.mxu1 %v4781_v51 }
 0xd2d   :  { %4410 = vmatprep.subr.bf16.mxu1 %v4782_v61 }
 0xd30   :  { %4411 = vmatpush3.bf16.msra.mxu1 %v4783_v52 }
 0xd31   :  { %4412 = vmatprep.subr.bf16.mxu1 %v4784_v63 }
 0xd34   :  { %4413 = vmatpush3.bf16.msra.mxu1 %v4785_v1 }
 0xd35   :  { %4414 = vmatprep.subr.bf16.mxu1 %v4786_v40 }
 0xd38   :  { %4415 = vmatpush3.bf16.msra.mxu1 %v4787_v12 }
 0xd39   :  { %4416 = vmatprep.subr.bf16.mxu1 %v4788_v3 }
 0xd3c   :  { %4417 = vmatpush3.bf16.msra.mxu1 %v4789_v4 }
 0xd3d   :  { %4607 = vmatprep.subr.bf16.mxu1 %v5146_v18 }
 0xd3f   :  { %3440 = vmatmul.mubr.bf16.vlgmr.msra.gmra.mrb[88].mxu1 %v3205_v6 }
 0xd40   :  { %4623 = vmatprep.mubr.msk.bf16.mxu1 %vm5147_vm0, %v5146_v18  ;;  %4608 = vmatpush3.bf16.msra.mxu1 %v4814_v47 }
 0xd41   :  { %4609 = vmatprep.subr.bf16.mxu1 %v5146_v18 }
 0xd44   :  { %4610 = vmatpush3.bf16.msra.mxu1 %v4815_v49 }
 0xd45   :  { %4611 = vmatprep.subr.bf16.mxu1 %v5146_v18 }
 0xdf2   :  { %v4581_v14 = vpop.f32.mrb[80].mxu1 }
 0xdf3   :  { %v2816_v15 = vpop.f32.mrb[81].mxu1 }
 0xdf4   :  { %v4582_v23 = vpop.f32.mrb[82].mxu1 }
 0xdf5   :  { %v2848_v20 = vpack.c.bf16 %v4582_v23, %v4581_v14  ;;  %v2819_v24 = vpop.f32.mrb[83].mxu1 }
 0xdf6   :  { %v2847_v29 = vpack.c.bf16 %v2819_v24, %v2816_v15 }
 0xdf8   :  { %2986 = vmatmul.mubr.bf16.vlgmr.msra.gmra.mrb[72].mxu0 %v2847_v29  ;;  %v5920_v29 = vld [vmem:[%s6015_s9 + $0x6] ss:$0 sm:$0xff] }
 0xdf9   :  { %2993 = vmatprep.mubr.bf16.mxu0 %v5857_v21  ;;  %v4806_v21 = vld [vmem:[#allocation9 + $0x80] sm:$0xff]  }
 0xdfa   :  { %v4585_v19 = vpop.f32.mrb[84].mxu1  ;;  %4588 = vmatpush3.bf16.msra.mxu0 %v4806_v21 }
 0xdfb   :  { %v2832_v59 = vpop.f32.mrb[85].mxu1  ;;  %4589 = vmatprep.subr.bf16.mxu0 %v5146_v18 }
 0xdfc   :  { %v4586_v62 = vpop.f32.mrb[86].mxu1 }
 0xdfd   :  { %v2850_v0 = vpack.c.bf16 %v4586_v62, %v4585_v19  ;;  %v2835_v32 = vpop.f32.mrb[87].mxu1 }
 0xdfe   :  { %v2849_v22 = vpack.c.bf16 %v2835_v32, %v2832_v59  ;;  %4590 = vmatpush3.bf16.msra.mxu0 %v4807_v16  ;;  %v5929_v32 = vld [vmem:[%s6016_s10 + $0x6] ss:$0 sm:$0xff] }
 0xdff   :  { %4591 = vmatprep.subr.bf16.mxu0 %v5146_v18 }
 0xe00   :  { %2994 = vmatmul.mubr.bf16.gmra.mrb[76].mxu0 %v2848_v20 }
 0xe01   :  { %3001 = vmatprep.mubr.bf16.mxu0 %v5865_v42  ;;  %v4812_v42 = vld [vmem:[#allocation9 + $0xb0] sm:$0xff]  }
 0xe02   :  { %4592 = vmatpush3.bf16.msra.mxu0 %v4808_v27 }
 0xe03   :  { %4593 = vmatprep.subr.bf16.mxu0 %v5146_v18 }
 0xe06   :  { %4594 = vmatpush3.bf16.msra.mxu0 %v4809_v38 }
 0xe07   :  { %4595 = vmatprep.subr.bf16.mxu0 %v5146_v18 }
 0xe08   :  { %3002 = vmatmul.mubr.bf16.gmra.mrb[80].mxu0 %v2849_v22 }
 0xe09   :  { %3009 = vmatprep.mubr.bf16.mxu0 %v5873_v11 }
 0xe0a   :  { %4596 = vmatpush3.bf16.msra.mxu0 %v4810_v41 }
 0xe0b   :  { %4597 = vmatprep.subr.bf16.mxu0 %v5146_v18 }
 0xe0e   :  { %4598 = vmatpush3.bf16.msra.mxu0 %v4811_v44 }
 0xe0f   :  { %4599 = vmatprep.subr.bf16.mxu0 %v5146_v18 }
 0xe10   :  { %3010 = vmatmul.mubr.bf16.gmra.mrb[84].mxu0 %v2850_v0 }
 0xe11   :  { %4603 = vmatprep.mubr.msk.bf16.mxu0 %vm5147_vm0, %v5146_v18 }
 0xe12   :  { %v4418_v9 = vpop.f32.mrb[88].mxu1  ;;  %4600 = vmatpush3.bf16.msra.mxu0 %v4812_v42 }
 0xe13   :  { %v4419_v35 = vpop.f32.mrb[89].mxu1  ;;  %4601 = vmatprep.subr.bf16.mxu0 %v5146_v18 }
 0xe14   :  { %v5887_v37 = vadd.f32 %v4419_v35, %v4418_v9  ;;  %v4421_v34 = vpop.f32.mrb[90].mxu1 }
 0xe15   :  { %v4422_v5 = vpop.f32.mrb[91].mxu1 }
 0xe16   :  { %4602 = vmatpush3.bf16.msra.mxu0 %v4813_v7 }
 0xe17   :  { %4627 = vmatprep.subr.bf16.mxu0 %v5146_v18 }
 0xecb   :  { %v4378_v28 = vpop.f32.mrb[72].mxu0 }
 0xecc   :  { %v4379_v30 = vpop.f32.mrb[73].mxu0 }
 0xecd   :  { %v4380_v26 = vadd.f32 %v4379_v30, %v4378_v28  ;;  %v4381_v11 = vpop.f32.mrb[74].mxu0 }
 0xece   :  { %v4382_v50 = vpop.f32.mrb[75].mxu0 }
 0xecf   :  { %v2988_v53 = vadd.f32 %v4380_v26, %v5908_v48  ;;  %v4383_v36 = vadd.f32 %v4382_v50, %v4381_v11 }
 0xed1   :  { %v3018_v46 = vmin.f32 %v2988_v53, 0.0  ;;  %v2991_v56 = vadd.f32 %v4383_v36, %v5908_v48  ;;  %vm3026_vm3 = vcmp.gt.f32.partialorder %v2988_v53, 0.0 }
 0xed3   :  { %v3034_v45 = vmul.f32 1.442695, %v3018_v46  ;;  %v3019_v54 = vmin.f32 %v2991_v56, 0.0  ;;  %v4384_v25 = vpop.f32.mrb[76].mxu0  ;;  %vm3027_vm4 = vcmp.gt.f32.partialorder %v2991_v56, 0.0 }
 0xed4   :  { %v4385_v58 = vpop.f32.mrb[77].mxu0 }
 0xed5   :  { %4942 = vpow2.f32 %v3034_v45  ;;  %v3036_v31 = vmul.f32 1.442695, %v3019_v54  ;;  %v4386_v57 = vadd.f32 %v4385_v58, %v4384_v25  ;;  %v4387_v51 = vpop.f32.mrb[78].mxu0 }
 0xed6   :  { %v4388_v61 = vpop.f32.mrb[79].mxu0 }
 0xed7   :  { %4944 = vpow2.f32 %v3036_v31  ;;  %v2996_v52 = vadd.f32 %v4386_v57, %v5908_v48  ;;  %v4389_v63 = vadd.f32 %v4388_v61, %v4387_v51 }
 0xed9   :  { %v3020_v1 = vmin.f32 %v2996_v52, 0.0  ;;  %v2999_v40 = vadd.f32 %v4389_v63, %v5908_v48  ;;  %vm3028_vm5 = vcmp.gt.f32.partialorder %v2996_v52, 0.0 }
 0xedb   :  { %v3038_v12 = vmul.f32 1.442695, %v3020_v1  ;;  %v3021_v3 = vmin.f32 %v2999_v40, 0.0  ;;  %v4390_v4 = vpop.f32.mrb[80].mxu0  ;;  %vm3029_vm6 = vcmp.gt.f32.partialorder %v2999_v40, 0.0 }
 0xedc   :  { %v4391_v6 = vpop.f32.mrb[81].mxu0 }
 0xedd   :  { %4946 = vpow2.f32 %v3038_v12  ;;  %v3040_v8 = vmul.f32 1.442695, %v3021_v3  ;;  %v4392_v10 = vadd.f32 %v4391_v6, %v4390_v4  ;;  %v4393_v14 = vpop.f32.mrb[82].mxu0 }
 0xede   :  { %v4394_v15 = vpop.f32.mrb[83].mxu0 }
 0xedf   :  { %v4943_v23 = vpop.eup %4942  ;;  %4948 = vpow2.f32 %v3040_v8  ;;  %v5915_v20 = vadd.f32 %v4392_v10, %v5908_v48  ;;  %v4395_v24 = vadd.f32 %v4394_v15, %v4393_v14 }
 0xee0   :  { %v3999_v19 = vadd.f32 -1.0, %v4943_v23 }
 0xee1   :  { %v4945_v59 = vpop.eup %4944  ;;  %v3022_v62 = vmin.f32 %v5915_v20, 0.0  ;;  %v5924_v0 = vadd.f32 %v4395_v24, %v5908_v48  ;;  %vm3030_vm7 = vcmp.gt.f32.partialorder %v5915_v20, 0.0 }
 0xee2   :  { %v3058_v22 = vsel %vm3026_vm3, %v2988_v53, %v3999_v19  ;;  %v4000_v9 = vadd.f32 -1.0, %v4945_v59 }
 0xee3   :  { %v3072_v35 = vmul.f32 %v5920_v29, %v3058_v22  ;;  %v3042_v34 = vmul.f32 1.442695, %v3022_v62  ;;  %v3023_v5 = vmin.f32 %v5924_v0, 0.0  ;;  %v4396_v21 = vpop.f32.mrb[84].mxu0  ;;  %vm3031_vm8 = vcmp.gt.f32.partialorder %v5924_v0, 0.0 }
 0xee4   :  { %v3059_v16 = vsel %vm3027_vm4, %v2991_v56, %v4000_v9  ;;  %v4397_v27 = vpop.f32.mrb[85].mxu0 }
 0xee5   :  { %v3086_v38 = vadd.f32 %v5929_v32, %v3072_v35  ;;  %v3073_v41 = vmul.f32 %v5920_v29, %v3059_v16  ;;  %4950 = vpow2.f32 %v3042_v34  ;;  %v3044_v44 = vmul.f32 1.442695, %v3023_v5  ;;  %v4399_v42 = vpop.f32.mrb[86].mxu0 }
 0xee6   :  { %v4398_v7 = vadd.f32 %v4397_v27, %v4396_v21  ;;  %v4400_v47 = vpop.f32.mrb[87].mxu0 }
 0xee7   :  { %v4947_v49 = vpop.eup %4946  ;;  %v3094_v28 = vadd.f32 %v3086_v38, %v5572_v55  ;;  %v3087_v30 = vadd.f32 %v5929_v32, %v3073_v41  ;;  %4952 = vpow2.f32 %v3044_v44  ;;  %v4401_v26 = vadd.f32 %v4400_v47, %v4399_v42 }
 0xee8   :  { %v4001_v11 = vadd.f32 -1.0, %v4947_v49  ;;  %v5938_v50 = vadd.f32 %v4398_v7, %v5908_v48 }
 0xee9   :  { %v4949_v53 = vpop.eup %4948  ;;  %v3102_v36 = vrot.slane %v3094_v28, 4  ;;  %v3095_v46 = vadd.f32 %v3087_v30, %v5587_v13  ;;  %v5942_v56 = vadd.f32 %v4401_v26, %v5908_v48 }
 0xeea   :  { %v3060_v45 = vsel %vm3028_vm5, %v2996_v52, %v4001_v11  ;;  %v4002_v54 = vadd.f32 -1.0, %v4949_v53  ;;  %v3024_v55 = vmin.f32 %v5938_v50, 0.0  ;;  %vm3032_vm11 = vcmp.gt.f32.partialorder %v5938_v50, 0.0 }
 0xeeb   :  { %v3103_v25 = vmax.f32 %v3094_v28, %v3102_v36  ;;  %v3108_v58 = vrot.slane %v3095_v46, 4  ;;  %v3074_v31 = vmul.f32 %v5920_v29, %v3060_v45  ;;  %v3025_v57 = vmin.f32 %v5942_v56, 0.0 }
 0xeec   :  { %v3061_v51 = vsel %vm3029_vm6, %v2999_v40, %v4002_v54  ;;  %v3046_v61 = vmul.f32 1.442695, %v3024_v55 }
 0xeed   :  { %v3104_v63 = vrot.slane %v3103_v25, 2  ;;  %v3109_v1 = vmax.f32 %v3095_v46, %v3108_v58  ;;  %v3088_v13 = vadd.f32 %v5929_v32, %v3074_v31  ;;  %v3075_v48 = vmul.f32 %v5920_v29, %v3061_v51 }
 0xeee   :  { %4954 = vpow2.f32 %v3046_v61  ;;  %v3048_v52 = vmul.f32 1.442695, %v3025_v57 }
 0xeef   :  { %v4951_v12 = vpop.eup %4950  ;;  %v3105_v3 = vmax.f32 %v3103_v25, %v3104_v63  ;;  %v3110_v4 = vrot.slane %v3109_v1, 2  ;;  %v3096_v6 = vadd.f32 %v3088_v13, %v5590_v17  ;;  %v3089_v8 = vadd.f32 %v5929_v32, %v3075_v48 }
 0xef0   :  { %v4003_v10 = vadd.f32 -1.0, %v4951_v12  ;;  %4956 = vpow2.f32 %v3048_v52 }
 0xef1   :  { %v4953_v40 = vpop.eup %4952  ;;  %v3106_v14 = vrot.slane %v3105_v3, 1  ;;  %v3111_v15 = vmax.f32 %v3109_v1, %v3110_v4  ;;  %v3114_v23 = vrot.slane %v3096_v6, 4  ;;  %v3097_v24 = vadd.f32 %v3089_v8, %v5605_v39 }
 0xef2   :  { %v3062_v19 = vsel %vm3030_vm7, %v5915_v20, %v4003_v10  ;;  %v4004_v59 = vadd.f32 -1.0, %v4953_v40 }
 0xef3   :  { %v3112_v62 = vrot.slane %v3111_v15, 1  ;;  %v3115_v22 = vmax.f32 %v3096_v6, %v3114_v23  ;;  %v3120_v9 = vrot.slane %v3097_v24, 4  ;;  %v3107_v17 = vmax.f32 %v3105_v3, %v3106_v14 }
 0xef4   :  { %v3076_v35 = vmul.f32 %v5920_v29, %v3062_v19  ;;  %v3063_v34 = vsel %vm3031_vm8, %v5924_v0, %v4004_v59 }
 0xef5   :  { %v3113_v5 = vmax.f32 %v3111_v15, %v3112_v62  ;;  %v3116_v21 = vrot.slane %v3115_v22, 2  ;;  %v3121_v16 = vmax.f32 %v3097_v24, %v3120_v9  ;;  %v3077_v27 = vmul.f32 %v5920_v29, %v3063_v34  ;;  %v4818_v34 = vld [vmem:[#allocation10 + $0x20] sm:$0xff]  }
 0xef6   :  { %v3090_v39 = vadd.f32 %v5929_v32, %v3076_v35  ;;  %v4817_v35 = vld [vmem:[#allocation10 + $0x18] sm:$0xff]  }
 0xef7   :  { %v3197_v20 = vsel %vm3158_vm9, %v3113_v5, %v3107_v17  ;;  %v3117_v38 = vmax.f32 %v3115_v22, %v3116_v21  ;;  %v3122_v41 = vrot.slane %v3121_v16, 2  ;;  %v3091_v44 = vadd.f32 %v5929_v32, %v3077_v27  ;;  %v4816_v17 = vld [vmem:[#allocation10 + $0x10] sm:$0xff]   ;;  %v4819_v5 = vld [vmem:[#allocation10 + $0x28] sm:$0xff]   ;;  %v4822_v27 = vld [vmem:[#allocation12] sm:$0xff]  }
 0xef8   :  { %v4955_v42 = vpop.eup %4954  ;;  %v3098_v7 = vadd.f32 %v3090_v39, %v5619_v60  ;;  %vm3033_vm9 = vcmp.gt.f32.partialorder %v5942_v56, 0.0  ;;  %4612 = vmatpush3.bf16.msra.mxu1 %v4816_v17  ;;  %v4820_v21 = vld [vmem:[#allocation10 + $0x30] sm:$0xff]   ;;  %v4823_v39 = vld [vmem:[#allocation12 + $0x8] sm:$0xff]  }
 0xef9   :  { %v3118_v47 = vrot.slane %v3117_v38, 1  ;;  %v3123_v49 = vmax.f32 %v3121_v16, %v3122_v41  ;;  %v3099_v0 = vadd.f32 %v3091_v44, %v5623_v2  ;;  %v4005_v28 = vadd.f32 -1.0, %v4955_v42  ;;  %4613 = vmatprep.subr.bf16.mxu1 %v5146_v18  ;;  %v4821_v16 = vld [vmem:[#allocation10 + $0x38] sm:$0xff]  }
 0xefa   :  { %v4957_v30 = vpop.eup %4956  ;;  %v3126_v26 = vrot.slane %v3098_v7, 4 }
 0xefb   :  { %v3119_v11 = vmax.f32 %v3117_v38, %v3118_v47  ;;  %v3124_v53 = vrot.slane %v3123_v49, 1  ;;  %v3132_v36 = vrot.slane %v3099_v0, 4  ;;  %v3064_v46 = vsel %vm3032_vm11, %v5938_v50, %v4005_v28 }
 0xefc   :  { %v3127_v45 = vmax.f32 %v3098_v7, %v3126_v26  ;;  %v3078_v54 = vmul.f32 %v5920_v29, %v3064_v46  ;;  %v4006_v55 = vadd.f32 -1.0, %v4957_v30  ;;  %4614 = vmatpush3.bf16.msra.mxu1 %v4817_v35  ;;  %v4827_v46 = vld [vmem:[#allocation12 + $0x28] sm:$0xff]  }
 0xefd   :  { %v3198_v60 = vsel %vm3160_vm10, %v3119_v11, %v3197_v20  ;;  %v3125_v25 = vmax.f32 %v3123_v49, %v3124_v53  ;;  %v3133_v58 = vmax.f32 %v3099_v0, %v3132_v36  ;;  %4615 = vmatprep.subr.bf16.mxu1 %v5146_v18  ;;  %v4009_v20 = vld [vmem:[%s6018_s12] ss:$0 sm:$0xff]  ;;  %v4824_v53 = vld [vmem:[#allocation12 + $0x10] sm:$0xff]  }
 0xefe   :  { %v3128_v2 = vrot.slane %v3127_v45, 2  ;;  %v3092_v31 = vadd.f32 %v5929_v32, %v3078_v54  ;;  %v3065_v57 = vsel %vm3033_vm9, %v5942_v56, %v4006_v55  ;;  %v3442_v38 = vadd.f32 %v5887_v37, %v4009_v20  ;;  %v4825_v36 = vld [vmem:[#allocation12 + $0x18] sm:$0xff]   ;;  %v4826_v37 = vld [vmem:[#allocation12 + $0x20] sm:$0xff]  }
 0xeff   :  { %v3134_v51 = vrot.slane %v3133_v58, 2  ;;  %v3079_v61 = vmul.f32 %v5920_v29, %v3065_v57  ;;  %v3199_v50 = vsel %vm3162_vm13, %v3125_v25, %v3198_v60  ;;  %v4829_v54 = vld [vmem:[#allocation12 + $0x38] sm:$0xff]  }
 0xf00   :  { %v3129_v63 = vmax.f32 %v3127_v45, %v3128_v2  ;;  %v3100_v1 = vadd.f32 %v3092_v31, %v5638_v33  ;;  %4616 = vmatpush3.bf16.msra.mxu1 %v4818_v34  ;;  %v4828_v45 = vld [vmem:[#allocation12 + $0x30] sm:$0xff]   ;;  %v4035_v55 = vld [vmem:[%s6020_s14] ss:$0 sm:$0xff] }
 0xf01   :  { %v3135_v13 = vmax.f32 %v3133_v58, %v3134_v51  ;;  %v3093_v48 = vadd.f32 %v5929_v32, %v3079_v61  ;;  %4617 = vmatprep.subr.bf16.mxu1 %v5146_v18 }
 0xf02   :  { %v3130_v52 = vrot.slane %v3129_v63, 1  ;;  %v3138_v12 = vrot.slane %v3100_v1, 4 }
 0xf03   :  { %v3136_v3 = vrot.slane %v3135_v13, 1  ;;  %v3101_v4 = vadd.f32 %v3093_v48, %v5645_v43  ;;  %v4045_v48 = vld [vmem:[%s6022_s16] ss:$0 sm:$0xff] }
 0xf04   :  { %v3131_v6 = vmax.f32 %v3129_v63, %v3130_v52  ;;  %v3139_v8 = vmax.f32 %v3100_v1, %v3138_v12  ;;  %4618 = vmatpush3.bf16.msra.mxu1 %v4819_v5 }
 0xf05   :  { %v3137_v10 = vmax.f32 %v3135_v13, %v3136_v3  ;;  %v3144_v56 = vrot.slane %v3101_v4, 4  ;;  %4619 = vmatprep.subr.bf16.mxu1 %v5146_v18 }
 0xf06   :  { %v3140_v40 = vrot.slane %v3139_v8, 2  ;;  %v3200_v29 = vsel %vm3164_vm14, %v3131_v6, %v3199_v50 }
 0xf07   :  { %v3145_v14 = vmax.f32 %v3101_v4, %v3144_v56  ;;  %v3201_v15 = vsel %vm3166_vm15, %v3137_v10, %v3200_v29 }
 0xf08   :  { %v3141_v23 = vmax.f32 %v3139_v8, %v3140_v40  ;;  %4620 = vmatpush3.bf16.msra.mxu1 %v4820_v21 }
 0xf09   :  { %v3146_v33 = vrot.slane %v3145_v14, 2  ;;  %4621 = vmatprep.subr.bf16.mxu1 %v5146_v18 }
 0xf0a   :  { %v3142_v24 = vrot.slane %v3141_v23, 1 }
 0xf0b   :  { %v3147_v19 = vmax.f32 %v3145_v14, %v3146_v33 }
 0xf0c   :  { %v3143_v32 = vmax.f32 %v3141_v23, %v3142_v24  ;;  %4622 = vmatpush3.bf16.msra.mxu1 %v4821_v16 }
 0xf0d   :  { %v3148_v59 = vrot.slane %v3147_v19, 1 }
 0xf0e   :  { %v3202_v62 = vsel %vm3168_vm1, %v3143_v32, %v3201_v15 }
 0xf0f   :  { %v3149_v22 = vmax.f32 %v3147_v19, %v3148_v59 }
 0xf11   :  { %v3203_v43 = vsel %vm3170_vm2, %v3149_v22, %v3202_v62 }
 0xf12   :  { %v3207_v9 = vpack.c.bf16 %v3203_v43, %v3203_v43 }
 0xf14   :  { %4604 = vmatmul.mubr.bf16.vlgmr.msra.gmra.mrb[88].mxu0 %v3207_v9 }
 0xf15   :  { %4643 = vmatprep.mubr.msk.bf16.mxu0 %vm5147_vm0, %v5146_v18  ;;  %4628 = vmatpush3.bf16.msra.mxu0 %v4822_v27 }
 0xf16   :  { %4629 = vmatprep.subr.bf16.mxu0 %v5146_v18 }
 0xf19   :  { %4630 = vmatpush3.bf16.msra.mxu0 %v4823_v39 }
 0xf1a   :  { %4631 = vmatprep.subr.bf16.mxu0 %v5146_v18 }
 0xf1d   :  { %4632 = vmatpush3.bf16.msra.mxu0 %v4824_v53 }
 0xf1e   :  { %4633 = vmatprep.subr.bf16.mxu0 %v5146_v18 }
 0xf21   :  { %4634 = vmatpush3.bf16.msra.mxu0 %v4825_v36 }
 0xf22   :  { %4635 = vmatprep.subr.bf16.mxu0 %v5146_v18 }
 0xf25   :  { %4636 = vmatpush3.bf16.msra.mxu0 %v4826_v37 }
 0xf26   :  { %4637 = vmatprep.subr.bf16.mxu0 %v5146_v18 }
 0xf29   :  { %4638 = vmatpush3.bf16.msra.mxu0 %v4827_v46 }
 0xf2a   :  { %4639 = vmatprep.subr.bf16.mxu0 %v5146_v18 }
 0xf2d   :  { %4640 = vmatpush3.bf16.msra.mxu0 %v4828_v45 }
 0xf2e   :  { %4641 = vmatprep.subr.bf16.mxu0 %v5146_v18  ;;  %v3723_v18 = vlaneseq }
 0xf30   :  { %v3724_v13 = vand.u32 127, %v3723_v18 }
 0xf31   :  { %4642 = vmatpush3.bf16.msra.mxu0 %v4829_v54 }
 0xf32   :  { %vm3725_vm14 = vcmp.lt.s32.totalorder %v3724_v13, 3 }
 0xfe7   :  { %v3481_v41 = vpop.f32.mrb[88].mxu0 }
 0xfe8   :  { %v3482_v44 = vadd.f32 %v3481_v41, %v3442_v38  ;;  %v4605_v42 = vpop.f32.mrb[89].mxu0 }
 0xfe9   :  { %v3484_v7 = vpop.f32.mrb[90].mxu0 }
 0xfea   :  { %v3487_v47 = vmin.f32 %v3482_v44, 0.0  ;;  %v4606_v49 = vpop.f32.mrb[91].mxu0  ;;  %vm3488_vm10 = vcmp.gt.f32.partialorder %v3482_v44, 0.0 }
 0xfec   :  { %v3489_v0 = vmul.f32 1.442695, %v3487_v47 }
 0xfee   :  { %4958 = vpow2.f32 %v3489_v0 }
 0xff8   :  { %v4959_v28 = vpop.eup %4958 }
 0xff9   :  { %v4034_v30 = vadd.f32 -1.0, %v4959_v28 }
 0xffb   :  { %v3492_v26 = vsel %vm3488_vm10, %v3482_v44, %v4034_v30 }
 0xffc   :  { %v3493_v11 = vpack.c.bf16 %v3492_v26, %v3492_v26 }
 0xffe   :  { %4624 = vmatmul.mubr.bf16.vlgmr.msra.gmra.mrb[92].mxu1 %v3493_v11 }
0x10d1   :  { %v3599_v60 = vpop.f32.mrb[92].mxu1 }
0x10d2   :  { %v3600_v25 = vadd.f32 %v4035_v55, %v3599_v60  ;;  %v4625_v58 = vpop.f32.mrb[93].mxu1 }
0x10d3   :  { %v3602_v2 = vpop.f32.mrb[94].mxu1 }
0x10d4   :  { %v3605_v31 = vmin.f32 %v3600_v25, 0.0  ;;  %v4626_v57 = vpop.f32.mrb[95].mxu1  ;;  %vm3606_vm13 = vcmp.gt.f32.partialorder %v3600_v25, 0.0 }
0x10d6   :  { %v3607_v51 = vmul.f32 1.442695, %v3605_v31 }
0x10d8   :  { %4960 = vpow2.f32 %v3607_v51 }
0x10e2   :  { %v4961_v61 = vpop.eup %4960 }
0x10e3   :  { %v4044_v50 = vadd.f32 -1.0, %v4961_v61 }
0x10e5   :  { %v3610_v63 = vsel %vm3606_vm13, %v3600_v25, %v4044_v50 }
0x10e6   :  { %v3611_v1 = vpack.c.bf16 %v3610_v63, %v3610_v63 }
0x10e8   :  { %4644 = vmatmul.mubr.bf16.vlgmr.msra.gmra.mrb[92].mxu0 %v3611_v1 }
0x11bb   :  { %v3717_v52 = vpop.f32.mrb[92].mxu0 }
0x11bc   :  { %v3718_v12 = vadd.f32 %v4045_v48, %v3717_v52  ;;  %v4645_v3 = vpop.f32.mrb[93].mxu0 }
0x11bd   :  { %v3720_v4 = vpop.f32.mrb[94].mxu0 }
0x11be   :  { %v4646_v6 = vpop.f32.mrb[95].mxu0  ;;  %v3726_v8 = vsel %vm3725_vm14, %v3718_v12, -1e+30 }
0x11bf   :  { %3727 = vmax.xlane.f32.xlu0 %v3726_v8 }
0x124c   :  { %v3728_v10 = vpop.xlane.xlu0 %3727 }
0x124d   :  { %v3729_v56 = vsub.f32 %v3726_v8, %v3728_v10 }
0x124f   :  { %v3730_v40 = vmul.f32 1.442695, %v3729_v56 }
0x1251   :  { %4962 = vpow2.f32 %v3730_v40 }
0x125b   :  { %v4963_v29 = vpop.eup %4962 }
0x125c   :  { %3732 = vadd.xlane.f32.xlu1 %v4963_v29 }
0x12e9   :  { %v3733_v14 = vpop.xlane.xlu1 %3732 }
0x12ea   :  { %4964 = vlog2.f32 %v3733_v14 }
0x12f4   :  { %v4965_v15 = vpop.eup %4964 }
0x12f5   :  { %v3735_v23 = vmul.f32 0.6931472, %v4965_v15 }
0x12f7   :  { %v3736_v33 = vadd.f32 %v3735_v23, %v3728_v10 }
0x12f9   :  { %v3737_v24 = vsub.f32 %v3726_v8, %v3736_v33 }
0x12fb   :  { %3738 = vst [vmem:[%s6031_s23] sm:$0xff] %v3737_v24 }
0x12fc   :  { %3743 = vsyncpa [#allocation3], 1 }
0x12fd   :  { %3744 = vsyncpa [#allocation5], 1 }
0x12fe   :  { %3745 = vsyncpa [#allocation8], 1 }
0x12ff   :  { %3746 = vsyncpa [#allocation11], 1 }

</bundles_post_ra>
